<compile_context>
chip_gen: v5e
topology: v5e:2x2
jax: 0.10.0
libtpu: 0.0.40
codegen_flags: <defaults>
</compile_context>

<pallas_src>
from functools import partial

import jax
import jax.numpy as jnp
from jax import lax
from jax.experimental import pallas as pl
from jax.experimental.pallas import tpu as pltpu

EPS = 1e-5


def conv1x1_bn_kernel(x_ref, w_ref, gamma_ref, beta_ref, o_ref, *, m_valid: int):
    # x_ref: (Cin, Mp) f32, w_ref: (Cout, Cin) f32,
    # gamma/beta: (Cout, 1) f32, o_ref: (Cout, Mp) f32.  Mp is 128-lane padded;
    # columns >= m_valid of x are zero.
    x = x_ref[...].astype(jnp.bfloat16)       # cast in-kernel (feeds MXU)
    w = w_ref[...].astype(jnp.bfloat16)
    y = jnp.dot(w, x, preferred_element_type=jnp.float32)   # (Cout, Mp), f32 acc

    inv_m = jnp.float32(1.0 / m_valid)        # 1 / (N*H*W), NOT 1/Mp
    col = lax.broadcasted_iota(jnp.int32, y.shape, 1)
    valid = col < m_valid

    # Mean is exact without masking (padded columns of y are exactly 0); the
    # centered second pass needs the mask since (0 - mean)^2 != 0.
    mean = jnp.sum(y, axis=1, keepdims=True) * inv_m              # (Cout, 1)
    d = jnp.where(valid, y - mean, 0.0)
    var = jnp.sum(d * d, axis=1, keepdims=True) * inv_m           # biased (train)
    inv_std = lax.rsqrt(var + EPS)                                # EUP

    # Fold BN affine into one FMA per element.
    scale = gamma_ref[...] * inv_std                              # (Cout, 1)
    shift = beta_ref[...] - mean * scale                          # (Cout, 1)
    o_ref[...] = (y * scale + shift).astype(o_ref.dtype)


def conv2d_1x1_batchnorm(x_nchw, w_oihw, gamma, beta, *, out_dtype=jnp.float32):
    """Fused 1x1 conv (bias=False) + BatchNorm2d with training-mode batch stats."""
    N, Cin, H, W = x_nchw.shape
    Cout = w_oihw.shape[0]
    M = N * H * W
    LANES = 128
    Mp = max(LANES, ((M + LANES - 1) // LANES) * LANES)   # 196 -> 256 (lane-dense)

    # Glue: free reshape for N == 1 (the module's case); transpose fallback else.
    if N == 1:
        x_cm = x_nchw.reshape(Cin, M)
    else:
        x_cm = jnp.transpose(x_nchw, (1, 0, 2, 3)).reshape(Cin, M)
    if Mp != M:
        x_cm = jnp.pad(x_cm, ((0, 0), (0, Mp - M)))       # zero columns -> exact stats
    w_oc = w_oihw.reshape(Cout, Cin)
    gamma2 = gamma.reshape(Cout, 1).astype(jnp.float32)
    beta2 = beta.reshape(Cout, 1).astype(jnp.float32)

    cost = pl.CostEstimate(
        flops=2 * Mp * Cin * Cout + 6 * Mp * Cout,
        transcendentals=Cout,
        bytes_accessed=Cin * Mp * 4 + Cout * Cin * 4 + 2 * Cout * 4 + Cout * Mp * 4,
    )

    out_cm = pl.pallas_call(
        partial(conv1x1_bn_kernel, m_valid=M),
        out_shape=jax.ShapeDtypeStruct((Cout, Mp), out_dtype),
        in_specs=[
            pl.BlockSpec(memory_space=pltpu.MemorySpace.VMEM),  # x     (Cin, Mp)  f32
            pl.BlockSpec(memory_space=pltpu.MemorySpace.VMEM),  # w     (Cout,Cin) f32
            pl.BlockSpec(memory_space=pltpu.MemorySpace.VMEM),  # gamma (Cout, 1)  f32
            pl.BlockSpec(memory_space=pltpu.MemorySpace.VMEM),  # beta  (Cout, 1)  f32
        ],
        out_specs=pl.BlockSpec(memory_space=pltpu.MemorySpace.VMEM),
        cost_estimate=cost,
        compiler_params=pltpu.CompilerParams(
            # Let XLA fuse the reshape/pad producers into the x / w operands so
            # the padding does not cost an extra HBM round trip.
            allow_input_fusion=[True, True, False, False],
        ),
    )(x_cm.astype(jnp.float32), w_oc.astype(jnp.float32), gamma2, beta2)

    out_cm = out_cm[:, :M]                    # drop padded columns (hold `shift`)
    if N == 1:
        return out_cm.reshape(1, Cout, H, W)
    return jnp.transpose(out_cm.reshape(Cout, N, H, W), (1, 0, 2, 3))


if __name__ == "__main__":
    # Shapes implied by the module: x444 = [1, 1632, 14, 14], Conv2d(1632 -> 128, 1x1).
    N, Cin, H, W = 1, 1632, 14, 14
    Cout = 128

    key = jax.random.PRNGKey(0)
    kx, kw = jax.random.split(key)

    x = jax.random.normal(kx, (N, Cin, H, W), dtype=jnp.float32)
    bound = 1.0 / jnp.sqrt(jnp.float32(Cin))
    w = jax.random.uniform(kw, (Cout, Cin, 1, 1), dtype=jnp.float32,
                           minval=-bound, maxval=bound)
    gamma = jnp.ones((Cout,), dtype=jnp.float32)   # BatchNorm2d affine weight init
    beta = jnp.zeros((Cout,), dtype=jnp.float32)   # BatchNorm2d affine bias init

    out = conv2d_1x1_batchnorm(x, w, gamma, beta)
    out = jax.block_until_ready(out)

    # Pure-JAX f32 reference (bf16 MXU operands -> slightly loosened tolerance;
    # BN-normalized output has unit scale).
    y_ref = jnp.einsum('nchw,oc->nohw', x, w.reshape(Cout, Cin))
    mean = jnp.mean(y_ref, axis=(0, 2, 3), keepdims=True)
    var = jnp.mean(jnp.square(y_ref - mean), axis=(0, 2, 3), keepdims=True)
    ref = (y_ref - mean) * lax.rsqrt(var + EPS) * gamma.reshape(1, Cout, 1, 1) \
          + beta.reshape(1, Cout, 1, 1)
    assert out.shape == (N, Cout, H, W)
    assert jnp.allclose(out, ref, atol=3e-2, rtol=3e-2), \
        float(jnp.max(jnp.abs(out - ref)))

    print("KERNEL_OK")
</pallas_src>

<mosaic_0001>
module attributes {stable_mosaic.version = 11 : i64} {
  func.func @conv1x1_bn_kernel(%arg0: memref<1632x256xf32, #tpu.memory_space<vmem>>, %arg1: memref<128x1632xf32, #tpu.memory_space<vmem>>, %arg2: memref<128x1xf32, #tpu.memory_space<vmem>>, %arg3: memref<128x1xf32, #tpu.memory_space<vmem>>, %arg4: memref<128x256xf32, #tpu.memory_space<vmem>>) attributes {dimension_semantics = [], scalar_prefetch = 0 : i64, scratch_operands = 0 : i64, tpu.core_type = #tpu.core_type<tc>} {
    %c0 = arith.constant 0 : index
    %c0_0 = arith.constant 0 : index
    %0 = vector.load %arg0[%c0, %c0_0] : memref<1632x256xf32, #tpu.memory_space<vmem>>, vector<1632x256xf32>
    %1 = arith.truncf %0 : vector<1632x256xf32> to vector<1632x256xbf16>
    %c0_1 = arith.constant 0 : index
    %c0_2 = arith.constant 0 : index
    %2 = vector.load %arg1[%c0_1, %c0_2] : memref<128x1632xf32, #tpu.memory_space<vmem>>, vector<128x1632xf32>
    %3 = arith.truncf %2 : vector<128x1632xf32> to vector<128x1632xbf16>
    %cst = arith.constant dense<0.000000e+00> : vector<128x256xf32>
    %4 = tpu.matmul %3, %1, %cst {dimension_numbers = #tpu.dot_dimension_numbers<[1], [0], [0], [1], [0, 0, 1, 1], [], []>} : vector<128x1632xbf16>, vector<1632x256xbf16>, vector<128x256xf32> -> vector<128x256xf32>
    %5 = tpu.iota {dimensions = array<i32: 1>} : vector<128x256xi32>
    %c196_i32 = arith.constant 196 : i32
    %6 = vector.broadcast %c196_i32 : i32 to vector<128x256xi32>
    %7 = arith.cmpi slt, %5, %6 : vector<128x256xi32>
    %cst_3 = arith.constant dense<0.000000e+00> : vector<128xf32>
    %8 = vector.multi_reduction <add>, %4, %cst_3 [1] : vector<128x256xf32> to vector<128xf32>
    %9 = vector.shape_cast %8 : vector<128xf32> to vector<128x1xf32>
    %cst_4 = arith.constant 0.00510204071 : f32
    %10 = vector.broadcast %cst_4 : f32 to vector<128x1xf32>
    %11 = arith.mulf %9, %10 : vector<128x1xf32>
    %12 = vector.broadcast %11 : vector<128x1xf32> to vector<128x256xf32>
    %13 = arith.subf %4, %12 : vector<128x256xf32>
    %cst_5 = arith.constant 0.000000e+00 : f32
    %14 = vector.broadcast %cst_5 : f32 to vector<128x256xf32>
    %15 = arith.select %7, %13, %14 : vector<128x256xi1>, vector<128x256xf32>
    %16 = arith.mulf %15, %15 : vector<128x256xf32>
    %cst_6 = arith.constant dense<0.000000e+00> : vector<128xf32>
    %17 = vector.multi_reduction <add>, %16, %cst_6 [1] : vector<128x256xf32> to vector<128xf32>
    %18 = vector.shape_cast %17 : vector<128xf32> to vector<128x1xf32>
    %cst_7 = arith.constant 0.00510204071 : f32
    %19 = vector.broadcast %cst_7 : f32 to vector<128x1xf32>
    %20 = arith.mulf %18, %19 : vector<128x1xf32>
    %cst_8 = arith.constant 9.99999974E-6 : f32
    %21 = vector.broadcast %cst_8 : f32 to vector<128x1xf32>
    %22 = arith.addf %20, %21 : vector<128x1xf32>
    %23 = math.rsqrt %22 : vector<128x1xf32>
    %c0_9 = arith.constant 0 : index
    %c0_10 = arith.constant 0 : index
    %24 = vector.load %arg2[%c0_9, %c0_10] : memref<128x1xf32, #tpu.memory_space<vmem>>, vector<128x1xf32>
    %25 = arith.mulf %24, %23 : vector<128x1xf32>
    %c0_11 = arith.constant 0 : index
    %c0_12 = arith.constant 0 : index
    %26 = vector.load %arg3[%c0_11, %c0_12] : memref<128x1xf32, #tpu.memory_space<vmem>>, vector<128x1xf32>
    %27 = arith.mulf %11, %25 : vector<128x1xf32>
    %28 = arith.subf %26, %27 : vector<128x1xf32>
    %29 = vector.broadcast %25 : vector<128x1xf32> to vector<128x256xf32>
    %30 = arith.mulf %4, %29 : vector<128x256xf32>
    %31 = vector.broadcast %28 : vector<128x1xf32> to vector<128x256xf32>
    %32 = arith.addf %30, %31 : vector<128x256xf32>
    %c0_13 = arith.constant 0 : index
    %c0_14 = arith.constant 0 : index
    %33 = vector.load %arg4[%c0_13, %c0_14] : memref<128x256xf32, #tpu.memory_space<vmem>>, vector<128x256xf32>
    tpu.vector_store %arg4[%c0_13, %c0_14], %32 {strides = array<i32>} : memref<128x256xf32, #tpu.memory_space<vmem>>, vector<128x256xf32>,
    return
  }
}

</mosaic_0001>

<bundles_post_ra>
// kernel: tpu_custom_call.1
= control target key start
LH: loop header
LB: loop body
LE: loop exit
PB: predicated region body
PF: predicated region fallthrough
CT: control target
= control target key end

     0   :  { %s6069_s0 = inlined_call_operand.vmem [shape: f32[1632,256], index: 0, kind: input, shape index: {}]   ;;  %s6070_s1 = inlined_call_operand.vmem [shape: f32[128,1632], index: 1, kind: input, shape index: {}]   ;;  %s6071_s2 = inlined_call_operand.vmem [shape: f32[128,1], index: 2, kind: input, shape index: {}]   ;;  %s6072_s3 = inlined_call_operand.vmem [shape: f32[128,1], index: 3, kind: input, shape index: {}]   ;;  %s6073_s4 = inlined_call_operand.hbm [shape: f32[128,256], index: 4, kind: output, shape index: {}]  }
   0x1   :  { %v47_v0 = vld [vmem:[%s6069_s0 + $0xe0] sm:$0xff]  ;;  %v49_v1 = vld [vmem:[%s6069_s0 + $0xf0] sm:$0xff]  ;;  %v748_v47 = vld [vmem:[%s6070_s1 + $0x3a8] sm:$0xff] }
   0x2   :  { %v79_v2 = vld [vmem:[%s6069_s0 + $0x1e0] sm:$0xff]  ;;  %v441_v3 = vpack.c.bf16 %v49_v1, %v47_v0  ;;  %v81_v4 = vld [vmem:[%s6069_s0 + $0x1f0] sm:$0xff]  ;;  %v736_v50 = vld [vmem:[%s6070_s1 + $0x348] sm:$0xff] }
   0x3   :  { %v43_v5 = vld [vmem:[%s6069_s0 + $0xc0] sm:$0xff]  ;;  %v45_v6 = vld [vmem:[%s6069_s0 + $0xd0] sm:$0xff]  ;;  %v457_v7 = vpack.c.bf16 %v81_v4, %v79_v2 }
   0x4   :  { %v75_v8 = vld [vmem:[%s6069_s0 + $0x1c0] sm:$0xff]  ;;  %v77_v9 = vld [vmem:[%s6069_s0 + $0x1d0] sm:$0xff]  ;;  %3017 = vmatpush.bf16.msra.mxu2 %v441_v3  ;;  %968 = vmatpush.bf16.msra.mxu0 %v441_v3  ;;  %v439_v10 = vpack.c.bf16 %v45_v6, %v43_v5 }
   0x5   :  { %3025 = vmatpush.bf16.msra.mxu3 %v457_v7  ;;  %1017 = vmatpush.bf16.msra.mxu1 %v457_v7  ;;  %v455_v11 = vpack.c.bf16 %v77_v9, %v75_v8  ;;  %v39_v12 = vld [vmem:[%s6069_s0 + $0xa0] sm:$0xff]  ;;  %v41_v13 = vld [vmem:[%s6069_s0 + $0xb0] sm:$0xff] }
   0x6   :  { %v71_v14 = vld [vmem:[%s6069_s0 + $0x1a0] sm:$0xff]  ;;  %v73_v15 = vld [vmem:[%s6069_s0 + $0x1b0] sm:$0xff]  ;;  %v437_v16 = vpack.c.bf16 %v41_v13, %v39_v12 }
   0x7   :  { %v453_v17 = vpack.c.bf16 %v73_v15, %v71_v14  ;;  %v35_v18 = vld [vmem:[%s6069_s0 + $0x80] sm:$0xff]  ;;  %v37_v19 = vld [vmem:[%s6069_s0 + $0x90] sm:$0xff] }
   0x8   :  { %3018 = vmatpush.bf16.msra.mxu2 %v439_v10  ;;  %969 = vmatpush.bf16.msra.mxu0 %v439_v10  ;;  %v67_v20 = vld [vmem:[%s6069_s0 + $0x180] sm:$0xff]  ;;  %v69_v21 = vld [vmem:[%s6069_s0 + $0x190] sm:$0xff]  ;;  %v435_v22 = vpack.c.bf16 %v37_v19, %v35_v18 }
   0x9   :  { %3026 = vmatpush.bf16.msra.mxu3 %v455_v11  ;;  %1018 = vmatpush.bf16.msra.mxu1 %v455_v11  ;;  %v451_v23 = vpack.c.bf16 %v69_v21, %v67_v20  ;;  %v31_v24 = vld [vmem:[%s6069_s0 + $0x60] sm:$0xff]  ;;  %v33_v25 = vld [vmem:[%s6069_s0 + $0x70] sm:$0xff] }
   0xa   :  { %v63_v26 = vld [vmem:[%s6069_s0 + $0x160] sm:$0xff]  ;;  %v65_v27 = vld [vmem:[%s6069_s0 + $0x170] sm:$0xff]  ;;  %v433_v28 = vpack.c.bf16 %v33_v25, %v31_v24 }
   0xb   :  { %v449_v29 = vpack.c.bf16 %v65_v27, %v63_v26  ;;  %v27_v30 = vld [vmem:[%s6069_s0 + $0x40] sm:$0xff]  ;;  %v29_v31 = vld [vmem:[%s6069_s0 + $0x50] sm:$0xff] }
   0xc   :  { %3019 = vmatpush.bf16.msra.mxu2 %v437_v16  ;;  %970 = vmatpush.bf16.msra.mxu0 %v437_v16  ;;  %v59_v32 = vld [vmem:[%s6069_s0 + $0x140] sm:$0xff]  ;;  %v61_v33 = vld [vmem:[%s6069_s0 + $0x150] sm:$0xff]  ;;  %v431_v34 = vpack.c.bf16 %v29_v31, %v27_v30 }
   0xd   :  { %3027 = vmatpush.bf16.msra.mxu3 %v453_v17  ;;  %1019 = vmatpush.bf16.msra.mxu1 %v453_v17  ;;  %v447_v35 = vpack.c.bf16 %v61_v33, %v59_v32  ;;  %v23_v36 = vld [vmem:[%s6069_s0 + $0x20] sm:$0xff]  ;;  %v25_v37 = vld [vmem:[%s6069_s0 + $0x30] sm:$0xff] }
   0xe   :  { %v55_v38 = vld [vmem:[%s6069_s0 + $0x120] sm:$0xff]  ;;  %v57_v39 = vld [vmem:[%s6069_s0 + $0x130] sm:$0xff]  ;;  %v429_v40 = vpack.c.bf16 %v25_v37, %v23_v36 }
   0xf   :  { %v19_v41 = vld [vmem:[%s6069_s0] sm:$0xff]  ;;  %v445_v42 = vpack.c.bf16 %v57_v39, %v55_v38  ;;  %v21_v43 = vld [vmem:[%s6069_s0 + $0x10] sm:$0xff] }
  0x10   :  { %3020 = vmatpush.bf16.msra.mxu2 %v435_v22  ;;  %971 = vmatpush.bf16.msra.mxu0 %v435_v22  ;;  %v51_v44 = vld [vmem:[%s6069_s0 + $0x100] sm:$0xff]  ;;  %v53_v45 = vld [vmem:[%s6069_s0 + $0x110] sm:$0xff] }
  0x11   :  { %3028 = vmatpush.bf16.msra.mxu3 %v451_v23  ;;  %1020 = vmatpush.bf16.msra.mxu1 %v451_v23  ;;  %v735_v46 = vld [vmem:[%s6070_s1 + $0x340] sm:$0xff]  ;;  %v113_v49 = vld [vmem:[%s6069_s0 + $0x2f0] sm:$0xff] }
  0x12   :  { %v111_v48 = vld [vmem:[%s6069_s0 + $0x2e0] sm:$0xff]  ;;  %v749_v51 = vld [vmem:[%s6070_s1 + $0x3b0] sm:$0xff] }
  0x13   :  { %v143_v52 = vld [vmem:[%s6069_s0 + $0x3e0] sm:$0xff]  ;;  %v145_v53 = vld [vmem:[%s6069_s0 + $0x3f0] sm:$0xff] }
  0x14   :  { %3021 = vmatpush.bf16.msra.mxu2 %v433_v28  ;;  %972 = vmatpush.bf16.msra.mxu0 %v433_v28 }
  0x15   :  { %3029 = vmatpush.bf16.msra.mxu3 %v449_v29  ;;  %1021 = vmatpush.bf16.msra.mxu1 %v449_v29 }
  0x18   :  { %3022 = vmatpush.bf16.msra.mxu2 %v431_v34  ;;  %973 = vmatpush.bf16.msra.mxu0 %v431_v34 }
  0x19   :  { %3030 = vmatpush.bf16.msra.mxu3 %v447_v35  ;;  %1022 = vmatpush.bf16.msra.mxu1 %v447_v35 }
  0x1a   :  { %9 = vsyncpa [#allocation3], 0  ;;  %v427_v54 = vpack.c.bf16 %v21_v43, %v19_v41  ;;  %v631_v55 = vld [vmem:[%s6070_s1] sm:$0xff]  ;;  %v644_v56 = vld [vmem:[%s6070_s1 + $0x68] sm:$0xff]  ;;  %v443_v58 = vpack.c.bf16 %v53_v45, %v51_v44  ;;  %v473_v62 = vpack.c.bf16 %v113_v49, %v111_v48  ;;  %v489_v63 = vpack.c.bf16 %v145_v53, %v143_v52  ;;  %s2989_s24 = sshll.u32 %s6073_s4, 4  ;;  %s3100_s25 = smov 256   ;;  %s2990_s24 = int_to_ptr.hbm [resolvable:$true] %s2989_s24 }
  0x1b   :  { %v632_v57 = vld [vmem:[%s6070_s1 + $0x8] sm:$0xff]  ;;  %v645_v59 = vld [vmem:[%s6070_s1 + $0x70] sm:$0xff]  ;;  %v107_v60 = vld [vmem:[%s6069_s0 + $0x2c0] sm:$0xff]  ;;  %v3274_v3 = vpack.c.bf16 %v748_v47, %v735_v46  ;;  %v3276_v4 = vpack.c.bf16 %v644_v56, %v631_v55  ;;  %v3287_v8 = vpack.c.bf16 %v749_v51, %v736_v50  ;;  %vm943_vm0 = vcmask 785408   ;;  %s3101_s26 = smov 16  }
  0x1c   :  { %3023 = vmatpush.bf16.msra.mxu2 %v429_v40  ;;  %974 = vmatpush.bf16.msra.mxu0 %v429_v40  ;;  %v175_v61 = vld [vmem:[%s6069_s0 + $0x4e0] sm:$0xff]  ;;  %v177_v0 = vld [vmem:[%s6069_s0 + $0x4f0] sm:$0xff]  ;;  %v3289_v9 = vpack.c.bf16 %v645_v59, %v632_v57  ;;  %v774_v39 = vld [vmem:[%s6070_s1 + $0x478] sm:$0xff] }
  0x1d   :  { %3031 = vmatpush.bf16.msra.mxu3 %v445_v42  ;;  %1023 = vmatpush.bf16.msra.mxu1 %v445_v42  ;;  %v207_v1 = vld [vmem:[%s6069_s0 + $0x5e0] sm:$0xff]  ;;  %v209_v2 = vld [vmem:[%s6069_s0 + $0x5f0] sm:$0xff]  ;;  %6145 = vst [vmem:[#allocation5_spill] sm:$0xff] %v3287_v8  ;;  %v505_v10 = vpack.c.bf16 %v177_v0, %v175_v61  ;;  %v762_v45 = vld [vmem:[%s6070_s1 + $0x418] sm:$0xff] }
  0x1e   :  { %v109_v5 = vld [vmem:[%s6069_s0 + $0x2d0] sm:$0xff]  ;;  %v139_v6 = vld [vmem:[%s6069_s0 + $0x3c0] sm:$0xff]  ;;  %v521_v11 = vpack.c.bf16 %v209_v2, %v207_v1  ;;  %v670_v51 = vld [vmem:[%s6070_s1 + $0x138] sm:$0xff] }
  0x1f   :  { %v141_v7 = vld [vmem:[%s6069_s0 + $0x3d0] sm:$0xff]  ;;  %v103_v12 = vld [vmem:[%s6069_s0 + $0x2a0] sm:$0xff]  ;;  %v471_v14 = vpack.c.bf16 %v109_v5, %v107_v60  ;;  %v658_v52 = vld [vmem:[%s6070_s1 + $0xd8] sm:$0xff] }
  0x20   :  { %3024 = vmatpush.bf16.msra.mxu2 %v427_v54  ;;  %975 = vmatpush.bf16.msra.mxu0 %v427_v54  ;;  %v171_v13 = vld [vmem:[%s6069_s0 + $0x4c0] sm:$0xff]  ;;  %v487_v15 = vpack.c.bf16 %v141_v7, %v139_v6  ;;  %v173_v16 = vld [vmem:[%s6069_s0 + $0x4d0] sm:$0xff] }
  0x21   :  { %3032 = vmatpush.bf16.msra.mxu3 %v443_v58  ;;  %1024 = vmatpush.bf16.msra.mxu1 %v443_v58  ;;  %v203_v17 = vld [vmem:[%s6069_s0 + $0x5c0] sm:$0xff]  ;;  %v205_v18 = vld [vmem:[%s6069_s0 + $0x5d0] sm:$0xff]  ;;  %v503_v22 = vpack.c.bf16 %v173_v16, %v171_v13 }
  0x22   :  { %v105_v19 = vld [vmem:[%s6069_s0 + $0x2b0] sm:$0xff]  ;;  %v135_v20 = vld [vmem:[%s6069_s0 + $0x3a0] sm:$0xff]  ;;  %v519_v23 = vpack.c.bf16 %v205_v18, %v203_v17 }
  0x23   :  { %996 = vmatmul.bf16.vlgmr.msra.gmra.mxu2 %v3274_v3  ;;  %976 = vmatmul.bf16.vlgmr.msra.gmra.mxu0 %v3276_v4  ;;  %v137_v21 = vld [vmem:[%s6069_s0 + $0x3b0] sm:$0xff]  ;;  %v99_v24 = vld [vmem:[%s6069_s0 + $0x280] sm:$0xff]  ;;  %v469_v26 = vpack.c.bf16 %v105_v19, %v103_v12 }
  0x24   :  { %1066 = vmatpush.bf16.msrb.mxu2 %v473_v62  ;;  %1045 = vmatmul.bf16.vlgmr.msra.gmra.mxu3 %v3287_v8  ;;  %v167_v25 = vld [vmem:[%s6069_s0 + $0x4a0] sm:$0xff]  ;;  %v485_v27 = vpack.c.bf16 %v137_v21, %v135_v20  ;;  %v169_v28 = vld [vmem:[%s6069_s0 + $0x4b0] sm:$0xff] }
  0x25   :  { %1115 = vmatpush.bf16.msrb.mxu3 %v489_v63  ;;  %1025 = vmatmul.bf16.vlgmr.msra.gmra.mxu1 %v3289_v9  ;;  %v199_v29 = vld [vmem:[%s6069_s0 + $0x5a0] sm:$0xff]  ;;  %v201_v30 = vld [vmem:[%s6069_s0 + $0x5b0] sm:$0xff]  ;;  %v501_v34 = vpack.c.bf16 %v169_v28, %v167_v25 }
  0x26   :  { %1164 = vmatpush.bf16.msrb.mxu0 %v505_v10  ;;  %1213 = vmatpush.bf16.msrb.mxu1 %v521_v11  ;;  %v101_v31 = vld [vmem:[%s6069_s0 + $0x290] sm:$0xff]  ;;  %v131_v32 = vld [vmem:[%s6069_s0 + $0x380] sm:$0xff]  ;;  %v517_v35 = vpack.c.bf16 %v201_v30, %v199_v29 }
  0x27   :  { %v133_v33 = vld [vmem:[%s6069_s0 + $0x390] sm:$0xff]  ;;  %v95_v36 = vld [vmem:[%s6069_s0 + $0x260] sm:$0xff]  ;;  %v467_v40 = vpack.c.bf16 %v101_v31, %v99_v24 }
  0x28   :  { %1067 = vmatpush.bf16.msrb.mxu2 %v471_v14  ;;  %v163_v37 = vld [vmem:[%s6069_s0 + $0x480] sm:$0xff]  ;;  %v761_v38 = vld [vmem:[%s6070_s1 + $0x410] sm:$0xff]  ;;  %v483_v41 = vpack.c.bf16 %v133_v33, %v131_v32 }
  0x29   :  { %1116 = vmatpush.bf16.msrb.mxu3 %v487_v15  ;;  %v165_v42 = vld [vmem:[%s6069_s0 + $0x490] sm:$0xff]  ;;  %v195_v43 = vld [vmem:[%s6069_s0 + $0x580] sm:$0xff]  ;;  %v3406_v63 = vpack.c.bf16 %v774_v39, %v761_v38 }
  0x2a   :  { %1165 = vmatpush.bf16.msrb.mxu0 %v503_v22  ;;  %1214 = vmatpush.bf16.msrb.mxu1 %v519_v23  ;;  %v197_v44 = vld [vmem:[%s6069_s0 + $0x590] sm:$0xff]  ;;  %v775_v46 = vld [vmem:[%s6070_s1 + $0x480] sm:$0xff]  ;;  %v499_v54 = vpack.c.bf16 %v165_v42, %v163_v37  ;;  %v788_v42 = vld [vmem:[%s6070_s1 + $0x4e8] sm:$0xff] }
  0x2b   :  { %v97_v47 = vld [vmem:[%s6069_s0 + $0x270] sm:$0xff]  ;;  %v127_v48 = vld [vmem:[%s6069_s0 + $0x360] sm:$0xff]  ;;  %v515_v55 = vpack.c.bf16 %v197_v44, %v195_v43  ;;  %v3419_v6 = vpack.c.bf16 %v775_v46, %v762_v45  ;;  %v696_v44 = vld [vmem:[%s6070_s1 + $0x208] sm:$0xff] }
  0x2c   :  { %1068 = vmatpush.bf16.msrb.mxu2 %v469_v26  ;;  %v129_v49 = vld [vmem:[%s6069_s0 + $0x370] sm:$0xff]  ;;  %v671_v53 = vld [vmem:[%s6070_s1 + $0x140] sm:$0xff]  ;;  %v465_v58 = vpack.c.bf16 %v97_v47, %v95_v36  ;;  %v684_v46 = vld [vmem:[%s6070_s1 + $0x1a8] sm:$0xff] }
  0x2d   :  { %1117 = vmatpush.bf16.msrb.mxu3 %v485_v27  ;;  %v657_v50 = vld [vmem:[%s6070_s1 + $0xd0] sm:$0xff]  ;;  %v91_v56 = vld [vmem:[%s6069_s0 + $0x240] sm:$0xff]  ;;  %v481_v59 = vpack.c.bf16 %v129_v49, %v127_v48  ;;  %6146 = vst [vmem:[#allocation6_spill] sm:$0xff] %v3419_v6  ;;  %v3421_v7 = vpack.c.bf16 %v671_v53, %v658_v52 }
  0x2e   :  { %1166 = vmatpush.bf16.msrb.mxu0 %v501_v34  ;;  %1215 = vmatpush.bf16.msrb.mxu1 %v517_v35  ;;  %v159_v57 = vld [vmem:[%s6069_s0 + $0x460] sm:$0xff]  ;;  %v161_v60 = vld [vmem:[%s6069_s0 + $0x470] sm:$0xff]  ;;  %v3408_v0 = vpack.c.bf16 %v670_v51, %v657_v50 }
  0x2f   :  { %v191_v61 = vld [vmem:[%s6069_s0 + $0x560] sm:$0xff]  ;;  %v193_v62 = vld [vmem:[%s6069_s0 + $0x570] sm:$0xff]  ;;  %v497_v10 = vpack.c.bf16 %v161_v60, %v159_v57 }
  0x30   :  { %1069 = vmatpush.bf16.msrb.mxu2 %v467_v40  ;;  %v93_v1 = vld [vmem:[%s6069_s0 + $0x250] sm:$0xff]  ;;  %v123_v2 = vld [vmem:[%s6069_s0 + $0x340] sm:$0xff]  ;;  %v513_v11 = vpack.c.bf16 %v193_v62, %v191_v61 }
  0x31   :  { %1118 = vmatpush.bf16.msrb.mxu3 %v483_v41  ;;  %v125_v5 = vld [vmem:[%s6069_s0 + $0x350] sm:$0xff]  ;;  %v463_v12 = vpack.c.bf16 %v93_v1, %v91_v56  ;;  %v87_v14 = vld [vmem:[%s6069_s0 + $0x220] sm:$0xff]  ;;  %v800_v41 = vld [vmem:[%s6070_s1 + $0x548] sm:$0xff] }
  0x32   :  { %1167 = vmatpush.bf16.msrb.mxu0 %v499_v54  ;;  %1216 = vmatpush.bf16.msrb.mxu1 %v515_v55  ;;  %v479_v13 = vpack.c.bf16 %v125_v5, %v123_v2  ;;  %v89_v15 = vld [vmem:[%s6069_s0 + $0x230] sm:$0xff]  ;;  %v119_v16 = vld [vmem:[%s6069_s0 + $0x320] sm:$0xff] }
  0x33   :  { %1001 = vmatmul.bf16.gmra.mxu2 %v3406_v63  ;;  %981 = vmatmul.bf16.gmra.mxu0 %v3408_v0  ;;  %v121_v17 = vld [vmem:[%s6069_s0 + $0x330] sm:$0xff]  ;;  %v155_v18 = vld [vmem:[%s6069_s0 + $0x440] sm:$0xff]  ;;  %v461_v19 = vpack.c.bf16 %v89_v15, %v87_v14  ;;  %v814_v14 = vld [vmem:[%s6070_s1 + $0x5b8] sm:$0xff] }
  0x34   :  { %1070 = vmatpush.bf16.msrb.mxu2 %v465_v58  ;;  %1050 = vmatmul.bf16.gmra.mxu3 %v3419_v6  ;;  %v477_v20 = vpack.c.bf16 %v121_v17, %v119_v16  ;;  %v157_v21 = vld [vmem:[%s6069_s0 + $0x450] sm:$0xff]  ;;  %v187_v22 = vld [vmem:[%s6069_s0 + $0x540] sm:$0xff]  ;;  %v722_v16 = vld [vmem:[%s6070_s1 + $0x2d8] sm:$0xff] }
  0x35   :  { %1119 = vmatpush.bf16.msrb.mxu3 %v481_v59  ;;  %1030 = vmatmul.bf16.gmra.mxu1 %v3421_v7  ;;  %v189_v23 = vld [vmem:[%s6069_s0 + $0x550] sm:$0xff]  ;;  %v495_v24 = vpack.c.bf16 %v157_v21, %v155_v18  ;;  %v83_v26 = vld [vmem:[%s6069_s0 + $0x200] sm:$0xff]  ;;  %v710_v18 = vld [vmem:[%s6070_s1 + $0x278] sm:$0xff] }
  0x36   :  { %1168 = vmatpush.bf16.msrb.mxu0 %v497_v10  ;;  %1217 = vmatpush.bf16.msrb.mxu1 %v513_v11  ;;  %v511_v25 = vpack.c.bf16 %v189_v23, %v187_v22  ;;  %v85_v27 = vld [vmem:[%s6069_s0 + $0x210] sm:$0xff]  ;;  %v115_v28 = vld [vmem:[%s6069_s0 + $0x300] sm:$0xff] }
  0x37   :  { %v117_v29 = vld [vmem:[%s6069_s0 + $0x310] sm:$0xff]  ;;  %v151_v30 = vld [vmem:[%s6069_s0 + $0x420] sm:$0xff]  ;;  %v459_v35 = vpack.c.bf16 %v85_v27, %v83_v26 }
  0x38   :  { %1071 = vmatpush.bf16.msrb.mxu2 %v463_v12  ;;  %v153_v31 = vld [vmem:[%s6069_s0 + $0x430] sm:$0xff]  ;;  %v183_v33 = vld [vmem:[%s6069_s0 + $0x520] sm:$0xff]  ;;  %v475_v36 = vpack.c.bf16 %v117_v29, %v115_v28 }
  0x39   :  { %1120 = vmatpush.bf16.msrb.mxu3 %v479_v13  ;;  %v493_v32 = vpack.c.bf16 %v153_v31, %v151_v30  ;;  %v185_v34 = vld [vmem:[%s6069_s0 + $0x530] sm:$0xff]  ;;  %v147_v38 = vld [vmem:[%s6069_s0 + $0x400] sm:$0xff]  ;;  %v826_v13 = vld [vmem:[%s6070_s1 + $0x618] sm:$0xff] }
  0x3a   :  { %1169 = vmatpush.bf16.msrb.mxu0 %v495_v24  ;;  %1218 = vmatpush.bf16.msrb.mxu1 %v511_v25  ;;  %v509_v37 = vpack.c.bf16 %v185_v34, %v183_v33  ;;  %v149_v39 = vld [vmem:[%s6069_s0 + $0x410] sm:$0xff]  ;;  %v787_v40 = vld [vmem:[%s6070_s1 + $0x4e0] sm:$0xff] }
  0x3b   :  { %v683_v43 = vld [vmem:[%s6070_s1 + $0x1a0] sm:$0xff]  ;;  %v801_v45 = vld [vmem:[%s6070_s1 + $0x550] sm:$0xff]  ;;  %v491_v48 = vpack.c.bf16 %v149_v39, %v147_v38  ;;  %v3505_v49 = vpack.c.bf16 %v800_v41, %v787_v40  ;;  %v634_v38 = vld [vmem:[%s6070_s1 + $0x18] sm:$0xff] }
  0x3c   :  { %1072 = vmatpush.bf16.msrb.mxu2 %v461_v19  ;;  %v697_v47 = vld [vmem:[%s6070_s1 + $0x210] sm:$0xff]  ;;  %v3507_v50 = vpack.c.bf16 %v696_v44, %v683_v43  ;;  %v3509_v51 = vpack.c.bf16 %v801_v45, %v788_v42  ;;  %v179_v53 = vld [vmem:[%s6069_s0 + $0x500] sm:$0xff]  ;;  %v648_v40 = vld [vmem:[%s6070_s1 + $0x88] sm:$0xff] }
  0x3d   :  { %1121 = vmatpush.bf16.msrb.mxu3 %v477_v20  ;;  %v3511_v52 = vpack.c.bf16 %v697_v47, %v684_v46  ;;  %v181_v54 = vld [vmem:[%s6069_s0 + $0x510] sm:$0xff]  ;;  %v239_v56 = vld [vmem:[%s6069_s0 + $0x6e0] sm:$0xff]  ;;  %v636_v42 = vld [vmem:[%s6070_s1 + $0x28] sm:$0xff] }
  0x3e   :  { %1170 = vmatpush.bf16.msrb.mxu0 %v493_v32  ;;  %1219 = vmatpush.bf16.msrb.mxu1 %v509_v37  ;;  %6147 = vst [vmem:[#allocation7_spill] sm:$0xff] %v3509_v51  ;;  %v507_v55 = vpack.c.bf16 %v181_v54, %v179_v53  ;;  %v241_v57 = vld [vmem:[%s6069_s0 + $0x6f0] sm:$0xff]  ;;  %v271_v58 = vld [vmem:[%s6069_s0 + $0x7e0] sm:$0xff]  ;;  %v646_v37 = vld [vmem:[%s6070_s1 + $0x78] sm:$0xff] }
  0x3f   :  { %v537_v59 = vpack.c.bf16 %v241_v57, %v239_v56  ;;  %v273_v60 = vld [vmem:[%s6069_s0 + $0x7f0] sm:$0xff]  ;;  %v303_v62 = vld [vmem:[%s6069_s0 + $0x8e0] sm:$0xff] }
  0x40   :  { %1073 = vmatpush.bf16.msrb.mxu2 %v459_v35  ;;  %v553_v61 = vpack.c.bf16 %v273_v60, %v271_v58  ;;  %v305_v1 = vld [vmem:[%s6069_s0 + $0x8f0] sm:$0xff]  ;;  %v335_v2 = vld [vmem:[%s6069_s0 + $0x9e0] sm:$0xff] }
  0x41   :  { %1122 = vmatpush.bf16.msrb.mxu3 %v475_v36  ;;  %v569_v5 = vpack.c.bf16 %v305_v1, %v303_v62  ;;  %v337_v10 = vld [vmem:[%s6069_s0 + $0x9f0] sm:$0xff]  ;;  %v827_v17 = vld [vmem:[%s6070_s1 + $0x620] sm:$0xff] }
  0x42   :  { %1171 = vmatpush.bf16.msrb.mxu0 %v491_v48  ;;  %1220 = vmatpush.bf16.msrb.mxu1 %v507_v55  ;;  %v585_v11 = vpack.c.bf16 %v337_v10, %v335_v2  ;;  %v813_v12 = vld [vmem:[%s6070_s1 + $0x5b0] sm:$0xff]  ;;  %v723_v19 = vld [vmem:[%s6070_s1 + $0x2e0] sm:$0xff]  ;;  %v3575_v22 = vpack.c.bf16 %v827_v17, %v814_v14  ;;  %v660_v10 = vld [vmem:[%s6070_s1 + $0xe8] sm:$0xff] }
  0x43   :  { %1006 = vmatmul.bf16.gmra.mxu2 %v3505_v49  ;;  %986 = vmatmul.bf16.gmra.mxu0 %v3507_v50  ;;  %v709_v15 = vld [vmem:[%s6070_s1 + $0x270] sm:$0xff]  ;;  %v3571_v20 = vpack.c.bf16 %v826_v13, %v813_v12  ;;  %v3577_v23 = vpack.c.bf16 %v723_v19, %v710_v18  ;;  %v235_v24 = vld [vmem:[%s6069_s0 + $0x6c0] sm:$0xff]  ;;  %v674_v12 = vld [vmem:[%s6070_s1 + $0x158] sm:$0xff] }
  0x44   :  { %1055 = vmatmul.bf16.gmra.mxu3 %v3509_v51  ;;  %1262 = vmatpush.bf16.msra.mxu2 %v537_v59  ;;  %v3573_v21 = vpack.c.bf16 %v722_v16, %v709_v15  ;;  %6148 = vst [vmem:[#allocation8_spill] sm:$0xff] %v3575_v22  ;;  %v237_v25 = vld [vmem:[%s6069_s0 + $0x6d0] sm:$0xff]  ;;  %v267_v26 = vld [vmem:[%s6069_s0 + $0x7c0] sm:$0xff]  ;;  %v662_v14 = vld [vmem:[%s6070_s1 + $0xf8] sm:$0xff] }
  0x45   :  { %1035 = vmatmul.bf16.gmra.mxu1 %v3511_v52  ;;  %1311 = vmatpush.bf16.msra.mxu3 %v553_v61  ;;  %v535_v27 = vpack.c.bf16 %v237_v25, %v235_v24  ;;  %v269_v28 = vld [vmem:[%s6069_s0 + $0x7d0] sm:$0xff]  ;;  %v299_v30 = vld [vmem:[%s6069_s0 + $0x8c0] sm:$0xff] }
  0x46   :  { %1360 = vmatpush.bf16.msra.mxu0 %v569_v5  ;;  %1409 = vmatpush.bf16.msra.mxu1 %v585_v11  ;;  %v551_v29 = vpack.c.bf16 %v269_v28, %v267_v26  ;;  %v301_v31 = vld [vmem:[%s6069_s0 + $0x8d0] sm:$0xff]  ;;  %v331_v32 = vld [vmem:[%s6069_s0 + $0x9c0] sm:$0xff]  ;;  %v672_v5 = vld [vmem:[%s6070_s1 + $0x148] sm:$0xff] }
  0x47   :  { %v567_v33 = vpack.c.bf16 %v301_v31, %v299_v30  ;;  %v333_v34 = vld [vmem:[%s6069_s0 + $0x9d0] sm:$0xff]  ;;  %v635_v39 = vld [vmem:[%s6070_s1 + $0x20] sm:$0xff] }
  0x48   :  { %1263 = vmatpush.bf16.msra.mxu2 %v535_v27  ;;  %v583_v35 = vpack.c.bf16 %v333_v34, %v331_v32  ;;  %v633_v36 = vld [vmem:[%s6070_s1 + $0x10] sm:$0xff]  ;;  %v647_v41 = vld [vmem:[%s6070_s1 + $0x80] sm:$0xff]  ;;  %v3633_v45 = vpack.c.bf16 %v648_v40, %v635_v39  ;;  %v700_v40 = vld [vmem:[%s6070_s1 + $0x228] sm:$0xff] }
  0x49   :  { %1312 = vmatpush.bf16.msra.mxu3 %v551_v29  ;;  %v649_v43 = vld [vmem:[%s6070_s1 + $0x90] sm:$0xff]  ;;  %v3631_v44 = vpack.c.bf16 %v646_v37, %v633_v36  ;;  %v3635_v46 = vpack.c.bf16 %v647_v41, %v634_v38  ;;  %v231_v48 = vld [vmem:[%s6069_s0 + $0x6a0] sm:$0xff]  ;;  %v698_v37 = vld [vmem:[%s6070_s1 + $0x218] sm:$0xff] }
  0x4a   :  { %1361 = vmatpush.bf16.msra.mxu0 %v567_v33  ;;  %1410 = vmatpush.bf16.msra.mxu1 %v583_v35  ;;  %v3637_v47 = vpack.c.bf16 %v649_v43, %v636_v42  ;;  %v233_v53 = vld [vmem:[%s6069_s0 + $0x6b0] sm:$0xff]  ;;  %v263_v54 = vld [vmem:[%s6069_s0 + $0x7a0] sm:$0xff]  ;;  %v686_v38 = vld [vmem:[%s6070_s1 + $0x1b8] sm:$0xff] }
  0x4b   :  { %v533_v55 = vpack.c.bf16 %v233_v53, %v231_v48  ;;  %v265_v56 = vld [vmem:[%s6069_s0 + $0x7b0] sm:$0xff]  ;;  %v295_v58 = vld [vmem:[%s6069_s0 + $0x8a0] sm:$0xff]  ;;  %v688_v42 = vld [vmem:[%s6070_s1 + $0x1c8] sm:$0xff] }
  0x4c   :  { %6149 = vst [vmem:[#allocation9_spill] sm:$0xff] %v3637_v47  ;;  %v549_v57 = vpack.c.bf16 %v265_v56, %v263_v54  ;;  %v297_v59 = vld [vmem:[%s6069_s0 + $0x8b0] sm:$0xff]  ;;  %v327_v60 = vld [vmem:[%s6069_s0 + $0x9a0] sm:$0xff] }
  0x4d   :  { %1264 = vmatpush.bf16.msra.mxu2 %v533_v55  ;;  %v565_v61 = vpack.c.bf16 %v297_v59, %v295_v58  ;;  %v329_v62 = vld [vmem:[%s6069_s0 + $0x9b0] sm:$0xff]  ;;  %v659_v2 = vld [vmem:[%s6070_s1 + $0xe0] sm:$0xff] }
  0x4e   :  { %1313 = vmatpush.bf16.msra.mxu3 %v549_v57  ;;  %v581_v1 = vpack.c.bf16 %v329_v62, %v327_v60  ;;  %v661_v11 = vld [vmem:[%s6070_s1 + $0xf0] sm:$0xff]  ;;  %v675_v15 = vld [vmem:[%s6070_s1 + $0x160] sm:$0xff]  ;;  %v3691_v16 = vpack.c.bf16 %v672_v5, %v659_v2  ;;  %v724_v5 = vld [vmem:[%s6070_s1 + $0x2e8] sm:$0xff] }
  0x4f   :  { %1362 = vmatpush.bf16.msra.mxu0 %v565_v61  ;;  %v673_v13 = vld [vmem:[%s6070_s1 + $0x150] sm:$0xff]  ;;  %v3693_v17 = vpack.c.bf16 %v674_v12, %v661_v11  ;;  %v3697_v19 = vpack.c.bf16 %v675_v15, %v662_v14  ;;  %v227_v24 = vld [vmem:[%s6069_s0 + $0x680] sm:$0xff]  ;;  %v712_v11 = vld [vmem:[%s6070_s1 + $0x288] sm:$0xff] }
  0x50   :  { %1411 = vmatpush.bf16.msra.mxu1 %v581_v1  ;;  %v3695_v18 = vpack.c.bf16 %v673_v13, %v660_v10  ;;  %v229_v25 = vld [vmem:[%s6069_s0 + $0x690] sm:$0xff]  ;;  %v259_v26 = vld [vmem:[%s6069_s0 + $0x780] sm:$0xff]  ;;  %v726_v13 = vld [vmem:[%s6070_s1 + $0x2f8] sm:$0xff] }
  0x51   :  { %6150 = vst [vmem:[#allocation10_spill] sm:$0xff] %v3697_v19  ;;  %v531_v27 = vpack.c.bf16 %v229_v25, %v227_v24  ;;  %v261_v28 = vld [vmem:[%s6069_s0 + $0x790] sm:$0xff]  ;;  %v291_v30 = vld [vmem:[%s6069_s0 + $0x880] sm:$0xff]  ;;  %v714_v15 = vld [vmem:[%s6070_s1 + $0x298] sm:$0xff] }
  0x52   :  { %v547_v29 = vpack.c.bf16 %v261_v28, %v259_v26  ;;  %v293_v31 = vld [vmem:[%s6069_s0 + $0x890] sm:$0xff]  ;;  %v323_v32 = vld [vmem:[%s6069_s0 + $0x980] sm:$0xff] }
  0x53   :  { %1011 = vmatmul.bf16.gmra.mxu2 %v3571_v20  ;;  %991 = vmatmul.bf16.gmra.mxu0 %v3573_v21  ;;  %v563_v33 = vpack.c.bf16 %v293_v31, %v291_v30  ;;  %v325_v34 = vld [vmem:[%s6069_s0 + $0x990] sm:$0xff]  ;;  %v687_v39 = vld [vmem:[%s6070_s1 + $0x1c0] sm:$0xff] }
  0x54   :  { %1060 = vmatmul.bf16.gmra.mxu3 %v3575_v22  ;;  %1265 = vmatpush.bf16.msra.mxu2 %v531_v27  ;;  %v579_v35 = vpack.c.bf16 %v325_v34, %v323_v32  ;;  %v685_v36 = vld [vmem:[%s6070_s1 + $0x1b0] sm:$0xff]  ;;  %v699_v41 = vld [vmem:[%s6070_s1 + $0x220] sm:$0xff]  ;;  %v3753_v53 = vpack.c.bf16 %v700_v40, %v687_v39 }
  0x55   :  { %1040 = vmatmul.bf16.gmra.mxu1 %v3577_v23  ;;  %1314 = vmatpush.bf16.msra.mxu3 %v547_v29  ;;  %v701_v43 = vld [vmem:[%s6070_s1 + $0x230] sm:$0xff]  ;;  %v3751_v48 = vpack.c.bf16 %v698_v37, %v685_v36  ;;  %v3755_v54 = vpack.c.bf16 %v699_v41, %v686_v38  ;;  %v223_v56 = vld [vmem:[%s6069_s0 + $0x660] sm:$0xff]  ;;  %v750_v41 = vld [vmem:[%s6070_s1 + $0x3b8] sm:$0xff] }
  0x56   :  { %1363 = vmatpush.bf16.msra.mxu0 %v563_v33  ;;  %1412 = vmatpush.bf16.msra.mxu1 %v579_v35  ;;  %v3757_v55 = vpack.c.bf16 %v701_v43, %v688_v42  ;;  %v225_v57 = vld [vmem:[%s6069_s0 + $0x670] sm:$0xff]  ;;  %v255_v58 = vld [vmem:[%s6069_s0 + $0x760] sm:$0xff]  ;;  %v738_v43 = vld [vmem:[%s6070_s1 + $0x358] sm:$0xff] }
  0x57   :  { %v529_v59 = vpack.c.bf16 %v225_v57, %v223_v56  ;;  %v257_v60 = vld [vmem:[%s6069_s0 + $0x770] sm:$0xff]  ;;  %v287_v62 = vld [vmem:[%s6069_s0 + $0x860] sm:$0xff]  ;;  %v752_v57 = vld [vmem:[%s6070_s1 + $0x3c8] sm:$0xff] }
  0x58   :  { %6151 = vst [vmem:[#allocation11_spill] sm:$0xff] %v3757_v55  ;;  %v545_v61 = vpack.c.bf16 %v257_v60, %v255_v58  ;;  %v289_v1 = vld [vmem:[%s6069_s0 + $0x870] sm:$0xff]  ;;  %v711_v2 = vld [vmem:[%s6070_s1 + $0x280] sm:$0xff] }
  0x59   :  { %1266 = vmatpush.bf16.msra.mxu2 %v529_v59  ;;  %v561_v10 = vpack.c.bf16 %v289_v1, %v287_v62  ;;  %v713_v12 = vld [vmem:[%s6070_s1 + $0x290] sm:$0xff]  ;;  %v727_v24 = vld [vmem:[%s6070_s1 + $0x300] sm:$0xff]  ;;  %v3805_v25 = vpack.c.bf16 %v724_v5, %v711_v2  ;;  %v740_v59 = vld [vmem:[%s6070_s1 + $0x368] sm:$0xff] }
  0x5a   :  { %1315 = vmatpush.bf16.msra.mxu3 %v545_v61  ;;  %v725_v14 = vld [vmem:[%s6070_s1 + $0x2f0] sm:$0xff]  ;;  %v3807_v26 = vpack.c.bf16 %v726_v13, %v713_v12  ;;  %v3811_v28 = vpack.c.bf16 %v727_v24, %v714_v15  ;;  %v319_v29 = vld [vmem:[%s6069_s0 + $0x960] sm:$0xff] }
  0x5b   :  { %1364 = vmatpush.bf16.msra.mxu0 %v561_v10  ;;  %v3809_v27 = vpack.c.bf16 %v725_v14, %v712_v11  ;;  %v321_v30 = vld [vmem:[%s6069_s0 + $0x970] sm:$0xff]  ;;  %v219_v32 = vld [vmem:[%s6069_s0 + $0x640] sm:$0xff] }
  0x5c   :  { %6152 = vst [vmem:[#allocation12_spill] sm:$0xff] %v3811_v28  ;;  %v577_v31 = vpack.c.bf16 %v321_v30, %v319_v29  ;;  %v221_v33 = vld [vmem:[%s6069_s0 + $0x650] sm:$0xff]  ;;  %v251_v34 = vld [vmem:[%s6069_s0 + $0x740] sm:$0xff] }
  0x5d   :  { %v527_v35 = vpack.c.bf16 %v221_v33, %v219_v32  ;;  %v253_v36 = vld [vmem:[%s6069_s0 + $0x750] sm:$0xff]  ;;  %v283_v38 = vld [vmem:[%s6069_s0 + $0x840] sm:$0xff] }
  0x5e   :  { %1413 = vmatpush.bf16.msra.mxu1 %v577_v31  ;;  %v543_v37 = vpack.c.bf16 %v253_v36, %v251_v34  ;;  %v285_v39 = vld [vmem:[%s6069_s0 + $0x850] sm:$0xff]  ;;  %v739_v56 = vld [vmem:[%s6070_s1 + $0x360] sm:$0xff] }
  0x5f   :  { %1267 = vmatpush.bf16.msra.mxu2 %v527_v35  ;;  %v737_v40 = vld [vmem:[%s6070_s1 + $0x350] sm:$0xff]  ;;  %v559_v42 = vpack.c.bf16 %v285_v39, %v283_v38  ;;  %v751_v58 = vld [vmem:[%s6070_s1 + $0x3c0] sm:$0xff]  ;;  %v3867_v62 = vpack.c.bf16 %v752_v57, %v739_v56  ;;  %v764_v56 = vld [vmem:[%s6070_s1 + $0x428] sm:$0xff] }
  0x60   :  { %1316 = vmatpush.bf16.msra.mxu3 %v543_v37  ;;  %v753_v60 = vld [vmem:[%s6070_s1 + $0x3d0] sm:$0xff]  ;;  %v3865_v61 = vpack.c.bf16 %v750_v41, %v737_v40  ;;  %v3869_v2 = vpack.c.bf16 %v751_v58, %v738_v43  ;;  %v315_v10 = vld [vmem:[%s6069_s0 + $0x940] sm:$0xff]  ;;  %v778_v58 = vld [vmem:[%s6070_s1 + $0x498] sm:$0xff] }
  0x61   :  { %1365 = vmatpush.bf16.msra.mxu0 %v559_v42  ;;  %6154 = vst [vmem:[#allocation14_spill] sm:$0xff] %v3867_v62  ;;  %v3871_v5 = vpack.c.bf16 %v753_v60, %v740_v59  ;;  %v317_v11 = vld [vmem:[%s6069_s0 + $0x950] sm:$0xff]  ;;  %v215_v15 = vld [vmem:[%s6069_s0 + $0x620] sm:$0xff]  ;;  %v776_v42 = vld [vmem:[%s6070_s1 + $0x488] sm:$0xff] }
  0x62   :  { %6153 = vst [vmem:[#allocation13_spill] sm:$0xff] %v3865_v61  ;;  %v575_v13 = vpack.c.bf16 %v317_v11, %v315_v10  ;;  %v217_v24 = vld [vmem:[%s6069_s0 + $0x630] sm:$0xff]  ;;  %v247_v29 = vld [vmem:[%s6069_s0 + $0x720] sm:$0xff]  ;;  %v766_v60 = vld [vmem:[%s6070_s1 + $0x438] sm:$0xff] }
  0x63   :  { %1074 = vmatmul.bf16.vlgmr.msrb.gmra.mxu2 %v3631_v44  ;;  %1172 = vmatmul.bf16.vlgmr.msrb.gmra.mxu0 %v3633_v45  ;;  %6155 = vst [vmem:[#allocation15_spill] sm:$0xff] %v3869_v2  ;;  %v525_v30 = vpack.c.bf16 %v217_v24, %v215_v15  ;;  %v249_v31 = vld [vmem:[%s6069_s0 + $0x730] sm:$0xff]  ;;  %v279_v39 = vld [vmem:[%s6069_s0 + $0x820] sm:$0xff] }
  0x64   :  { %1123 = vmatmul.bf16.vlgmr.msrb.gmra.mxu3 %v3635_v46  ;;  %6156 = vst [vmem:[#allocation16_spill] sm:$0xff] %v3871_v5  ;;  %1414 = vmatpush.bf16.msra.mxu1 %v575_v13  ;;  %v541_v33 = vpack.c.bf16 %v249_v31, %v247_v29  ;;  %v281_v40 = vld [vmem:[%s6069_s0 + $0x830] sm:$0xff]  ;;  %v763_v41 = vld [vmem:[%s6070_s1 + $0x420] sm:$0xff] }
  0x65   :  { %1221 = vmatmul.bf16.vlgmr.msrb.gmra.mxu1 %v3637_v47  ;;  %1268 = vmatpush.bf16.msra.mxu2 %v525_v30  ;;  %v557_v43 = vpack.c.bf16 %v281_v40, %v279_v39  ;;  %v765_v57 = vld [vmem:[%s6070_s1 + $0x430] sm:$0xff]  ;;  %v311_v31 = vld [vmem:[%s6069_s0 + $0x920] sm:$0xff] }
  0x66   :  { %1317 = vmatpush.bf16.msra.mxu3 %v541_v33  ;;  %v777_v59 = vld [vmem:[%s6070_s1 + $0x490] sm:$0xff]  ;;  %v3933_v13 = vpack.c.bf16 %v778_v58, %v765_v57  ;;  %v243_v40 = vld [vmem:[%s6069_s0 + $0x700] sm:$0xff] }
  0x67   :  { %1366 = vmatpush.bf16.msra.mxu0 %v557_v43  ;;  %v3937_v29 = vpack.c.bf16 %v777_v59, %v764_v56  ;;  %v213_v39 = vld [vmem:[%s6069_s0 + $0x610] sm:$0xff] }
  0x68   :  { %6158 = vst [vmem:[#allocation18_spill] sm:$0xff] %v3933_v13 }
  0x69   :  { %6159 = vst [vmem:[#allocation19_spill] sm:$0xff] %v3937_v29 }
  0x73   :  { %1079 = vmatmul.bf16.gmra.mxu2 %v3691_v16  ;;  %1177 = vmatmul.bf16.gmra.mxu0 %v3693_v17 }
  0x74   :  { %1128 = vmatmul.bf16.gmra.mxu3 %v3695_v18 }
  0x75   :  { %1226 = vmatmul.bf16.gmra.mxu1 %v3697_v19 }
  0x83   :  { %1084 = vmatmul.bf16.gmra.mxu2 %v3751_v48  ;;  %1182 = vmatmul.bf16.gmra.mxu0 %v3753_v53 }
  0x84   :  { %1133 = vmatmul.bf16.gmra.mxu3 %v3755_v54 }
  0x85   :  { %1231 = vmatmul.bf16.gmra.mxu1 %v3757_v55 }
  0x93   :  { %1089 = vmatmul.bf16.gmra.mxu2 %v3805_v25  ;;  %1187 = vmatmul.bf16.gmra.mxu0 %v3807_v26 }
  0x94   :  { %1138 = vmatmul.bf16.gmra.mxu3 %v3809_v27 }
  0x95   :  { %1236 = vmatmul.bf16.gmra.mxu1 %v3811_v28 }
  0xa0   :  { %v977_v1 = vpop.f32.mrf.mxu0 }
  0xa2   :  { %v1026_v12 = vpop.f32.mrf.mxu1 }
  0xa3   :  { %v3879_v14 = vadd.f32 %v1026_v12, %v977_v1  ;;  %1094 = vmatmul.bf16.gmra.mxu2 %v3865_v61  ;;  %1192 = vmatmul.bf16.gmra.mxu0 %v3867_v62  ;;  %v779_v1 = vld [vmem:[%s6070_s1 + $0x4a0] sm:$0xff]  ;;  %v3931_v12 = vpack.c.bf16 %v776_v42, %v763_v41  ;;  %v245_v42 = vld [vmem:[%s6069_s0 + $0x710] sm:$0xff] }
  0xa4   :  { %1143 = vmatmul.bf16.gmra.mxu3 %v3869_v2  ;;  %v3939_v30 = vpack.c.bf16 %v779_v1, %v766_v60  ;;  %v539_v56 = vpack.c.bf16 %v245_v42, %v243_v40  ;;  %v792_v40 = vld [vmem:[%s6070_s1 + $0x508] sm:$0xff] }
  0xa5   :  { %1241 = vmatmul.bf16.gmra.mxu1 %v3871_v5  ;;  %6157 = vst [vmem:[#allocation17_spill] sm:$0xff] %v3931_v12 }
  0xa6   :  { %v997_v32 = vpop.f32.mrf.mxu2  ;;  %6160 = vst [vmem:[#allocation20_spill] sm:$0xff] %v3939_v30  ;;  %1318 = vmatpush.bf16.msra.mxu3 %v539_v56 }
  0xa7   :  { %v1046_v34 = vpop.f32.mrf.mxu3 }
  0xa8   :  { %v3897_v35 = vadd.f32 %v1046_v34, %v997_v32  ;;  %v979_v36 = vpop.f32.mrf.mxu0  ;;  %v313_v32 = vld [vmem:[%s6069_s0 + $0x930] sm:$0xff] }
  0xa9   :  { %v573_v34 = vpack.c.bf16 %v313_v32, %v311_v31  ;;  %v802_v31 = vld [vmem:[%s6070_s1 + $0x558] sm:$0xff] }
  0xaa   :  { %v1028_v37 = vpop.f32.mrf.mxu1 }
  0xab   :  { %v3899_v38 = vadd.f32 %v1028_v37, %v979_v36  ;;  %v211_v37 = vld [vmem:[%s6069_s0 + $0x600] sm:$0xff]  ;;  %1415 = vmatpush.bf16.msra.mxu1 %v573_v34 }
  0xac   :  { %v523_v41 = vpack.c.bf16 %v213_v39, %v211_v37  ;;  %v791_v34 = vld [vmem:[%s6070_s1 + $0x500] sm:$0xff]  ;;  %v804_v37 = vld [vmem:[%s6070_s1 + $0x568] sm:$0xff] }
  0xad   :  { %v803_v39 = vld [vmem:[%s6070_s1 + $0x560] sm:$0xff] }
  0xae   :  { %v999_v10 = vpop.f32.mrf.mxu2  ;;  %1269 = vmatpush.bf16.msra.mxu2 %v523_v41  ;;  %v805_v41 = vld [vmem:[%s6070_s1 + $0x570] sm:$0xff] }
  0xaf   :  { %v1048_v11 = vpop.f32.mrf.mxu3 }
  0xb0   :  { %v3935_v15 = vadd.f32 %v1048_v11, %v999_v10  ;;  %v982_v24 = vpop.f32.mrf.mxu0  ;;  %v275_v10 = vld [vmem:[%s6069_s0 + $0x800] sm:$0xff]  ;;  %v277_v11 = vld [vmem:[%s6069_s0 + $0x810] sm:$0xff] }
  0xb1   :  { %v555_v32 = vpack.c.bf16 %v277_v11, %v275_v10  ;;  %v4007_v11 = vpack.c.bf16 %v805_v41, %v792_v40 }
  0xb2   :  { %v1031_v33 = vpop.f32.mrf.mxu1 }
  0xb3   :  { %v3947_v36 = vadd.f32 %v1031_v33, %v982_v24  ;;  %1099 = vmatmul.bf16.gmra.mxu2 %v3931_v12  ;;  %1197 = vmatmul.bf16.gmra.mxu0 %v3933_v13  ;;  %v789_v24 = vld [vmem:[%s6070_s1 + $0x4f0] sm:$0xff]  ;;  %v790_v33 = vld [vmem:[%s6070_s1 + $0x4f8] sm:$0xff]  ;;  %6164 = vst [vmem:[#allocation24_spill] sm:$0xff] %v4007_v11  ;;  %v44_v13 = vld [vmem:[%s6069_s0 + $0xc8] sm:$0xff] }
  0xb4   :  { %1148 = vmatmul.bf16.gmra.mxu3 %v3937_v29  ;;  %1367 = vmatpush.bf16.msra.mxu0 %v555_v32  ;;  %v3999_v56 = vpack.c.bf16 %v802_v31, %v789_v24  ;;  %v4005_v10 = vpack.c.bf16 %v803_v39, %v790_v33  ;;  %v309_v32 = vld [vmem:[%s6069_s0 + $0x910] sm:$0xff]  ;;  %v367_v33 = vld [vmem:[%s6069_s0 + $0xae0] sm:$0xff] }
  0xb5   :  { %1246 = vmatmul.bf16.gmra.mxu1 %v3939_v30  ;;  %v307_v30 = vld [vmem:[%s6069_s0 + $0x900] sm:$0xff] }
  0xb6   :  { %v1002_v43 = vpop.f32.mrf.mxu2  ;;  %6161 = vst [vmem:[#allocation21_spill] sm:$0xff] %v3999_v56  ;;  %v571_v24 = vpack.c.bf16 %v309_v32, %v307_v30 }
  0xb7   :  { %v1051_v57 = vpop.f32.mrf.mxu3  ;;  %6163 = vst [vmem:[#allocation23_spill] sm:$0xff] %v4005_v10 }
  0xb8   :  { %v3965_v58 = vadd.f32 %v1051_v57, %v1002_v43  ;;  %v984_v59 = vpop.f32.mrf.mxu0  ;;  %v4001_v57 = vpack.c.bf16 %v804_v37, %v791_v34  ;;  %v369_v34 = vld [vmem:[%s6069_s0 + $0xaf0] sm:$0xff]  ;;  %1416 = vmatpush.bf16.msra.mxu1 %v571_v24  ;;  %v815_v24 = vld [vmem:[%s6070_s1 + $0x5c0] sm:$0xff] }
  0xb9   :  { %v601_v30 = vpack.c.bf16 %v369_v34, %v367_v33  ;;  %v401_v37 = vld [vmem:[%s6069_s0 + $0xbf0] sm:$0xff]  ;;  %v828_v33 = vld [vmem:[%s6070_s1 + $0x628] sm:$0xff]  ;;  %v423_v34 = vld [vmem:[%s6069_s0 + $0xca0] sm:$0xff] }
  0xba   :  { %v1033_v60 = vpop.f32.mrf.mxu1  ;;  %6162 = vst [vmem:[#allocation22_spill] sm:$0xff] %v4001_v57  ;;  %v4067_v55 = vpack.c.bf16 %v828_v33, %v815_v24  ;;  %v48_v24 = vld [vmem:[%s6069_s0 + $0xe8] sm:$0xff]  ;;  %v365_v33 = vld [vmem:[%s6069_s0 + $0xad0] sm:$0xff] }
  0xbb   :  { %v3967_v1 = vadd.f32 %v1033_v60, %v984_v59  ;;  %1458 = vmatpush.bf16.msrb.mxu2 %v601_v30  ;;  %v816_v30 = vld [vmem:[%s6070_s1 + $0x5c8] sm:$0xff] }
  0xbc   :  { %6165 = vst [vmem:[#allocation25_spill] sm:$0xff] %v4067_v55 }
  0xbe   :  { %v1004_v42 = vpop.f32.mrf.mxu2 }
  0xbf   :  { %v1053_v43 = vpop.f32.mrf.mxu3 }
  0xc0   :  { %v4003_v59 = vadd.f32 %v1053_v43, %v1004_v42  ;;  %v987_v60 = vpop.f32.mrf.mxu0 }
  0xc2   :  { %v1036_v5 = vpop.f32.mrf.mxu1 }
  0xc3   :  { %v4015_v31 = vadd.f32 %v1036_v5, %v987_v60  ;;  %1104 = vmatmul.bf16.gmra.mxu2 %v3999_v56  ;;  %1202 = vmatmul.bf16.gmra.mxu0 %v4001_v57  ;;  %v399_v5 = vld [vmem:[%s6069_s0 + $0xbe0] sm:$0xff] }
  0xc4   :  { %1153 = vmatmul.bf16.gmra.mxu3 %v4005_v10  ;;  %v617_v40 = vpack.c.bf16 %v401_v37, %v399_v5  ;;  %v425_v5 = vld [vmem:[%s6069_s0 + $0xcb0] sm:$0xff] }
  0xc5   :  { %1251 = vmatmul.bf16.gmra.mxu1 %v4007_v11  ;;  %v817_v37 = vld [vmem:[%s6070_s1 + $0x5d0] sm:$0xff] }
  0xc6   :  { %v1007_v39 = vpop.f32.mrf.mxu2  ;;  %1507 = vmatpush.bf16.msrb.mxu3 %v617_v40  ;;  %v629_v40 = vpack.c.bf16 %v425_v5, %v423_v34 }
  0xc7   :  { %v1056_v41 = vpop.f32.mrf.mxu3 }
  0xc8   :  { %v4033_v42 = vadd.f32 %v1056_v41, %v1007_v39  ;;  %v989_v43 = vpop.f32.mrf.mxu0  ;;  %v830_v39 = vld [vmem:[%s6070_s1 + $0x638] sm:$0xff]  ;;  %v829_v41 = vld [vmem:[%s6070_s1 + $0x630] sm:$0xff]  ;;  %1558 = vmatpush.bf16.msrb.mxu0 %v629_v40 }
  0xc9   :  { %v4069_v19 = vpack.c.bf16 %v830_v39, %v817_v37  ;;  %v4073_v47 = vpack.c.bf16 %v829_v41, %v816_v30  ;;  %v395_v37 = vld [vmem:[%s6069_s0 + $0xbc0] sm:$0xff]  ;;  %v397_v39 = vld [vmem:[%s6069_s0 + $0xbd0] sm:$0xff] }
  0xca   :  { %v1038_v60 = vpop.f32.mrf.mxu1  ;;  %v615_v41 = vpack.c.bf16 %v397_v39, %v395_v37  ;;  %v652_v37 = vld [vmem:[%s6070_s1 + $0xa8] sm:$0xff]  ;;  %v651_v39 = vld [vmem:[%s6070_s1 + $0xa0] sm:$0xff] }
  0xcb   :  { %v4035_v32 = vadd.f32 %v1038_v60, %v989_v43  ;;  %v818_v43 = vld [vmem:[%s6070_s1 + $0x5d8] sm:$0xff]  ;;  %v831_v60 = vld [vmem:[%s6070_s1 + $0x640] sm:$0xff]  ;;  %6166 = vst [vmem:[#allocation26_spill] sm:$0xff] %v4069_v19 }
  0xcc   :  { %6167 = vst [vmem:[#allocation27_spill] sm:$0xff] %v4073_v47  ;;  %v4075_v22 = vpack.c.bf16 %v831_v60, %v818_v43  ;;  %1508 = vmatpush.bf16.msrb.mxu3 %v615_v41  ;;  %v653_v41 = vld [vmem:[%s6070_s1 + $0xb0] sm:$0xff] }
  0xce   :  { %v1009_v11 = vpop.f32.mrf.mxu2  ;;  %6168 = vst [vmem:[#allocation28_spill] sm:$0xff] %v4075_v22 }
  0xcf   :  { %v1058_v28 = vpop.f32.mrf.mxu3 }
  0xd0   :  { %v4071_v34 = vadd.f32 %v1058_v28, %v1009_v11  ;;  %v992_v5 = vpop.f32.mrf.mxu0  ;;  %v50_v28 = vld [vmem:[%s6069_s0 + $0xf8] sm:$0xff] }
  0xd1   :  { %v442_v11 = vpack.c.bf16 %v50_v28, %v48_v24 }
  0xd2   :  { %v1041_v57 = vpop.f32.mrf.mxu1 }
  0xd3   :  { %v4077_v56 = vadd.f32 %v1041_v57, %v992_v5  ;;  %1109 = vmatmul.bf16.gmra.mxu2 %v4067_v55  ;;  %1207 = vmatmul.bf16.gmra.mxu0 %v4069_v19  ;;  %v363_v57 = vld [vmem:[%s6069_s0 + $0xac0] sm:$0xff] }
  0xd4   :  { %1158 = vmatmul.bf16.gmra.mxu3 %v4073_v47  ;;  %v599_v30 = vpack.c.bf16 %v365_v33, %v363_v57  ;;  %1605 = vmatpush.bf16.msrb.mxu1 %v442_v11  ;;  %v637_v57 = vld [vmem:[%s6070_s1 + $0x30] sm:$0xff]  ;;  %v650_v33 = vld [vmem:[%s6070_s1 + $0x98] sm:$0xff] }
  0xd5   :  { %1256 = vmatmul.bf16.gmra.mxu1 %v4075_v22  ;;  %v638_v11 = vld [vmem:[%s6070_s1 + $0x38] sm:$0xff] }
  0xd6   :  { %v1012_v40 = vpop.f32.mrf.mxu2  ;;  %1459 = vmatpush.bf16.msrb.mxu2 %v599_v30  ;;  %v639_v30 = vld [vmem:[%s6070_s1 + $0x40] sm:$0xff]  ;;  %v4135_v47 = vpack.c.bf16 %v651_v39, %v638_v11 }
  0xd7   :  { %v1061_v43 = vpop.f32.mrf.mxu3  ;;  %v4131_v22 = vpack.c.bf16 %v652_v37, %v639_v30  ;;  %v359_v11 = vld [vmem:[%s6069_s0 + $0xaa0] sm:$0xff]  ;;  %v361_v30 = vld [vmem:[%s6069_s0 + $0xab0] sm:$0xff] }
  0xd8   :  { %v4101_v60 = vadd.f32 %v1061_v43, %v1012_v40  ;;  %v994_v5 = vpop.f32.mrf.mxu0  ;;  %v640_v40 = vld [vmem:[%s6070_s1 + $0x48] sm:$0xff]  ;;  %6171 = vst [vmem:[#allocation31_spill] sm:$0xff] %v4135_v47  ;;  %v419_v37 = vld [vmem:[%s6069_s0 + $0xc80] sm:$0xff]  ;;  %v597_v39 = vpack.c.bf16 %v361_v30, %v359_v11 }
  0xd9   :  { %6170 = vst [vmem:[#allocation30_spill] sm:$0xff] %v4131_v22  ;;  %v4137_v10 = vpack.c.bf16 %v653_v41, %v640_v40  ;;  %v421_v40 = vld [vmem:[%s6069_s0 + $0xc90] sm:$0xff] }
  0xda   :  { %v1043_v24 = vpop.f32.mrf.mxu1  ;;  %1460 = vmatpush.bf16.msrb.mxu2 %v597_v39  ;;  %v665_v39 = vld [vmem:[%s6070_s1 + $0x110] sm:$0xff] }
  0xdb   :  { %v4103_v28 = vadd.f32 %v1043_v24, %v994_v5  ;;  %v4129_v24 = vpack.c.bf16 %v650_v33, %v637_v57  ;;  %6172 = vst [vmem:[#allocation32_spill] sm:$0xff] %v4137_v10  ;;  %v46_v57 = vld [vmem:[%s6069_s0 + $0xd8] sm:$0xff] }
  0xdc   :  { %v440_v33 = vpack.c.bf16 %v46_v57, %v44_v13  ;;  %v391_v13 = vld [vmem:[%s6069_s0 + $0xba0] sm:$0xff] }
  0xdd   :  { %6169 = vst [vmem:[#allocation29_spill] sm:$0xff] %v4129_v24 }
  0xde   :  { %v1014_v43 = vpop.f32.mrf.mxu2  ;;  %1606 = vmatpush.bf16.msrb.mxu1 %v440_v33  ;;  %v663_v33 = vld [vmem:[%s6070_s1 + $0x100] sm:$0xff] }
  0xdf   :  { %v1063_v5 = vpop.f32.mrf.mxu3 }
  0xe0   :  { %v4133_v19 = vadd.f32 %v1063_v5, %v1014_v43  ;;  %v1173_v55 = vpop.f32.mrf.mxu0  ;;  %v627_v43 = vpack.c.bf16 %v421_v40, %v419_v37  ;;  %v393_v5 = vld [vmem:[%s6069_s0 + $0xbb0] sm:$0xff]  ;;  %v676_v37 = vld [vmem:[%s6070_s1 + $0x168] sm:$0xff]  ;;  %v679_v40 = vld [vmem:[%s6070_s1 + $0x180] sm:$0xff] }
  0xe1   :  { %v613_v11 = vpack.c.bf16 %v393_v5, %v391_v13 }
  0xe2   :  { %v1222_v51 = vpop.f32.mrf.mxu1  ;;  %1559 = vmatpush.bf16.msrb.mxu0 %v627_v43 }
  0xe3   :  { %1270 = vmatmul.bf16.vlgmr.msra.gmra.mxu2 %v4129_v24  ;;  %1368 = vmatmul.bf16.vlgmr.msra.gmra.mxu0 %v4131_v22 }
  0xe4   :  { %1319 = vmatmul.bf16.vlgmr.msra.gmra.mxu3 %v4135_v47 }
  0xe5   :  { %1417 = vmatmul.bf16.vlgmr.msra.gmra.mxu1 %v4137_v10  ;;  %1509 = vmatpush.bf16.msrb.mxu3 %v613_v11 }
  0xe6   :  { %v1075_v41 = vpop.f32.mrf.mxu2 }
  0xe7   :  { %v1076_v57 = vadd.f32 %v1075_v41, %v3879_v14  ;;  %v1124_v10 = vpop.f32.mrf.mxu3  ;;  %v664_v14 = vld [vmem:[%s6070_s1 + $0x108] sm:$0xff] }
  0xe8   :  { %v1175_v30 = vpop.f32.mrf.mxu0 }
  0xe9   :  { %v1125_v22 = vadd.f32 %v1124_v10, %v1076_v57  ;;  %v666_v10 = vld [vmem:[%s6070_s1 + $0x118] sm:$0xff]  ;;  %v4195_v57 = vpack.c.bf16 %v676_v37, %v663_v33  ;;  %v387_v37 = vld [vmem:[%s6069_s0 + $0xb80] sm:$0xff] }
  0xea   :  { %v1224_v24 = vpop.f32.mrf.mxu1  ;;  %v4201_v6 = vpack.c.bf16 %v679_v40, %v666_v10 }
  0xeb   :  { %v1174_v47 = vadd.f32 %v1173_v55, %v1125_v22  ;;  %v678_v22 = vld [vmem:[%s6070_s1 + $0x178] sm:$0xff]  ;;  %v677_v55 = vld [vmem:[%s6070_s1 + $0x170] sm:$0xff]  ;;  %6173 = vst [vmem:[#allocation33_spill] sm:$0xff] %v4195_v57 }
  0xec   :  { %v4197_v11 = vpack.c.bf16 %v678_v22, %v665_v39  ;;  %v4199_v29 = vpack.c.bf16 %v677_v55, %v664_v14  ;;  %6176 = vst [vmem:[#allocation36_spill] sm:$0xff] %v4201_v6  ;;  %v389_v14 = vld [vmem:[%s6069_s0 + $0xb90] sm:$0xff] }
  0xed   :  { %v4192_v13 = vadd.f32 %v1222_v51, %v1174_v47  ;;  %v40_v51 = vld [vmem:[%s6069_s0 + $0xa8] sm:$0xff]  ;;  %v42_v47 = vld [vmem:[%s6069_s0 + $0xb8] sm:$0xff]  ;;  %v611_v55 = vpack.c.bf16 %v389_v14, %v387_v37  ;;  %v705_v14 = vld [vmem:[%s6070_s1 + $0x250] sm:$0xff] }
  0xee   :  { %v1077_v41 = vpop.f32.mrf.mxu2  ;;  %6174 = vst [vmem:[#allocation34_spill] sm:$0xff] %v4197_v11  ;;  %v692_v37 = vld [vmem:[%s6070_s1 + $0x1e8] sm:$0xff] }
  0xef   :  { %v1078_v43 = vadd.f32 %v1077_v41, %v3899_v38  ;;  %v1126_v5 = vpop.f32.mrf.mxu3  ;;  %6175 = vst [vmem:[#allocation35_spill] sm:$0xff] %v4199_v29  ;;  %v438_v38 = vpack.c.bf16 %v42_v47, %v40_v51  ;;  %1510 = vmatpush.bf16.msrb.mxu3 %v611_v55  ;;  %v689_v51 = vld [vmem:[%s6070_s1 + $0x1d0] sm:$0xff] }
  0xf0   :  { %v1178_v12 = vpop.f32.mrf.mxu0 }
  0xf1   :  { %v1127_v62 = vadd.f32 %v1126_v5, %v1078_v43  ;;  %1607 = vmatpush.bf16.msrb.mxu1 %v438_v38  ;;  %v690_v38 = vld [vmem:[%s6070_s1 + $0x1d8] sm:$0xff] }
  0xf2   :  { %v1227_v61 = vpop.f32.mrf.mxu1 }
  0xf3   :  { %v1176_v2 = vadd.f32 %v1175_v30, %v1127_v62  ;;  %1275 = vmatmul.bf16.gmra.mxu2 %v4195_v57  ;;  %1373 = vmatmul.bf16.gmra.mxu0 %v4197_v11  ;;  %v355_v62 = vld [vmem:[%s6069_s0 + $0xa80] sm:$0xff]  ;;  %v357_v30 = vld [vmem:[%s6069_s0 + $0xa90] sm:$0xff]  ;;  %v4267_v11 = vpack.c.bf16 %v705_v14, %v692_v37 }
  0xf4   :  { %1324 = vmatmul.bf16.gmra.mxu3 %v4199_v29  ;;  %v595_v33 = vpack.c.bf16 %v357_v30, %v355_v62  ;;  %v704_v62 = vld [vmem:[%s6070_s1 + $0x248] sm:$0xff] }
  0xf5   :  { %1422 = vmatmul.bf16.gmra.mxu1 %v4201_v6  ;;  %v4225_v39 = vadd.f32 %v1224_v24, %v1176_v2  ;;  %v702_v2 = vld [vmem:[%s6070_s1 + $0x238] sm:$0xff]  ;;  %v415_v24 = vld [vmem:[%s6069_s0 + $0xc60] sm:$0xff]  ;;  %6180 = vst [vmem:[#allocation40_spill] sm:$0xff] %v4267_v11 }
  0xf6   :  { %v1080_v22 = vpop.f32.mrf.mxu2  ;;  %1461 = vmatpush.bf16.msrb.mxu2 %v595_v33  ;;  %v703_v33 = vld [vmem:[%s6070_s1 + $0x240] sm:$0xff] }
  0xf7   :  { %v1081_v10 = vadd.f32 %v1080_v22, %v3947_v36  ;;  %v1129_v40 = vpop.f32.mrf.mxu3  ;;  %v417_v36 = vld [vmem:[%s6069_s0 + $0xc70] sm:$0xff]  ;;  %v4265_v6 = vpack.c.bf16 %v703_v33, %v690_v38 }
  0xf8   :  { %v1180_v41 = vpop.f32.mrf.mxu0  ;;  %v625_v30 = vpack.c.bf16 %v417_v36, %v415_v24  ;;  %v385_v38 = vld [vmem:[%s6069_s0 + $0xb70] sm:$0xff] }
  0xf9   :  { %v1130_v43 = vadd.f32 %v1129_v40, %v1081_v10  ;;  %6179 = vst [vmem:[#allocation39_spill] sm:$0xff] %v4265_v6 }
  0xfa   :  { %v1229_v5 = vpop.f32.mrf.mxu1  ;;  %1560 = vmatpush.bf16.msrb.mxu0 %v625_v30 }
  0xfb   :  { %v1179_v47 = vadd.f32 %v1178_v12, %v1130_v43  ;;  %v691_v12 = vld [vmem:[%s6070_s1 + $0x1e0] sm:$0xff]  ;;  %v4261_v43 = vpack.c.bf16 %v702_v2, %v689_v51 }
  0xfc   :  { %v4263_v24 = vpack.c.bf16 %v704_v62, %v691_v12  ;;  %v383_v2 = vld [vmem:[%s6069_s0 + $0xb60] sm:$0xff] }
  0xfd   :  { %v4258_v22 = vadd.f32 %v1227_v61, %v1179_v47  ;;  %6177 = vst [vmem:[#allocation37_spill] sm:$0xff] %v4261_v43  ;;  %v36_v61 = vld [vmem:[%s6069_s0 + $0x88] sm:$0xff]  ;;  %v609_v30 = vpack.c.bf16 %v385_v38, %v383_v2  ;;  %v731_v2 = vld [vmem:[%s6070_s1 + $0x320] sm:$0xff] }
  0xfe   :  { %v1082_v55 = vpop.f32.mrf.mxu2  ;;  %6178 = vst [vmem:[#allocation38_spill] sm:$0xff] %v4263_v24 }
  0xff   :  { %v1083_v10 = vadd.f32 %v1082_v55, %v3967_v1  ;;  %v1131_v40 = vpop.f32.mrf.mxu3  ;;  %v38_v1 = vld [vmem:[%s6069_s0 + $0x98] sm:$0xff]  ;;  %1511 = vmatpush.bf16.msrb.mxu3 %v609_v30 }
 0x100   :  { %v1183_v36 = vpop.f32.mrf.mxu0  ;;  %v436_v51 = vpack.c.bf16 %v38_v1, %v36_v61  ;;  %v716_v1 = vld [vmem:[%s6070_s1 + $0x2a8] sm:$0xff] }
 0x101   :  { %v1132_v57 = vadd.f32 %v1131_v40, %v1083_v10  ;;  %v715_v40 = vld [vmem:[%s6070_s1 + $0x2a0] sm:$0xff] }
 0x102   :  { %v1232_v29 = vpop.f32.mrf.mxu1  ;;  %1608 = vmatpush.bf16.msrb.mxu1 %v436_v51  ;;  %v730_v51 = vld [vmem:[%s6070_s1 + $0x318] sm:$0xff] }
 0x103   :  { %v1181_v8 = vadd.f32 %v1180_v41, %v1132_v57  ;;  %1280 = vmatmul.bf16.gmra.mxu2 %v4261_v43  ;;  %1378 = vmatmul.bf16.gmra.mxu0 %v4263_v24  ;;  %v351_v57 = vld [vmem:[%s6069_s0 + $0xa60] sm:$0xff]  ;;  %v353_v41 = vld [vmem:[%s6069_s0 + $0xa70] sm:$0xff] }
 0x104   :  { %1329 = vmatmul.bf16.gmra.mxu3 %v4265_v6  ;;  %v593_v47 = vpack.c.bf16 %v353_v41, %v351_v57  ;;  %v729_v41 = vld [vmem:[%s6070_s1 + $0x310] sm:$0xff] }
 0x105   :  { %1427 = vmatmul.bf16.gmra.mxu1 %v4267_v11  ;;  %v4291_v12 = vadd.f32 %v1229_v5, %v1181_v8  ;;  %v728_v8 = vld [vmem:[%s6070_s1 + $0x308] sm:$0xff]  ;;  %v411_v5 = vld [vmem:[%s6069_s0 + $0xc40] sm:$0xff] }
 0x106   :  { %v1085_v62 = vpop.f32.mrf.mxu2  ;;  %1462 = vmatpush.bf16.msrb.mxu2 %v593_v47  ;;  %v718_v47 = vld [vmem:[%s6070_s1 + $0x2b8] sm:$0xff] }
 0x107   :  { %v1086_v33 = vadd.f32 %v1085_v62, %v4015_v31  ;;  %v1134_v37 = vpop.f32.mrf.mxu3  ;;  %v413_v31 = vld [vmem:[%s6069_s0 + $0xc50] sm:$0xff]  ;;  %v4333_v11 = vpack.c.bf16 %v731_v2, %v718_v47 }
 0x108   :  { %v1185_v14 = vpop.f32.mrf.mxu0  ;;  %v623_v57 = vpack.c.bf16 %v413_v31, %v411_v5  ;;  %v4331_v31 = vpack.c.bf16 %v729_v41, %v716_v1  ;;  %v381_v1 = vld [vmem:[%s6069_s0 + $0xb50] sm:$0xff] }
 0x109   :  { %v1135_v55 = vadd.f32 %v1134_v37, %v1086_v33  ;;  %v4327_v37 = vpack.c.bf16 %v728_v8, %v715_v40  ;;  %6184 = vst [vmem:[#allocation44_spill] sm:$0xff] %v4333_v11  ;;  %v379_v8 = vld [vmem:[%s6069_s0 + $0xb40] sm:$0xff] }
 0x10a   :  { %v1234_v10 = vpop.f32.mrf.mxu1  ;;  %1561 = vmatpush.bf16.msrb.mxu0 %v623_v57  ;;  %6183 = vst [vmem:[#allocation43_spill] sm:$0xff] %v4331_v31  ;;  %v607_v57 = vpack.c.bf16 %v381_v1, %v379_v8 }
 0x10b   :  { %v1184_v61 = vadd.f32 %v1183_v36, %v1135_v55  ;;  %v717_v36 = vld [vmem:[%s6070_s1 + $0x2b0] sm:$0xff]  ;;  %6181 = vst [vmem:[#allocation41_spill] sm:$0xff] %v4327_v37 }
 0x10c   :  { %v4329_v55 = vpack.c.bf16 %v730_v51, %v717_v36  ;;  %1512 = vmatpush.bf16.msrb.mxu3 %v607_v57 }
 0x10d   :  { %v4324_v38 = vadd.f32 %v1232_v29, %v1184_v61  ;;  %v32_v29 = vld [vmem:[%s6069_s0 + $0x68] sm:$0xff] }
 0x10e   :  { %v1087_v62 = vpop.f32.mrf.mxu2  ;;  %6182 = vst [vmem:[#allocation42_spill] sm:$0xff] %v4329_v55 }
 0x10f   :  { %v1088_v30 = vadd.f32 %v1087_v62, %v4035_v32  ;;  %v1136_v33 = vpop.f32.mrf.mxu3  ;;  %v34_v32 = vld [vmem:[%s6069_s0 + $0x78] sm:$0xff] }
 0x110   :  { %v1188_v5 = vpop.f32.mrf.mxu0  ;;  %v434_v40 = vpack.c.bf16 %v34_v32, %v32_v29  ;;  %v741_v29 = vld [vmem:[%s6070_s1 + $0x370] sm:$0xff]  ;;  %v755_v32 = vld [vmem:[%s6070_s1 + $0x3e0] sm:$0xff] }
 0x111   :  { %v1137_v24 = vadd.f32 %v1136_v33, %v1088_v30 }
 0x112   :  { %v1237_v43 = vpop.f32.mrf.mxu1  ;;  %1609 = vmatpush.bf16.msrb.mxu1 %v434_v40  ;;  %v744_v40 = vld [vmem:[%s6070_s1 + $0x388] sm:$0xff] }
 0x113   :  { %v1186_v6 = vadd.f32 %v1185_v14, %v1137_v24  ;;  %1285 = vmatmul.bf16.gmra.mxu2 %v4327_v37  ;;  %1383 = vmatmul.bf16.gmra.mxu0 %v4329_v55  ;;  %v347_v24 = vld [vmem:[%s6069_s0 + $0xa40] sm:$0xff]  ;;  %v349_v14 = vld [vmem:[%s6069_s0 + $0xa50] sm:$0xff] }
 0x114   :  { %1334 = vmatmul.bf16.gmra.mxu3 %v4331_v31  ;;  %v591_v61 = vpack.c.bf16 %v349_v14, %v347_v24  ;;  %v757_v24 = vld [vmem:[%s6070_s1 + $0x3f0] sm:$0xff] }
 0x115   :  { %1432 = vmatmul.bf16.gmra.mxu1 %v4333_v11  ;;  %v4357_v36 = vadd.f32 %v1234_v10, %v1186_v6  ;;  %v754_v6 = vld [vmem:[%s6070_s1 + $0x3d8] sm:$0xff] }
 0x116   :  { %v1090_v51 = vpop.f32.mrf.mxu2  ;;  %1463 = vmatpush.bf16.msrb.mxu2 %v591_v61  ;;  %v742_v10 = vld [vmem:[%s6070_s1 + $0x378] sm:$0xff] }
 0x117   :  { %v1091_v41 = vadd.f32 %v1090_v51, %v4077_v56  ;;  %v1139_v47 = vpop.f32.mrf.mxu3  ;;  %v743_v56 = vld [vmem:[%s6070_s1 + $0x380] sm:$0xff]  ;;  %v4387_v51 = vpack.c.bf16 %v754_v6, %v741_v29 }
 0x118   :  { %v1190_v2 = vpop.f32.mrf.mxu0  ;;  %v407_v29 = vld [vmem:[%s6069_s0 + $0xc20] sm:$0xff] }
 0x119   :  { %v1140_v62 = vadd.f32 %v1139_v47, %v1091_v41  ;;  %6185 = vst [vmem:[#allocation45_spill] sm:$0xff] %v4387_v51  ;;  %v4391_v47 = vpack.c.bf16 %v755_v32, %v742_v10  ;;  %v409_v10 = vld [vmem:[%s6069_s0 + $0xc30] sm:$0xff] }
 0x11a   :  { %v1239_v30 = vpop.f32.mrf.mxu1 }
 0x11b   :  { %v1189_v33 = vadd.f32 %v1188_v5, %v1140_v62  ;;  %v756_v5 = vld [vmem:[%s6070_s1 + $0x3e8] sm:$0xff]  ;;  %6187 = vst [vmem:[#allocation47_spill] sm:$0xff] %v4391_v47  ;;  %v4393_v62 = vpack.c.bf16 %v757_v24, %v744_v40  ;;  %v621_v40 = vpack.c.bf16 %v409_v10, %v407_v29  ;;  %v377_v24 = vld [vmem:[%s6069_s0 + $0xb30] sm:$0xff]  ;;  %v783_v10 = vld [vmem:[%s6070_s1 + $0x4c0] sm:$0xff] }
 0x11c   :  { %v4389_v57 = vpack.c.bf16 %v756_v5, %v743_v56  ;;  %v375_v56 = vld [vmem:[%s6069_s0 + $0xb20] sm:$0xff]  ;;  %v781_v29 = vld [vmem:[%s6070_s1 + $0x4b0] sm:$0xff] }
 0x11d   :  { %v4384_v14 = vadd.f32 %v1237_v43, %v1189_v33  ;;  %6188 = vst [vmem:[#allocation48_spill] sm:$0xff] %v4393_v62  ;;  %v30_v43 = vld [vmem:[%s6069_s0 + $0x58] sm:$0xff]  ;;  %1562 = vmatpush.bf16.msrb.mxu0 %v621_v40 }
 0x11e   :  { %v1092_v61 = vpop.f32.mrf.mxu2  ;;  %6186 = vst [vmem:[#allocation46_spill] sm:$0xff] %v4389_v57 }
 0x11f   :  { %v1093_v8 = vadd.f32 %v1092_v61, %v4103_v28  ;;  %v1141_v1 = vpop.f32.mrf.mxu3  ;;  %v28_v28 = vld [vmem:[%s6069_s0 + $0x48] sm:$0xff] }
 0x120   :  { %v1193_v41 = vpop.f32.mrf.mxu0  ;;  %v432_v33 = vpack.c.bf16 %v30_v43, %v28_v28 }
 0x121   :  { %v1142_v11 = vadd.f32 %v1141_v1, %v1093_v8  ;;  %v605_v1 = vpack.c.bf16 %v377_v24, %v375_v56 }
 0x122   :  { %v1242_v55 = vpop.f32.mrf.mxu1  ;;  %1610 = vmatpush.bf16.msrb.mxu1 %v432_v33  ;;  %v769_v33 = vld [vmem:[%s6070_s1 + $0x450] sm:$0xff] }
 0x123   :  { %v1191_v37 = vadd.f32 %v1190_v2, %v1142_v11  ;;  %1290 = vmatmul.bf16.gmra.mxu2 %v4387_v51  ;;  %1388 = vmatmul.bf16.gmra.mxu0 %v4389_v57  ;;  %v343_v11 = vld [vmem:[%s6069_s0 + $0xa20] sm:$0xff]  ;;  %v345_v2 = vld [vmem:[%s6069_s0 + $0xa30] sm:$0xff] }
 0x124   :  { %1339 = vmatmul.bf16.gmra.mxu3 %v4391_v47  ;;  %v589_v6 = vpack.c.bf16 %v345_v2, %v343_v11 }
 0x125   :  { %1437 = vmatmul.bf16.gmra.mxu1 %v4393_v62  ;;  %v4420_v5 = vadd.f32 %v1239_v30, %v1191_v37  ;;  %1513 = vmatpush.bf16.msrb.mxu3 %v605_v1  ;;  %v767_v37 = vld [vmem:[%s6070_s1 + $0x440] sm:$0xff]  ;;  %v780_v30 = vld [vmem:[%s6070_s1 + $0x4a8] sm:$0xff] }
 0x126   :  { %v1095_v32 = vpop.f32.mrf.mxu2  ;;  %1464 = vmatpush.bf16.msrb.mxu2 %v589_v6  ;;  %v770_v6 = vld [vmem:[%s6070_s1 + $0x458] sm:$0xff] }
 0x127   :  { %v1096_v61 = vadd.f32 %v1095_v32, %v3897_v35  ;;  %v1144_v8 = vpop.f32.mrf.mxu3  ;;  %v768_v35 = vld [vmem:[%s6070_s1 + $0x448] sm:$0xff]  ;;  %v4459_v62 = vpack.c.bf16 %v783_v10, %v770_v6 }
 0x128   :  { %v1195_v28 = vpop.f32.mrf.mxu0 }
 0x129   :  { %v1145_v43 = vadd.f32 %v1144_v8, %v1096_v61  ;;  %v4453_v61 = vpack.c.bf16 %v780_v30, %v767_v37  ;;  %6192 = vst [vmem:[#allocation52_spill] sm:$0xff] %v4459_v62  ;;  %v371_v30 = vld [vmem:[%s6069_s0 + $0xb00] sm:$0xff] }
 0x12a   :  { %v1244_v11 = vpop.f32.mrf.mxu1 }
 0x12b   :  { %v1194_v2 = vadd.f32 %v1193_v41, %v1145_v43  ;;  %v782_v41 = vld [vmem:[%s6070_s1 + $0x4b8] sm:$0xff]  ;;  %6189 = vst [vmem:[#allocation49_spill] sm:$0xff] %v4453_v61  ;;  %v4457_v43 = vpack.c.bf16 %v781_v29, %v768_v35  ;;  %v373_v35 = vld [vmem:[%s6069_s0 + $0xb10] sm:$0xff] }
 0x12c   :  { %v4455_v8 = vpack.c.bf16 %v782_v41, %v769_v33  ;;  %v603_v29 = vpack.c.bf16 %v373_v35, %v371_v30  ;;  %v796_v30 = vld [vmem:[%s6070_s1 + $0x528] sm:$0xff]  ;;  %v809_v35 = vld [vmem:[%s6070_s1 + $0x590] sm:$0xff] }
 0x12d   :  { %v4450_v56 = vadd.f32 %v1242_v55, %v1194_v2  ;;  %6191 = vst [vmem:[#allocation51_spill] sm:$0xff] %v4457_v43  ;;  %v26_v55 = vld [vmem:[%s6069_s0 + $0x38] sm:$0xff] }
 0x12e   :  { %v1097_v32 = vpop.f32.mrf.mxu2  ;;  %6190 = vst [vmem:[#allocation50_spill] sm:$0xff] %v4455_v8  ;;  %1514 = vmatpush.bf16.msrb.mxu3 %v603_v29 }
 0x12f   :  { %v1098_v40 = vadd.f32 %v1097_v32, %v3935_v15  ;;  %v1146_v24 = vpop.f32.mrf.mxu3  ;;  %v24_v15 = vld [vmem:[%s6069_s0 + $0x28] sm:$0xff] }
 0x130   :  { %v1198_v1 = vpop.f32.mrf.mxu0  ;;  %v430_v2 = vpack.c.bf16 %v26_v55, %v24_v15  ;;  %v793_v15 = vld [vmem:[%s6070_s1 + $0x510] sm:$0xff] }
 0x131   :  { %v1147_v57 = vadd.f32 %v1146_v24, %v1098_v40 }
 0x132   :  { %v1247_v51 = vpop.f32.mrf.mxu1  ;;  %1611 = vmatpush.bf16.msrb.mxu1 %v430_v2  ;;  %v794_v2 = vld [vmem:[%s6070_s1 + $0x518] sm:$0xff] }
 0x133   :  { %v1196_v47 = vadd.f32 %v1195_v28, %v1147_v57  ;;  %1295 = vmatmul.bf16.gmra.mxu2 %v4453_v61  ;;  %1393 = vmatmul.bf16.gmra.mxu0 %v4455_v8  ;;  %v339_v57 = vld [vmem:[%s6069_s0 + $0xa00] sm:$0xff]  ;;  %v341_v28 = vld [vmem:[%s6069_s0 + $0xa10] sm:$0xff]  ;;  %v4525_v8 = vpack.c.bf16 %v809_v35, %v796_v30 }
 0x134   :  { %1344 = vmatmul.bf16.gmra.mxu3 %v4457_v43  ;;  %v587_v37 = vpack.c.bf16 %v341_v28, %v339_v57  ;;  %v808_v57 = vld [vmem:[%s6070_s1 + $0x588] sm:$0xff] }
 0x135   :  { %1442 = vmatmul.bf16.gmra.mxu1 %v4459_v62  ;;  %v4483_v33 = vadd.f32 %v1244_v11, %v1196_v47  ;;  %v806_v47 = vld [vmem:[%s6070_s1 + $0x578] sm:$0xff]  ;;  %v403_v11 = vld [vmem:[%s6069_s0 + $0xc00] sm:$0xff]  ;;  %6196 = vst [vmem:[#allocation56_spill] sm:$0xff] %v4525_v8 }
 0x136   :  { %v1100_v41 = vpop.f32.mrf.mxu2  ;;  %1465 = vmatpush.bf16.msrb.mxu2 %v587_v37  ;;  %v807_v37 = vld [vmem:[%s6070_s1 + $0x580] sm:$0xff] }
 0x137   :  { %v1101_v6 = vadd.f32 %v1100_v41, %v3965_v58  ;;  %v1149_v10 = vpop.f32.mrf.mxu3  ;;  %v405_v58 = vld [vmem:[%s6069_s0 + $0xc10] sm:$0xff]  ;;  %v4523_v62 = vpack.c.bf16 %v807_v37, %v794_v2  ;;  %v82_v2 = vld [vmem:[%s6069_s0 + $0x1f8] sm:$0xff] }
 0x138   :  { %v1200_v32 = vpop.f32.mrf.mxu0  ;;  %v619_v28 = vpack.c.bf16 %v405_v58, %v403_v11 }
 0x139   :  { %v1150_v40 = vadd.f32 %v1149_v10, %v1101_v6  ;;  %6195 = vst [vmem:[#allocation55_spill] sm:$0xff] %v4523_v62 }
 0x13a   :  { %v1249_v24 = vpop.f32.mrf.mxu1  ;;  %1563 = vmatpush.bf16.msrb.mxu0 %v619_v28 }
 0x13b   :  { %v1199_v55 = vadd.f32 %v1198_v1, %v1150_v40  ;;  %v795_v1 = vld [vmem:[%s6070_s1 + $0x520] sm:$0xff]  ;;  %v4519_v40 = vpack.c.bf16 %v806_v47, %v793_v15  ;;  %v80_v47 = vld [vmem:[%s6069_s0 + $0x1e8] sm:$0xff] }
 0x13c   :  { %v4521_v11 = vpack.c.bf16 %v808_v57, %v795_v1  ;;  %v114_v1 = vld [vmem:[%s6069_s0 + $0x2f8] sm:$0xff] }
 0x13d   :  { %v4516_v41 = vadd.f32 %v1247_v51, %v1199_v55  ;;  %6193 = vst [vmem:[#allocation53_spill] sm:$0xff] %v4519_v40  ;;  %v20_v51 = vld [vmem:[%s6069_s0 + $0x8] sm:$0xff] }
 0x13e   :  { %v1102_v29 = vpop.f32.mrf.mxu2  ;;  %6194 = vst [vmem:[#allocation54_spill] sm:$0xff] %v4521_v11 }
 0x13f   :  { %v1103_v6 = vadd.f32 %v1102_v29, %v4003_v59  ;;  %v1151_v10 = vpop.f32.mrf.mxu3  ;;  %v22_v59 = vld [vmem:[%s6069_s0 + $0x18] sm:$0xff] }
 0x140   :  { %v1203_v58 = vpop.f32.mrf.mxu0  ;;  %v428_v15 = vpack.c.bf16 %v22_v59, %v20_v51  ;;  %v819_v51 = vld [vmem:[%s6070_s1 + $0x5e0] sm:$0xff] }
 0x141   :  { %v1152_v61 = vadd.f32 %v1151_v10, %v1103_v6 }
 0x142   :  { %v1252_v43 = vpop.f32.mrf.mxu1  ;;  %1612 = vmatpush.bf16.msrb.mxu1 %v428_v15  ;;  %v820_v15 = vld [vmem:[%s6070_s1 + $0x5e8] sm:$0xff] }
 0x143   :  { %v1201_v55 = vadd.f32 %v1200_v32, %v1152_v61  ;;  %1300 = vmatmul.bf16.gmra.mxu2 %v4519_v40  ;;  %1398 = vmatmul.bf16.gmra.mxu0 %v4521_v11  ;;  %v112_v61 = vld [vmem:[%s6069_s0 + $0x2e8] sm:$0xff]  ;;  %v458_v32 = vpack.c.bf16 %v82_v2, %v80_v47  ;;  %v834_v47 = vld [vmem:[%s6070_s1 + $0x658] sm:$0xff] }
 0x144   :  { %1349 = vmatmul.bf16.gmra.mxu3 %v4523_v62  ;;  %v474_v37 = vpack.c.bf16 %v114_v1, %v112_v61  ;;  %v833_v61 = vld [vmem:[%s6070_s1 + $0x650] sm:$0xff]  ;;  %v835_v1 = vld [vmem:[%s6070_s1 + $0x660] sm:$0xff] }
 0x145   :  { %1447 = vmatmul.bf16.gmra.mxu1 %v4525_v8  ;;  %v4549_v57 = vadd.f32 %v1249_v24, %v1201_v55  ;;  %1654 = vmatpush.bf16.msra.mxu2 %v458_v32  ;;  %v832_v24 = vld [vmem:[%s6070_s1 + $0x648] sm:$0xff]  ;;  %v822_v32 = vld [vmem:[%s6070_s1 + $0x5f8] sm:$0xff]  ;;  %v4589_v8 = vpack.c.bf16 %v833_v61, %v820_v15 }
 0x146   :  { %v1105_v28 = vpop.f32.mrf.mxu2  ;;  %1703 = vmatpush.bf16.msra.mxu3 %v474_v37  ;;  %v144_v55 = vld [vmem:[%s6069_s0 + $0x3e8] sm:$0xff]  ;;  %v4591_v11 = vpack.c.bf16 %v835_v1, %v822_v32  ;;  %v110_v15 = vld [vmem:[%s6069_s0 + $0x2d8] sm:$0xff] }
 0x147   :  { %v1106_v30 = vadd.f32 %v1105_v28, %v4033_v42  ;;  %v1154_v35 = vpop.f32.mrf.mxu3  ;;  %v146_v42 = vld [vmem:[%s6069_s0 + $0x3f8] sm:$0xff] }
 0x148   :  { %v1205_v29 = vpop.f32.mrf.mxu0  ;;  %v490_v2 = vpack.c.bf16 %v146_v42, %v144_v55  ;;  %6197 = vst [vmem:[#allocation57_spill] sm:$0xff] %v4591_v11 }
 0x149   :  { %v1155_v6 = vadd.f32 %v1154_v35, %v1106_v30 }
 0x14a   :  { %v1254_v10 = vpop.f32.mrf.mxu1  ;;  %1752 = vmatpush.bf16.msra.mxu0 %v490_v2 }
 0x14b   :  { %v1204_v59 = vadd.f32 %v1203_v58, %v1155_v6  ;;  %v821_v58 = vld [vmem:[%s6070_s1 + $0x5f0] sm:$0xff]  ;;  %v4585_v6 = vpack.c.bf16 %v832_v24, %v819_v51  ;;  %v108_v24 = vld [vmem:[%s6069_s0 + $0x2c8] sm:$0xff] }
 0x14c   :  { %v4587_v55 = vpack.c.bf16 %v834_v47, %v821_v58  ;;  %v472_v2 = vpack.c.bf16 %v110_v15, %v108_v24 }
 0x14d   :  { %v4582_v28 = vadd.f32 %v1252_v43, %v1204_v59  ;;  %v178_v43 = vld [vmem:[%s6069_s0 + $0x4f8] sm:$0xff] }
 0x14e   :  { %v1107_v37 = vpop.f32.mrf.mxu2  ;;  %1704 = vmatpush.bf16.msra.mxu3 %v472_v2 }
 0x14f   :  { %v1108_v30 = vadd.f32 %v1107_v37, %v4071_v34  ;;  %v1156_v35 = vpop.f32.mrf.mxu3  ;;  %v176_v34 = vld [vmem:[%s6069_s0 + $0x4e8] sm:$0xff] }
 0x150   :  { %v1208_v42 = vpop.f32.mrf.mxu0  ;;  %v506_v51 = vpack.c.bf16 %v178_v43, %v176_v34  ;;  %v641_v34 = vld [vmem:[%s6070_s1 + $0x50] sm:$0xff]  ;;  %v656_v43 = vld [vmem:[%s6070_s1 + $0xc8] sm:$0xff] }
 0x151   :  { %v1157_v40 = vadd.f32 %v1156_v35, %v1108_v30 }
 0x152   :  { %v1257_v62 = vpop.f32.mrf.mxu1  ;;  %1801 = vmatpush.bf16.msra.mxu1 %v506_v51 }
 0x153   :  { %v1206_v31 = vadd.f32 %v1205_v29, %v1157_v40  ;;  %1305 = vmatmul.bf16.gmra.mxu2 %v4585_v6  ;;  %1403 = vmatmul.bf16.gmra.mxu0 %v4587_v55  ;;  %v76_v40 = vld [vmem:[%s6069_s0 + $0x1c8] sm:$0xff]  ;;  %v78_v29 = vld [vmem:[%s6069_s0 + $0x1d8] sm:$0xff] }
 0x154   :  { %1354 = vmatmul.bf16.gmra.mxu3 %v4589_v8  ;;  %v456_v59 = vpack.c.bf16 %v78_v29, %v76_v40  ;;  %v642_v40 = vld [vmem:[%s6070_s1 + $0x58] sm:$0xff]  ;;  %v655_v29 = vld [vmem:[%s6070_s1 + $0xc0] sm:$0xff] }
 0x155   :  { %1452 = vmatmul.bf16.gmra.mxu1 %v4591_v11  ;;  %v4615_v58 = vadd.f32 %v1254_v10, %v1206_v31  ;;  %v140_v31 = vld [vmem:[%s6069_s0 + $0x3c8] sm:$0xff]  ;;  %v142_v10 = vld [vmem:[%s6069_s0 + $0x3d8] sm:$0xff] }
 0x156   :  { %v1110_v47 = vpop.f32.mrf.mxu2  ;;  %1655 = vmatpush.bf16.msra.mxu2 %v456_v59  ;;  %v488_v51 = vpack.c.bf16 %v142_v10, %v140_v31 }
 0x157   :  { %v1111_v61 = vadd.f32 %v1110_v47, %v4101_v60  ;;  %v1159_v32 = vpop.f32.mrf.mxu3  ;;  %v654_v60 = vld [vmem:[%s6070_s1 + $0xb8] sm:$0xff] }
 0x158   :  { %v1210_v1 = vpop.f32.mrf.mxu0  ;;  %1753 = vmatpush.bf16.msra.mxu0 %v488_v51  ;;  %v4645_v2 = vpack.c.bf16 %v654_v60, %v641_v34  ;;  %v74_v34 = vld [vmem:[%s6069_s0 + $0x1b8] sm:$0xff] }
 0x159   :  { %v1160_v37 = vadd.f32 %v1159_v32, %v1111_v61 }
 0x15a   :  { %v1259_v30 = vpop.f32.mrf.mxu1  ;;  %6198 = vst [vmem:[#allocation58_spill] sm:$0xff] %v4645_v2 }
 0x15b   :  { %v1209_v35 = vadd.f32 %v1208_v42, %v1160_v37  ;;  %v643_v42 = vld [vmem:[%s6070_s1 + $0x60] sm:$0xff]  ;;  %v4649_v37 = vpack.c.bf16 %v655_v29, %v642_v40 }
 0x15c   :  { %v4647_v61 = vpack.c.bf16 %v656_v43, %v643_v42  ;;  %v104_v42 = vld [vmem:[%s6069_s0 + $0x2a8] sm:$0xff]  ;;  %v106_v43 = vld [vmem:[%s6069_s0 + $0x2b8] sm:$0xff] }
 0x15d   :  { %v4642_v59 = vadd.f32 %v1257_v62, %v1209_v35  ;;  %v174_v62 = vld [vmem:[%s6069_s0 + $0x4d8] sm:$0xff]  ;;  %v470_v40 = vpack.c.bf16 %v106_v43, %v104_v42 }
 0x15e   :  { %v1112_v24 = vpop.f32.mrf.mxu2  ;;  %6199 = vst [vmem:[#allocation59_spill] sm:$0xff] %v4647_v61 }
 0x15f   :  { %v1113_v15 = vadd.f32 %v1112_v24, %v4133_v19  ;;  %v1161_v47 = vpop.f32.mrf.mxu3  ;;  %v172_v19 = vld [vmem:[%s6069_s0 + $0x4c8] sm:$0xff]  ;;  %1705 = vmatpush.bf16.msra.mxu3 %v470_v40 }
 0x160   :  { %v1369_v32 = vpop.f32.mrf.mxu0  ;;  %v504_v35 = vpack.c.bf16 %v174_v62, %v172_v19  ;;  %v667_v62 = vld [vmem:[%s6070_s1 + $0x120] sm:$0xff] }
 0x161   :  { %v1162_v31 = vadd.f32 %v1161_v47, %v1113_v15 }
 0x162   :  { %v1418_v10 = vpop.f32.mrf.mxu1  ;;  %1802 = vmatpush.bf16.msra.mxu1 %v504_v35  ;;  %v682_v35 = vld [vmem:[%s6070_s1 + $0x198] sm:$0xff] }
 0x163   :  { %v1211_v11 = vadd.f32 %v1210_v1, %v1162_v31  ;;  %1466 = vmatmul.bf16.vlgmr.msrb.gmra.mxu2 %v4645_v2  ;;  %3001 = vmatmul.msk.bf16.vlgmr.msrb.gmra.mxu0 %vm943_vm0, %v4647_v61  ;;  %v72_v1 = vld [vmem:[%s6069_s0 + $0x1a8] sm:$0xff] }
 0x164   :  { %1515 = vmatmul.bf16.vlgmr.msrb.gmra.mxu3 %v4649_v37  ;;  %v454_v60 = vpack.c.bf16 %v74_v34, %v72_v1  ;;  %v668_v34 = vld [vmem:[%s6070_s1 + $0x128] sm:$0xff] }
 0x165   :  { %1613 = vmatmul.bf16.vlgmr.msrb.gmra.mxu1 %v3276_v4  ;;  %v4674_v51 = vadd.f32 %v1259_v30, %v1211_v11  ;;  %v136_v11 = vld [vmem:[%s6069_s0 + $0x3a8] sm:$0xff]  ;;  %v138_v30 = vld [vmem:[%s6069_s0 + $0x3b8] sm:$0xff] }
 0x166   :  { %v1271_v4 = vpop.f32.mrf.mxu2  ;;  %1656 = vmatpush.bf16.msra.mxu2 %v454_v60  ;;  %v486_v1 = vpack.c.bf16 %v138_v30, %v136_v11  ;;  %v681_v60 = vld [vmem:[%s6070_s1 + $0x190] sm:$0xff] }
 0x167   :  { %v1272_v29 = vadd.f32 %v1271_v4, %v4192_v13  ;;  %v1320_v24 = vpop.f32.mrf.mxu3  ;;  %v680_v13 = vld [vmem:[%s6070_s1 + $0x188] sm:$0xff]  ;;  %v4708_v11 = vpack.c.bf16 %v681_v60, %v668_v34 }
 0x168   :  { %v1371_v15 = vpop.f32.mrf.mxu0  ;;  %1754 = vmatpush.bf16.msra.mxu0 %v486_v1 }
 0x169   :  { %v1321_v47 = vadd.f32 %v1320_v24, %v1272_v29  ;;  %v4704_v29 = vpack.c.bf16 %v680_v13, %v667_v62  ;;  %v70_v62 = vld [vmem:[%s6069_s0 + $0x198] sm:$0xff] }
 0x16a   :  { %v1420_v31 = vpop.f32.mrf.mxu1 }
 0x16b   :  { %v1370_v19 = vadd.f32 %v1369_v32, %v1321_v47  ;;  %v669_v32 = vld [vmem:[%s6070_s1 + $0x130] sm:$0xff]  ;;  %6200 = vst [vmem:[#allocation60_spill] sm:$0xff] %v4704_v29 }
 0x16c   :  { %v4706_v24 = vpack.c.bf16 %v682_v35, %v669_v32  ;;  %v100_v32 = vld [vmem:[%s6069_s0 + $0x288] sm:$0xff]  ;;  %v102_v35 = vld [vmem:[%s6069_s0 + $0x298] sm:$0xff] }
 0x16d   :  { %v4701_v42 = vadd.f32 %v1418_v10, %v1370_v19  ;;  %v170_v10 = vld [vmem:[%s6069_s0 + $0x4b8] sm:$0xff]  ;;  %v468_v34 = vpack.c.bf16 %v102_v35, %v100_v32 }
 0x16e   :  { %v1273_v43 = vpop.f32.mrf.mxu2  ;;  %6201 = vst [vmem:[#allocation61_spill] sm:$0xff] %v4706_v24 }
 0x16f   :  { %v1274_v4 = vadd.f32 %v1273_v43, %v4225_v39  ;;  %v1322_v40 = vpop.f32.mrf.mxu3  ;;  %v168_v39 = vld [vmem:[%s6069_s0 + $0x4a8] sm:$0xff]  ;;  %1706 = vmatpush.bf16.msra.mxu3 %v468_v34 }
 0x170   :  { %v1374_v47 = vpop.f32.mrf.mxu0  ;;  %v502_v19 = vpack.c.bf16 %v170_v10, %v168_v39  ;;  %v693_v10 = vld [vmem:[%s6070_s1 + $0x1f0] sm:$0xff] }
 0x171   :  { %v1323_v30 = vadd.f32 %v1322_v40, %v1274_v4 }
 0x172   :  { %v1423_v61 = vpop.f32.mrf.mxu1  ;;  %1803 = vmatpush.bf16.msra.mxu1 %v502_v19  ;;  %v708_v19 = vld [vmem:[%s6070_s1 + $0x268] sm:$0xff] }
 0x173   :  { %v1372_v2 = vadd.f32 %v1371_v15, %v1323_v30  ;;  %1471 = vmatmul.bf16.gmra.mxu2 %v4704_v29  ;;  %3002 = vmatmul.msk.bf16.gmra.mxu0 %vm943_vm0, %v4706_v24  ;;  %v68_v15 = vld [vmem:[%s6069_s0 + $0x188] sm:$0xff] }
 0x174   :  { %1520 = vmatmul.bf16.gmra.mxu3 %v4708_v11  ;;  %v452_v13 = vpack.c.bf16 %v70_v62, %v68_v15  ;;  %v694_v62 = vld [vmem:[%s6070_s1 + $0x1f8] sm:$0xff] }
 0x175   :  { %1618 = vmatmul.bf16.gmra.mxu1 %v3408_v0  ;;  %v4733_v1 = vadd.f32 %v1420_v31, %v1372_v2  ;;  %v132_v2 = vld [vmem:[%s6069_s0 + $0x388] sm:$0xff]  ;;  %v134_v31 = vld [vmem:[%s6069_s0 + $0x398] sm:$0xff] }
 0x176   :  { %v1276_v0 = vpop.f32.mrf.mxu2  ;;  %1657 = vmatpush.bf16.msra.mxu2 %v452_v13  ;;  %v484_v15 = vpack.c.bf16 %v134_v31, %v132_v2  ;;  %v707_v13 = vld [vmem:[%s6070_s1 + $0x260] sm:$0xff] }
 0x177   :  { %v1277_v60 = vadd.f32 %v1276_v0, %v4258_v22  ;;  %v1325_v43 = vpop.f32.mrf.mxu3  ;;  %v706_v22 = vld [vmem:[%s6070_s1 + $0x258] sm:$0xff]  ;;  %v4767_v2 = vpack.c.bf16 %v707_v13, %v694_v62 }
 0x178   :  { %v1376_v4 = vpop.f32.mrf.mxu0  ;;  %1755 = vmatpush.bf16.msra.mxu0 %v484_v15 }
 0x179   :  { %v1326_v40 = vadd.f32 %v1325_v43, %v1277_v60  ;;  %v4763_v60 = vpack.c.bf16 %v706_v22, %v693_v10  ;;  %v66_v10 = vld [vmem:[%s6069_s0 + $0x178] sm:$0xff] }
 0x17a   :  { %v1425_v30 = vpop.f32.mrf.mxu1 }
 0x17b   :  { %v1375_v39 = vadd.f32 %v1374_v47, %v1326_v40  ;;  %v695_v47 = vld [vmem:[%s6070_s1 + $0x200] sm:$0xff]  ;;  %6202 = vst [vmem:[#allocation62_spill] sm:$0xff] %v4763_v60 }
 0x17c   :  { %v4765_v43 = vpack.c.bf16 %v708_v19, %v695_v47  ;;  %v96_v47 = vld [vmem:[%s6069_s0 + $0x268] sm:$0xff]  ;;  %v98_v19 = vld [vmem:[%s6069_s0 + $0x278] sm:$0xff] }
 0x17d   :  { %v4760_v32 = vadd.f32 %v1423_v61, %v1375_v39  ;;  %v166_v61 = vld [vmem:[%s6069_s0 + $0x498] sm:$0xff]  ;;  %v466_v62 = vpack.c.bf16 %v98_v19, %v96_v47 }
 0x17e   :  { %v1278_v35 = vpop.f32.mrf.mxu2  ;;  %6203 = vst [vmem:[#allocation63_spill] sm:$0xff] %v4765_v43 }
 0x17f   :  { %v1279_v0 = vadd.f32 %v1278_v35, %v4291_v12  ;;  %v1327_v34 = vpop.f32.mrf.mxu3  ;;  %v164_v12 = vld [vmem:[%s6069_s0 + $0x488] sm:$0xff]  ;;  %1707 = vmatpush.bf16.msra.mxu3 %v466_v62 }
 0x180   :  { %v1379_v40 = vpop.f32.mrf.mxu0  ;;  %v500_v39 = vpack.c.bf16 %v166_v61, %v164_v12  ;;  %v719_v61 = vld [vmem:[%s6070_s1 + $0x2c0] sm:$0xff] }
 0x181   :  { %v1328_v31 = vadd.f32 %v1327_v34, %v1279_v0 }
 0x182   :  { %v1428_v24 = vpop.f32.mrf.mxu1  ;;  %1804 = vmatpush.bf16.msra.mxu1 %v500_v39  ;;  %v734_v39 = vld [vmem:[%s6070_s1 + $0x338] sm:$0xff] }
 0x183   :  { %v1377_v29 = vadd.f32 %v1376_v4, %v1328_v31  ;;  %1476 = vmatmul.bf16.gmra.mxu2 %v4763_v60  ;;  %3003 = vmatmul.msk.bf16.gmra.mxu0 %vm943_vm0, %v4765_v43  ;;  %v64_v4 = vld [vmem:[%s6069_s0 + $0x168] sm:$0xff] }
 0x184   :  { %1525 = vmatmul.bf16.gmra.mxu3 %v4767_v2  ;;  %v450_v22 = vpack.c.bf16 %v66_v10, %v64_v4  ;;  %v720_v10 = vld [vmem:[%s6070_s1 + $0x2c8] sm:$0xff] }
 0x185   :  { %1623 = vmatmul.bf16.gmra.mxu1 %v3507_v50  ;;  %v4792_v15 = vadd.f32 %v1425_v30, %v1377_v29  ;;  %v128_v29 = vld [vmem:[%s6069_s0 + $0x368] sm:$0xff]  ;;  %v130_v30 = vld [vmem:[%s6069_s0 + $0x378] sm:$0xff] }
 0x186   :  { %v1281_v50 = vpop.f32.mrf.mxu2  ;;  %1658 = vmatpush.bf16.msra.mxu2 %v450_v22  ;;  %v482_v4 = vpack.c.bf16 %v130_v30, %v128_v29  ;;  %v733_v22 = vld [vmem:[%s6070_s1 + $0x330] sm:$0xff] }
 0x187   :  { %v1282_v13 = vadd.f32 %v1281_v50, %v4324_v38  ;;  %v1330_v35 = vpop.f32.mrf.mxu3  ;;  %v732_v38 = vld [vmem:[%s6070_s1 + $0x328] sm:$0xff]  ;;  %v4826_v29 = vpack.c.bf16 %v733_v22, %v720_v10 }
 0x188   :  { %v1381_v0 = vpop.f32.mrf.mxu0  ;;  %1756 = vmatpush.bf16.msra.mxu0 %v482_v4 }
 0x189   :  { %v1331_v34 = vadd.f32 %v1330_v35, %v1282_v13  ;;  %v4822_v13 = vpack.c.bf16 %v732_v38, %v719_v61  ;;  %v62_v61 = vld [vmem:[%s6069_s0 + $0x158] sm:$0xff] }
 0x18a   :  { %v1430_v31 = vpop.f32.mrf.mxu1 }
 0x18b   :  { %v1380_v12 = vadd.f32 %v1379_v40, %v1331_v34  ;;  %v721_v40 = vld [vmem:[%s6070_s1 + $0x2d0] sm:$0xff]  ;;  %6204 = vst [vmem:[#allocation64_spill] sm:$0xff] %v4822_v13 }
 0x18c   :  { %v4824_v35 = vpack.c.bf16 %v734_v39, %v721_v40  ;;  %v92_v40 = vld [vmem:[%s6069_s0 + $0x248] sm:$0xff]  ;;  %v94_v39 = vld [vmem:[%s6069_s0 + $0x258] sm:$0xff] }
 0x18d   :  { %v4819_v47 = vadd.f32 %v1428_v24, %v1380_v12  ;;  %v162_v24 = vld [vmem:[%s6069_s0 + $0x478] sm:$0xff]  ;;  %v464_v10 = vpack.c.bf16 %v94_v39, %v92_v40 }
 0x18e   :  { %v1283_v19 = vpop.f32.mrf.mxu2  ;;  %6205 = vst [vmem:[#allocation65_spill] sm:$0xff] %v4824_v35 }
 0x18f   :  { %v1284_v50 = vadd.f32 %v1283_v19, %v4357_v36  ;;  %v1332_v62 = vpop.f32.mrf.mxu3  ;;  %v160_v36 = vld [vmem:[%s6069_s0 + $0x468] sm:$0xff]  ;;  %1708 = vmatpush.bf16.msra.mxu3 %v464_v10 }
 0x190   :  { %v1384_v34 = vpop.f32.mrf.mxu0  ;;  %v498_v12 = vpack.c.bf16 %v162_v24, %v160_v36  ;;  %v745_v24 = vld [vmem:[%s6070_s1 + $0x390] sm:$0xff] }
 0x191   :  { %v1333_v30 = vadd.f32 %v1332_v62, %v1284_v50 }
 0x192   :  { %v1433_v43 = vpop.f32.mrf.mxu1  ;;  %1805 = vmatpush.bf16.msra.mxu1 %v498_v12  ;;  %v760_v12 = vld [vmem:[%s6070_s1 + $0x408] sm:$0xff] }
 0x193   :  { %v1382_v60 = vadd.f32 %v1381_v0, %v1333_v30  ;;  %1481 = vmatmul.bf16.gmra.mxu2 %v4822_v13  ;;  %3004 = vmatmul.msk.bf16.gmra.mxu0 %vm943_vm0, %v4824_v35  ;;  %v60_v0 = vld [vmem:[%s6069_s0 + $0x148] sm:$0xff] }
 0x194   :  { %1530 = vmatmul.bf16.gmra.mxu3 %v4826_v29  ;;  %v448_v38 = vpack.c.bf16 %v62_v61, %v60_v0  ;;  %v746_v61 = vld [vmem:[%s6070_s1 + $0x398] sm:$0xff] }
 0x195   :  { %1628 = vmatmul.bf16.gmra.mxu1 %v3573_v21  ;;  %v4851_v4 = vadd.f32 %v1430_v31, %v1382_v60  ;;  %v124_v60 = vld [vmem:[%s6069_s0 + $0x348] sm:$0xff]  ;;  %v126_v31 = vld [vmem:[%s6069_s0 + $0x358] sm:$0xff] }
 0x196   :  { %v1286_v21 = vpop.f32.mrf.mxu2  ;;  %1659 = vmatpush.bf16.msra.mxu2 %v448_v38  ;;  %v480_v0 = vpack.c.bf16 %v126_v31, %v124_v60  ;;  %v759_v38 = vld [vmem:[%s6070_s1 + $0x400] sm:$0xff] }
 0x197   :  { %v1287_v22 = vadd.f32 %v1286_v21, %v4384_v14  ;;  %v1335_v19 = vpop.f32.mrf.mxu3  ;;  %v758_v14 = vld [vmem:[%s6070_s1 + $0x3f8] sm:$0xff]  ;;  %v4885_v60 = vpack.c.bf16 %v759_v38, %v746_v61 }
 0x198   :  { %v1386_v50 = vpop.f32.mrf.mxu0  ;;  %1757 = vmatpush.bf16.msra.mxu0 %v480_v0 }
 0x199   :  { %v1336_v62 = vadd.f32 %v1335_v19, %v1287_v22  ;;  %v4881_v22 = vpack.c.bf16 %v758_v14, %v745_v24  ;;  %v58_v24 = vld [vmem:[%s6069_s0 + $0x138] sm:$0xff] }
 0x19a   :  { %v1435_v30 = vpop.f32.mrf.mxu1 }
 0x19b   :  { %v1385_v36 = vadd.f32 %v1384_v34, %v1336_v62  ;;  %v747_v34 = vld [vmem:[%s6070_s1 + $0x3a0] sm:$0xff]  ;;  %6206 = vst [vmem:[#allocation66_spill] sm:$0xff] %v4881_v22 }
 0x19c   :  { %v4883_v19 = vpack.c.bf16 %v760_v12, %v747_v34  ;;  %v88_v34 = vld [vmem:[%s6069_s0 + $0x228] sm:$0xff]  ;;  %v90_v12 = vld [vmem:[%s6069_s0 + $0x238] sm:$0xff] }
 0x19d   :  { %v4878_v40 = vadd.f32 %v1433_v43, %v1385_v36  ;;  %v158_v43 = vld [vmem:[%s6069_s0 + $0x458] sm:$0xff]  ;;  %v462_v61 = vpack.c.bf16 %v90_v12, %v88_v34 }
 0x19e   :  { %v1288_v39 = vpop.f32.mrf.mxu2  ;;  %6207 = vst [vmem:[#allocation67_spill] sm:$0xff] %v4883_v19 }
 0x19f   :  { %v1289_v21 = vadd.f32 %v1288_v39, %v4420_v5  ;;  %v1337_v10 = vpop.f32.mrf.mxu3  ;;  %v156_v5 = vld [vmem:[%s6069_s0 + $0x448] sm:$0xff]  ;;  %1709 = vmatpush.bf16.msra.mxu3 %v462_v61 }
 0x1a0   :  { %v1389_v62 = vpop.f32.mrf.mxu0  ;;  %v496_v36 = vpack.c.bf16 %v158_v43, %v156_v5  ;;  %v771_v43 = vld [vmem:[%s6070_s1 + $0x460] sm:$0xff] }
 0x1a1   :  { %v1338_v31 = vadd.f32 %v1337_v10, %v1289_v21 }
 0x1a2   :  { %v1438_v35 = vpop.f32.mrf.mxu1  ;;  %1806 = vmatpush.bf16.msra.mxu1 %v496_v36  ;;  %v786_v36 = vld [vmem:[%s6070_s1 + $0x4d8] sm:$0xff] }
 0x1a3   :  { %v1387_v13 = vadd.f32 %v1386_v50, %v1338_v31  ;;  %1486 = vmatmul.bf16.gmra.mxu2 %v4881_v22  ;;  %3005 = vmatmul.msk.bf16.gmra.mxu0 %vm943_vm0, %v4883_v19  ;;  %v56_v50 = vld [vmem:[%s6069_s0 + $0x128] sm:$0xff] }
 0x1a4   :  { %1535 = vmatmul.bf16.gmra.mxu3 %v4885_v60  ;;  %v446_v14 = vpack.c.bf16 %v58_v24, %v56_v50  ;;  %v772_v24 = vld [vmem:[%s6070_s1 + $0x468] sm:$0xff] }
 0x1a5   :  { %1633 = vmatmul.bf16.gmra.mxu1 %v3274_v3  ;;  %v4910_v0 = vadd.f32 %v1435_v30, %v1387_v13  ;;  %v120_v13 = vld [vmem:[%s6069_s0 + $0x328] sm:$0xff]  ;;  %v122_v30 = vld [vmem:[%s6069_s0 + $0x338] sm:$0xff] }
 0x1a6   :  { %v1291_v3 = vpop.f32.mrf.mxu2  ;;  %1660 = vmatpush.bf16.msra.mxu2 %v446_v14  ;;  %v478_v50 = vpack.c.bf16 %v122_v30, %v120_v13  ;;  %v785_v14 = vld [vmem:[%s6070_s1 + $0x4d0] sm:$0xff] }
 0x1a7   :  { %v1292_v38 = vadd.f32 %v1291_v3, %v4450_v56  ;;  %v1340_v39 = vpop.f32.mrf.mxu3  ;;  %v784_v56 = vld [vmem:[%s6070_s1 + $0x4c8] sm:$0xff]  ;;  %v4944_v13 = vpack.c.bf16 %v785_v14, %v772_v24 }
 0x1a8   :  { %v1391_v21 = vpop.f32.mrf.mxu0  ;;  %1758 = vmatpush.bf16.msra.mxu0 %v478_v50 }
 0x1a9   :  { %v1341_v10 = vadd.f32 %v1340_v39, %v1292_v38  ;;  %v4940_v38 = vpack.c.bf16 %v784_v56, %v771_v43  ;;  %v54_v43 = vld [vmem:[%s6069_s0 + $0x118] sm:$0xff] }
 0x1aa   :  { %v1440_v31 = vpop.f32.mrf.mxu1 }
 0x1ab   :  { %v1390_v5 = vadd.f32 %v1389_v62, %v1341_v10  ;;  %v773_v62 = vld [vmem:[%s6070_s1 + $0x470] sm:$0xff]  ;;  %6208 = vst [vmem:[#allocation68_spill] sm:$0xff] %v4940_v38 }
 0x1ac   :  { %v4942_v39 = vpack.c.bf16 %v786_v36, %v773_v62  ;;  %v84_v62 = vld [vmem:[%s6069_s0 + $0x208] sm:$0xff]  ;;  %v86_v36 = vld [vmem:[%s6069_s0 + $0x218] sm:$0xff] }
 0x1ad   :  { %v4937_v34 = vadd.f32 %v1438_v35, %v1390_v5  ;;  %v154_v35 = vld [vmem:[%s6069_s0 + $0x438] sm:$0xff]  ;;  %v460_v24 = vpack.c.bf16 %v86_v36, %v84_v62 }
 0x1ae   :  { %v1293_v12 = vpop.f32.mrf.mxu2  ;;  %6209 = vst [vmem:[#allocation69_spill] sm:$0xff] %v4942_v39 }
 0x1af   :  { %v1294_v3 = vadd.f32 %v1293_v12, %v4483_v33  ;;  %v1342_v61 = vpop.f32.mrf.mxu3  ;;  %v152_v33 = vld [vmem:[%s6069_s0 + $0x428] sm:$0xff]  ;;  %1710 = vmatpush.bf16.msra.mxu3 %v460_v24 }
 0x1b0   :  { %v1394_v10 = vpop.f32.mrf.mxu0  ;;  %v494_v5 = vpack.c.bf16 %v154_v35, %v152_v33  ;;  %v797_v35 = vld [vmem:[%s6070_s1 + $0x530] sm:$0xff] }
 0x1b1   :  { %v1343_v30 = vadd.f32 %v1342_v61, %v1294_v3 }
 0x1b2   :  { %v1443_v19 = vpop.f32.mrf.mxu1  ;;  %1807 = vmatpush.bf16.msra.mxu1 %v494_v5  ;;  %v812_v5 = vld [vmem:[%s6070_s1 + $0x5a8] sm:$0xff] }
 0x1b3   :  { %v1392_v22 = vadd.f32 %v1391_v21, %v1343_v30  ;;  %1491 = vmatmul.bf16.gmra.mxu2 %v4940_v38  ;;  %3006 = vmatmul.msk.bf16.gmra.mxu0 %vm943_vm0, %v4942_v39  ;;  %v52_v21 = vld [vmem:[%s6069_s0 + $0x108] sm:$0xff] }
 0x1b4   :  { %1540 = vmatmul.bf16.gmra.mxu3 %v4944_v13  ;;  %v444_v56 = vpack.c.bf16 %v54_v43, %v52_v21  ;;  %v798_v43 = vld [vmem:[%s6070_s1 + $0x538] sm:$0xff]  ;;  %v148_v38 = vld [vmem:[%s6069_s0 + $0x408] sm:$0xff] }
 0x1b5   :  { %1638 = vmatmul.bf16.gmra.mxu1 %v3406_v63  ;;  %v4969_v50 = vadd.f32 %v1440_v31, %v1392_v22  ;;  %v116_v22 = vld [vmem:[%s6069_s0 + $0x308] sm:$0xff]  ;;  %v118_v31 = vld [vmem:[%s6069_s0 + $0x318] sm:$0xff] }
 0x1b6   :  { %v1296_v63 = vpop.f32.mrf.mxu2  ;;  %1661 = vmatpush.bf16.msra.mxu2 %v444_v56  ;;  %v476_v21 = vpack.c.bf16 %v118_v31, %v116_v22  ;;  %v811_v56 = vld [vmem:[%s6070_s1 + $0x5a0] sm:$0xff] }
 0x1b7   :  { %v1297_v14 = vadd.f32 %v1296_v63, %v4516_v41  ;;  %v1345_v12 = vpop.f32.mrf.mxu3  ;;  %v810_v41 = vld [vmem:[%s6070_s1 + $0x598] sm:$0xff]  ;;  %v5003_v22 = vpack.c.bf16 %v811_v56, %v798_v43 }
 0x1b8   :  { %v1396_v3 = vpop.f32.mrf.mxu0  ;;  %1759 = vmatpush.bf16.msra.mxu0 %v476_v21 }
 0x1b9   :  { %v1346_v61 = vadd.f32 %v1345_v12, %v1297_v14  ;;  %v4999_v14 = vpack.c.bf16 %v810_v41, %v797_v35  ;;  %v208_v35 = vld [vmem:[%s6069_s0 + $0x5e8] sm:$0xff]  ;;  %v210_v41 = vld [vmem:[%s6069_s0 + $0x5f8] sm:$0xff] }
 0x1ba   :  { %v1445_v30 = vpop.f32.mrf.mxu1 }
 0x1bb   :  { %v1395_v33 = vadd.f32 %v1394_v10, %v1346_v61  ;;  %v799_v10 = vld [vmem:[%s6070_s1 + $0x540] sm:$0xff]  ;;  %6210 = vst [vmem:[#allocation70_spill] sm:$0xff] %v4999_v14 }
 0x1bc   :  { %v5001_v12 = vpack.c.bf16 %v812_v5, %v799_v10  ;;  %v522_v10 = vpack.c.bf16 %v210_v41, %v208_v35  ;;  %v824_v41 = vld [vmem:[%s6070_s1 + $0x608] sm:$0xff] }
 0x1bd   :  { %v4996_v62 = vadd.f32 %v1443_v19, %v1395_v33  ;;  %v150_v19 = vld [vmem:[%s6069_s0 + $0x418] sm:$0xff] }
 0x1be   :  { %v1298_v36 = vpop.f32.mrf.mxu2  ;;  %6211 = vst [vmem:[#allocation71_spill] sm:$0xff] %v5001_v12  ;;  %1850 = vmatpush.bf16.msrb.mxu2 %v522_v10 }
 0x1bf   :  { %v1299_v63 = vadd.f32 %v1298_v36, %v4549_v57  ;;  %v1347_v24 = vpop.f32.mrf.mxu3  ;;  %v492_v57 = vpack.c.bf16 %v150_v19, %v148_v38  ;;  %v242_v38 = vld [vmem:[%s6069_s0 + $0x6f8] sm:$0xff]  ;;  %v823_v19 = vld [vmem:[%s6070_s1 + $0x600] sm:$0xff] }
 0x1c0   :  { %v1399_v61 = vpop.f32.mrf.mxu0 }
 0x1c1   :  { %v1348_v31 = vadd.f32 %v1347_v24, %v1299_v63  ;;  %1808 = vmatpush.bf16.msra.mxu1 %v492_v57  ;;  %v838_v57 = vld [vmem:[%s6070_s1 + $0x678] sm:$0xff] }
 0x1c2   :  { %v1448_v39 = vpop.f32.mrf.mxu1 }
 0x1c3   :  { %v1397_v33 = vadd.f32 %v1396_v3, %v1348_v31  ;;  %1496 = vmatmul.bf16.gmra.mxu2 %v4999_v14  ;;  %3007 = vmatmul.msk.bf16.gmra.mxu0 %vm943_vm0, %v5001_v12  ;;  %v240_v3 = vld [vmem:[%s6069_s0 + $0x6e8] sm:$0xff] }
 0x1c4   :  { %1545 = vmatmul.bf16.gmra.mxu3 %v5003_v22  ;;  %v538_v21 = vpack.c.bf16 %v242_v38, %v240_v3  ;;  %v837_v3 = vld [vmem:[%s6070_s1 + $0x670] sm:$0xff] }
 0x1c5   :  { %1643 = vmatmul.bf16.gmra.mxu1 %v3505_v49  ;;  %v5028_v5 = vadd.f32 %v1445_v30, %v1397_v33  ;;  %v272_v30 = vld [vmem:[%s6069_s0 + $0x7e8] sm:$0xff]  ;;  %v274_v33 = vld [vmem:[%s6069_s0 + $0x7f8] sm:$0xff] }
 0x1c6   :  { %v1301_v49 = vpop.f32.mrf.mxu2  ;;  %1899 = vmatpush.bf16.msrb.mxu3 %v538_v21  ;;  %v554_v35 = vpack.c.bf16 %v274_v33, %v272_v30  ;;  %v5062_v30 = vpack.c.bf16 %v837_v3, %v824_v41 }
 0x1c7   :  { %v1302_v43 = vadd.f32 %v1301_v49, %v4582_v28  ;;  %v1350_v56 = vpop.f32.mrf.mxu3  ;;  %v836_v28 = vld [vmem:[%s6070_s1 + $0x668] sm:$0xff] }
 0x1c8   :  { %v1401_v36 = vpop.f32.mrf.mxu0  ;;  %1948 = vmatpush.bf16.msrb.mxu0 %v554_v35 }
 0x1c9   :  { %v1351_v63 = vadd.f32 %v1350_v56, %v1302_v43  ;;  %v5058_v43 = vpack.c.bf16 %v836_v28, %v823_v19  ;;  %v206_v19 = vld [vmem:[%s6069_s0 + $0x5d8] sm:$0xff]  ;;  %v236_v28 = vld [vmem:[%s6069_s0 + $0x6c8] sm:$0xff] }
 0x1ca   :  { %v1450_v24 = vpop.f32.mrf.mxu1 }
 0x1cb   :  { %v1400_v31 = vadd.f32 %v1399_v61, %v1351_v63  ;;  %v825_v61 = vld [vmem:[%s6070_s1 + $0x610] sm:$0xff] }
 0x1cc   :  { %v5060_v56 = vpack.c.bf16 %v838_v57, %v825_v61  ;;  %v238_v57 = vld [vmem:[%s6069_s0 + $0x6d8] sm:$0xff] }
 0x1cd   :  { %v5055_v10 = vadd.f32 %v1448_v39, %v1400_v31  ;;  %v306_v39 = vld [vmem:[%s6069_s0 + $0x8f8] sm:$0xff]  ;;  %v536_v41 = vpack.c.bf16 %v238_v57, %v236_v28 }
 0x1ce   :  { %v1303_v38 = vpop.f32.mrf.mxu2 }
 0x1cf   :  { %v1304_v49 = vadd.f32 %v1303_v38, %v4615_v58  ;;  %v1352_v21 = vpop.f32.mrf.mxu3  ;;  %v304_v58 = vld [vmem:[%s6069_s0 + $0x8e8] sm:$0xff]  ;;  %1900 = vmatpush.bf16.msrb.mxu3 %v536_v41 }
 0x1d0   :  { %v1404_v63 = vpop.f32.mrf.mxu0  ;;  %v570_v31 = vpack.c.bf16 %v306_v39, %v304_v58  ;;  %v268_v39 = vld [vmem:[%s6069_s0 + $0x7c8] sm:$0xff] }
 0x1d1   :  { %v1353_v33 = vadd.f32 %v1352_v21, %v1304_v49  ;;  %v200_v41 = vld [vmem:[%s6069_s0 + $0x5a8] sm:$0xff] }
 0x1d2   :  { %v1453_v12 = vpop.f32.mrf.mxu1  ;;  %1997 = vmatpush.bf16.msrb.mxu1 %v570_v31 }
 0x1d3   :  { %v1402_v14 = vadd.f32 %v1401_v36, %v1353_v33  ;;  %1501 = vmatmul.bf16.gmra.mxu2 %v5058_v43  ;;  %3008 = vmatmul.msk.bf16.gmra.mxu0 %vm943_vm0, %v5060_v56  ;;  %v204_v36 = vld [vmem:[%s6069_s0 + $0x5c8] sm:$0xff] }
 0x1d4   :  { %1550 = vmatmul.bf16.gmra.mxu3 %v5062_v30  ;;  %v520_v61 = vpack.c.bf16 %v206_v19, %v204_v36 }
 0x1d5   :  { %1648 = vmatmul.bf16.gmra.mxu1 %v3571_v20  ;;  %v5087_v35 = vadd.f32 %v1450_v24, %v1402_v14  ;;  %v270_v14 = vld [vmem:[%s6069_s0 + $0x7d8] sm:$0xff] }
 0x1d6   :  { %v1306_v20 = vpop.f32.mrf.mxu2  ;;  %1851 = vmatpush.bf16.msrb.mxu2 %v520_v61  ;;  %v552_v24 = vpack.c.bf16 %v270_v14, %v268_v39 }
 0x1d7   :  { %v1307_v3 = vadd.f32 %v1306_v20, %v4642_v59  ;;  %v1355_v38 = vpop.f32.mrf.mxu3  ;;  %v300_v20 = vld [vmem:[%s6069_s0 + $0x8c8] sm:$0xff] }
 0x1d8   :  { %v1406_v49 = vpop.f32.mrf.mxu0  ;;  %1949 = vmatpush.bf16.msrb.mxu0 %v552_v24 }
 0x1d9   :  { %v1356_v21 = vadd.f32 %v1355_v38, %v1307_v3 }
 0x1da   :  { %v1455_v33 = vpop.f32.mrf.mxu1 }
 0x1db   :  { %v1405_v58 = vadd.f32 %v1404_v63, %v1356_v21 }
 0x1dd   :  { %v5096_v31 = vadd.f32 %v1453_v12, %v1405_v58  ;;  %v302_v12 = vld [vmem:[%s6069_s0 + $0x8d8] sm:$0xff] }
 0x1de   :  { %v1308_v36 = vpop.f32.mrf.mxu2 }
 0x1df   :  { %v1309_v59 = vadd.f32 %v1308_v36, %v4674_v51  ;;  %v1357_v19 = vpop.f32.mrf.mxu3  ;;  %v568_v51 = vpack.c.bf16 %v302_v12, %v300_v20 }
 0x1e0   :  { %v1565_v28 = vpop.f32.mrf.mxu0 }
 0x1e1   :  { %v1358_v61 = vadd.f32 %v1357_v19, %v1309_v59  ;;  %1998 = vmatpush.bf16.msrb.mxu1 %v568_v51  ;;  %v264_v59 = vld [vmem:[%s6069_s0 + $0x7a8] sm:$0xff] }
 0x1e2   :  { %v5099_v57 = vpop.f32.mrf.mxu1 }
 0x1e3   :  { %v1407_v63 = vadd.f32 %v1406_v49, %v1358_v61  ;;  %1662 = vmatmul.bf16.vlgmr.msra.gmra.mxu2 %v3289_v9  ;;  %1760 = vmatmul.bf16.vlgmr.msra.gmra.mxu0 %v3635_v46  ;;  %v202_v9 = vld [vmem:[%s6069_s0 + $0x5b8] sm:$0xff]  ;;  %v232_v46 = vld [vmem:[%s6069_s0 + $0x6a8] sm:$0xff] }
 0x1e4   :  { %1711 = vmatmul.bf16.vlgmr.msra.gmra.mxu3 %v3631_v44  ;;  %v518_v3 = vpack.c.bf16 %v202_v9, %v200_v41  ;;  %v234_v44 = vld [vmem:[%s6069_s0 + $0x6b8] sm:$0xff]  ;;  %v296_v41 = vld [vmem:[%s6069_s0 + $0x8a8] sm:$0xff] }
 0x1e5   :  { %1809 = vmatmul.bf16.vlgmr.msra.gmra.mxu1 %v3633_v45  ;;  %v5123_v38 = vadd.f32 %v1455_v33, %v1407_v63  ;;  %v534_v49 = vpack.c.bf16 %v234_v44, %v232_v46  ;;  %v266_v33 = vld [vmem:[%s6069_s0 + $0x7b8] sm:$0xff]  ;;  %v196_v46 = vld [vmem:[%s6069_s0 + $0x588] sm:$0xff] }
 0x1e6   :  { %v1467_v45 = vpop.f32.mrf.mxu2  ;;  %1852 = vmatpush.bf16.msrb.mxu2 %v518_v3  ;;  %v550_v19 = vpack.c.bf16 %v266_v33, %v264_v59  ;;  %v298_v9 = vld [vmem:[%s6069_s0 + $0x8b8] sm:$0xff]  ;;  %v260_v59 = vld [vmem:[%s6069_s0 + $0x788] sm:$0xff] }
 0x1e7   :  { %v1468_v21 = vadd.f32 %v1467_v45, %v4701_v42  ;;  %v1516_v58 = vpop.f32.mrf.mxu3  ;;  %1901 = vmatpush.bf16.msrb.mxu3 %v534_v49  ;;  %v262_v33 = vld [vmem:[%s6069_s0 + $0x798] sm:$0xff] }
 0x1e8   :  { %v1567_v39 = vpop.f32.mrf.mxu0  ;;  %1950 = vmatpush.bf16.msrb.mxu0 %v550_v19  ;;  %v548_v19 = vpack.c.bf16 %v262_v33, %v260_v59 }
 0x1e9   :  { %v1517_v14 = vadd.f32 %v1516_v58, %v1468_v21 }
 0x1ea   :  { %v5126_v24 = vpop.f32.mrf.mxu1 }
 0x1eb   :  { %v5128_v36 = vadd.f32 %v1565_v28, %v1517_v14 }
 0x1ec   :  { %1951 = vmatpush.bf16.msrb.mxu0 %v548_v19 }
 0x1ee   :  { %v1469_v61 = vpop.f32.mrf.mxu2 }
 0x1ef   :  { %v1470_v42 = vadd.f32 %v1469_v61, %v4733_v1  ;;  %v1518_v63 = vpop.f32.mrf.mxu3  ;;  %v566_v1 = vpack.c.bf16 %v298_v9, %v296_v41  ;;  %v292_v9 = vld [vmem:[%s6069_s0 + $0x888] sm:$0xff] }
 0x1f0   :  { %v1570_v20 = vpop.f32.mrf.mxu0 }
 0x1f1   :  { %v1519_v12 = vadd.f32 %v1518_v63, %v1470_v42  ;;  %1999 = vmatpush.bf16.msrb.mxu1 %v566_v1  ;;  %v294_v1 = vld [vmem:[%s6069_s0 + $0x898] sm:$0xff] }
 0x1f2   :  { %v5137_v51 = vpop.f32.mrf.mxu1 }
 0x1f3   :  { %v5139_v28 = vadd.f32 %v1567_v39, %v1519_v12  ;;  %1667 = vmatmul.bf16.gmra.mxu2 %v3421_v7  ;;  %1765 = vmatmul.bf16.gmra.mxu0 %v3695_v18  ;;  %v198_v7 = vld [vmem:[%s6069_s0 + $0x598] sm:$0xff]  ;;  %v228_v18 = vld [vmem:[%s6069_s0 + $0x688] sm:$0xff] }
 0x1f4   :  { %1716 = vmatmul.bf16.gmra.mxu3 %v3691_v16  ;;  %v516_v3 = vpack.c.bf16 %v198_v7, %v196_v46  ;;  %v230_v16 = vld [vmem:[%s6069_s0 + $0x698] sm:$0xff]  ;;  %v192_v46 = vld [vmem:[%s6069_s0 + $0x568] sm:$0xff] }
 0x1f5   :  { %1814 = vmatmul.bf16.gmra.mxu1 %v3693_v17  ;;  %v532_v17 = vpack.c.bf16 %v230_v16, %v228_v18 }
 0x1f6   :  { %v1472_v44 = vpop.f32.mrf.mxu2  ;;  %1853 = vmatpush.bf16.msrb.mxu2 %v516_v3 }
 0x1f7   :  { %v1473_v45 = vadd.f32 %v1472_v44, %v4760_v32  ;;  %v1521_v49 = vpop.f32.mrf.mxu3  ;;  %1902 = vmatpush.bf16.msrb.mxu3 %v532_v17 }
 0x1f8   :  { %v1572_v21 = vpop.f32.mrf.mxu0 }
 0x1f9   :  { %v1522_v58 = vadd.f32 %v1521_v49, %v1473_v45 }
 0x1fa   :  { %v5164_v39 = vpop.f32.mrf.mxu1 }
 0x1fb   :  { %v5166_v14 = vadd.f32 %v1570_v20, %v1522_v58  ;;  %v258_v58 = vld [vmem:[%s6069_s0 + $0x778] sm:$0xff] }
 0x1fe   :  { %v1474_v61 = vpop.f32.mrf.mxu2 }
 0x1ff   :  { %v1475_v32 = vadd.f32 %v1474_v61, %v4792_v15  ;;  %v1523_v42 = vpop.f32.mrf.mxu3  ;;  %v564_v15 = vpack.c.bf16 %v294_v1, %v292_v9  ;;  %v290_v9 = vld [vmem:[%s6069_s0 + $0x878] sm:$0xff]  ;;  %v188_v1 = vld [vmem:[%s6069_s0 + $0x548] sm:$0xff] }
 0x200   :  { %v1575_v63 = vpop.f32.mrf.mxu0 }
 0x201   :  { %v1524_v12 = vadd.f32 %v1523_v42, %v1475_v32  ;;  %2000 = vmatpush.bf16.msrb.mxu1 %v564_v15 }
 0x202   :  { %v5175_v41 = vpop.f32.mrf.mxu1 }
 0x203   :  { %v5177_v20 = vadd.f32 %v1572_v21, %v1524_v12  ;;  %1672 = vmatmul.bf16.gmra.mxu2 %v3511_v52  ;;  %1770 = vmatmul.bf16.gmra.mxu0 %v3755_v54  ;;  %v194_v52 = vld [vmem:[%s6069_s0 + $0x578] sm:$0xff]  ;;  %v224_v54 = vld [vmem:[%s6069_s0 + $0x668] sm:$0xff] }
 0x204   :  { %1721 = vmatmul.bf16.gmra.mxu3 %v3751_v48  ;;  %v514_v7 = vpack.c.bf16 %v194_v52, %v192_v46  ;;  %v226_v48 = vld [vmem:[%s6069_s0 + $0x678] sm:$0xff]  ;;  %v256_v21 = vld [vmem:[%s6069_s0 + $0x768] sm:$0xff] }
 0x205   :  { %1819 = vmatmul.bf16.gmra.mxu1 %v3753_v53  ;;  %v530_v53 = vpack.c.bf16 %v226_v48, %v224_v54  ;;  %v546_v59 = vpack.c.bf16 %v258_v58, %v256_v21  ;;  %v288_v12 = vld [vmem:[%s6069_s0 + $0x868] sm:$0xff] }
 0x206   :  { %v1477_v18 = vpop.f32.mrf.mxu2  ;;  %1854 = vmatpush.bf16.msrb.mxu2 %v514_v7 }
 0x207   :  { %v1478_v3 = vadd.f32 %v1477_v18, %v4819_v47  ;;  %v1526_v16 = vpop.f32.mrf.mxu3  ;;  %1903 = vmatpush.bf16.msrb.mxu3 %v530_v53  ;;  %1952 = vmatpush.bf16.msrb.mxu0 %v546_v59 }
 0x208   :  { %v1577_v44 = vpop.f32.mrf.mxu0 }
 0x209   :  { %v1527_v17 = vadd.f32 %v1526_v16, %v1478_v3  ;;  %v252_v3 = vld [vmem:[%s6069_s0 + $0x748] sm:$0xff]  ;;  %v254_v16 = vld [vmem:[%s6069_s0 + $0x758] sm:$0xff] }
 0x20a   :  { %v5202_v45 = vpop.f32.mrf.mxu1 }
 0x20b   :  { %v5204_v49 = vadd.f32 %v1575_v63, %v1527_v17 }
 0x20e   :  { %v1479_v33 = vpop.f32.mrf.mxu2 }
 0x20f   :  { %v1480_v47 = vadd.f32 %v1479_v33, %v4851_v4  ;;  %v1528_v19 = vpop.f32.mrf.mxu3  ;;  %v562_v4 = vpack.c.bf16 %v290_v9, %v288_v12  ;;  %v286_v12 = vld [vmem:[%s6069_s0 + $0x858] sm:$0xff]  ;;  %v6215_v9 = vld [vmem:[#allocation14_spill] sm:$0xff] }
 0x210   :  { %v1580_v61 = vpop.f32.mrf.mxu0 }
 0x211   :  { %v1529_v32 = vadd.f32 %v1528_v19, %v1480_v47  ;;  %2001 = vmatpush.bf16.msrb.mxu1 %v562_v4  ;;  %v6212_v19 = vld [vmem:[#allocation5_spill] sm:$0xff] }
 0x212   :  { %v5213_v42 = vpop.f32.mrf.mxu1 }
 0x213   :  { %v5215_v63 = vadd.f32 %v1577_v44, %v1529_v32  ;;  %1677 = vmatmul.bf16.gmra.mxu2 %v3577_v23  ;;  %1775 = vmatmul.bf16.gmra.mxu0 %v3809_v27  ;;  %v190_v23 = vld [vmem:[%s6069_s0 + $0x558] sm:$0xff]  ;;  %v220_v27 = vld [vmem:[%s6069_s0 + $0x648] sm:$0xff]  ;;  %v544_v44 = vpack.c.bf16 %v254_v16, %v252_v3 }
 0x214   :  { %1726 = vmatmul.bf16.gmra.mxu3 %v3805_v25  ;;  %v512_v15 = vpack.c.bf16 %v190_v23, %v188_v1  ;;  %v222_v25 = vld [vmem:[%s6069_s0 + $0x658] sm:$0xff]  ;;  %v284_v32 = vld [vmem:[%s6069_s0 + $0x848] sm:$0xff] }
 0x215   :  { %1824 = vmatmul.bf16.gmra.mxu1 %v3807_v26  ;;  %v528_v26 = vpack.c.bf16 %v222_v25, %v220_v27  ;;  %1953 = vmatpush.bf16.msrb.mxu0 %v544_v44  ;;  %v560_v4 = vpack.c.bf16 %v286_v12, %v284_v32  ;;  %v184_v1 = vld [vmem:[%s6069_s0 + $0x528] sm:$0xff]  ;;  %v186_v23 = vld [vmem:[%s6069_s0 + $0x538] sm:$0xff] }
 0x216   :  { %v1482_v46 = vpop.f32.mrf.mxu2  ;;  %1855 = vmatpush.bf16.msrb.mxu2 %v512_v15  ;;  %v216_v27 = vld [vmem:[%s6069_s0 + $0x628] sm:$0xff]  ;;  %v510_v15 = vpack.c.bf16 %v186_v23, %v184_v1  ;;  %v218_v25 = vld [vmem:[%s6069_s0 + $0x638] sm:$0xff] }
 0x217   :  { %v1483_v52 = vadd.f32 %v1482_v46, %v4878_v40  ;;  %v1531_v54 = vpop.f32.mrf.mxu3  ;;  %1904 = vmatpush.bf16.msrb.mxu3 %v528_v26  ;;  %2002 = vmatpush.bf16.msrb.mxu1 %v560_v4  ;;  %v526_v26 = vpack.c.bf16 %v218_v25, %v216_v27  ;;  %v248_v44 = vld [vmem:[%s6069_s0 + $0x728] sm:$0xff]  ;;  %v282_v4 = vld [vmem:[%s6069_s0 + $0x838] sm:$0xff] }
 0x218   :  { %v1582_v7 = vpop.f32.mrf.mxu0  ;;  %v6216_v12 = vld [vmem:[#allocation6_spill] sm:$0xff] }
 0x219   :  { %v1532_v48 = vadd.f32 %v1531_v54, %v1483_v52  ;;  %v6219_v1 = vld [vmem:[#allocation18_spill] sm:$0xff] }
 0x21a   :  { %v5240_v18 = vpop.f32.mrf.mxu1  ;;  %1856 = vmatpush.bf16.msrb.mxu2 %v510_v15  ;;  %v180_v27 = vld [vmem:[%s6069_s0 + $0x508] sm:$0xff]  ;;  %v182_v15 = vld [vmem:[%s6069_s0 + $0x518] sm:$0xff] }
 0x21b   :  { %v5242_v53 = vadd.f32 %v1580_v61, %v1532_v48  ;;  %v6213_v61 = vld [vmem:[#allocation15_spill] sm:$0xff]  ;;  %1905 = vmatpush.bf16.msrb.mxu3 %v526_v26  ;;  %v212_v25 = vld [vmem:[%s6069_s0 + $0x608] sm:$0xff]  ;;  %v214_v26 = vld [vmem:[%s6069_s0 + $0x618] sm:$0xff] }
 0x21e   :  { %v1484_v17 = vpop.f32.mrf.mxu2 }
 0x21f   :  { %v1485_v40 = vadd.f32 %v1484_v17, %v4910_v0  ;;  %v1533_v21 = vpop.f32.mrf.mxu3  ;;  %v6214_v0 = vld [vmem:[#allocation13_spill] sm:$0xff]  ;;  %v250_v17 = vld [vmem:[%s6069_s0 + $0x738] sm:$0xff] }
 0x220   :  { %v1585_v58 = vpop.f32.mrf.mxu0 }
 0x221   :  { %v1534_v59 = vadd.f32 %v1533_v21, %v1485_v40  ;;  %v542_v40 = vpack.c.bf16 %v250_v17, %v248_v44 }
 0x222   :  { %v5251_v33 = vpop.f32.mrf.mxu1 }
 0x223   :  { %v5253_v47 = vadd.f32 %v1582_v7, %v1534_v59  ;;  %1682 = vmatmul.bf16.gmra.mxu2 %v6212_v19  ;;  %1780 = vmatmul.bf16.gmra.mxu0 %v6213_v61 }
 0x224   :  { %1731 = vmatmul.bf16.gmra.mxu3 %v6214_v0  ;;  %1954 = vmatpush.bf16.msrb.mxu0 %v542_v40  ;;  %v6217_v0 = vld [vmem:[#allocation19_spill] sm:$0xff] }
 0x225   :  { %1829 = vmatmul.bf16.gmra.mxu1 %v6215_v9  ;;  %v280_v9 = vld [vmem:[%s6069_s0 + $0x828] sm:$0xff] }
 0x226   :  { %v1487_v46 = vpop.f32.mrf.mxu2  ;;  %v558_v23 = vpack.c.bf16 %v282_v4, %v280_v9 }
 0x227   :  { %v1488_v52 = vadd.f32 %v1487_v46, %v4937_v34  ;;  %v1536_v54 = vpop.f32.mrf.mxu3  ;;  %v508_v46 = vpack.c.bf16 %v182_v15, %v180_v27  ;;  %v6220_v27 = vld [vmem:[#allocation7_spill] sm:$0xff] }
 0x228   :  { %v1587_v7 = vpop.f32.mrf.mxu0  ;;  %2003 = vmatpush.bf16.msrb.mxu1 %v558_v23  ;;  %v6221_v15 = vld [vmem:[#allocation23_spill] sm:$0xff] }
 0x229   :  { %v1537_v48 = vadd.f32 %v1536_v54, %v1488_v52  ;;  %v524_v54 = vpack.c.bf16 %v214_v26, %v212_v25  ;;  %1857 = vmatpush.bf16.msrb.mxu2 %v508_v46  ;;  %v6222_v25 = vld [vmem:[#allocation21_spill] sm:$0xff]  ;;  %v6223_v46 = vld [vmem:[#allocation22_spill] sm:$0xff] }
 0x22a   :  { %v5278_v3 = vpop.f32.mrf.mxu1  ;;  %v336_v26 = vld [vmem:[%s6069_s0 + $0x9e8] sm:$0xff] }
 0x22b   :  { %v5280_v16 = vadd.f32 %v1585_v58, %v1537_v48  ;;  %1906 = vmatpush.bf16.msrb.mxu3 %v524_v54  ;;  %v368_v54 = vld [vmem:[%s6069_s0 + $0xae8] sm:$0xff] }
 0x22e   :  { %v1489_v21 = vpop.f32.mrf.mxu2 }
 0x22f   :  { %v1490_v34 = vadd.f32 %v1489_v21, %v4969_v50  ;;  %v1538_v59 = vpop.f32.mrf.mxu3  ;;  %v6218_v50 = vld [vmem:[#allocation17_spill] sm:$0xff] }
 0x230   :  { %v1590_v19 = vpop.f32.mrf.mxu0 }
 0x231   :  { %v1539_v61 = vadd.f32 %v1538_v59, %v1490_v34  ;;  %v244_v34 = vld [vmem:[%s6069_s0 + $0x708] sm:$0xff]  ;;  %v246_v59 = vld [vmem:[%s6069_s0 + $0x718] sm:$0xff] }
 0x232   :  { %v5289_v32 = vpop.f32.mrf.mxu1 }
 0x233   :  { %v5291_v58 = vadd.f32 %v1587_v7, %v1539_v61  ;;  %1687 = vmatmul.bf16.gmra.mxu2 %v6216_v12  ;;  %1785 = vmatmul.bf16.gmra.mxu0 %v6217_v0  ;;  %v540_v61 = vpack.c.bf16 %v246_v59, %v244_v34 }
 0x234   :  { %1736 = vmatmul.bf16.gmra.mxu3 %v6218_v50 }
 0x235   :  { %1834 = vmatmul.bf16.gmra.mxu1 %v6219_v1  ;;  %1955 = vmatpush.bf16.msrb.mxu0 %v540_v61  ;;  %v278_v1 = vld [vmem:[%s6069_s0 + $0x818] sm:$0xff] }
 0x236   :  { %v1492_v52 = vpop.f32.mrf.mxu2 }
 0x237   :  { %v1493_v7 = vadd.f32 %v1492_v52, %v4996_v62  ;;  %v1541_v48 = vpop.f32.mrf.mxu3  ;;  %v338_v52 = vld [vmem:[%s6069_s0 + $0x9f8] sm:$0xff] }
 0x238   :  { %v1592_v44 = vpop.f32.mrf.mxu0 }
 0x239   :  { %v1542_v17 = vadd.f32 %v1541_v48, %v1493_v7  ;;  %v586_v7 = vpack.c.bf16 %v338_v52, %v336_v26  ;;  %v370_v48 = vld [vmem:[%s6069_s0 + $0xaf8] sm:$0xff]  ;;  %v6226_v52 = vld [vmem:[#allocation27_spill] sm:$0xff] }
 0x23a   :  { %v5316_v40 = vpop.f32.mrf.mxu1  ;;  %v6225_v26 = vld [vmem:[#allocation8_spill] sm:$0xff] }
 0x23b   :  { %v5318_v21 = vadd.f32 %v1590_v19, %v1542_v17  ;;  %v276_v19 = vld [vmem:[%s6069_s0 + $0x808] sm:$0xff]  ;;  %v602_v17 = vpack.c.bf16 %v370_v48, %v368_v54  ;;  %2046 = vmatpush.bf16.msra.mxu2 %v586_v7  ;;  %v426_v7 = vld [vmem:[%s6069_s0 + $0xcb8] sm:$0xff] }
 0x23c   :  { %v424_v54 = vld [vmem:[%s6069_s0 + $0xca8] sm:$0xff] }
 0x23d   :  { %2095 = vmatpush.bf16.msra.mxu3 %v602_v17  ;;  %v6228_v48 = vld [vmem:[#allocation26_spill] sm:$0xff] }
 0x23e   :  { %v1494_v12 = vpop.f32.mrf.mxu2  ;;  %v332_v17 = vld [vmem:[%s6069_s0 + $0x9c8] sm:$0xff] }
 0x23f   :  { %v1495_v62 = vadd.f32 %v1494_v12, %v5028_v5  ;;  %v1543_v0 = vpop.f32.mrf.mxu3  ;;  %v556_v5 = vpack.c.bf16 %v278_v1, %v276_v19  ;;  %v402_v19 = vld [vmem:[%s6069_s0 + $0xbf8] sm:$0xff] }
 0x240   :  { %v1595_v9 = vpop.f32.mrf.mxu0 }
 0x241   :  { %v1544_v4 = vadd.f32 %v1543_v0, %v1495_v62  ;;  %2004 = vmatpush.bf16.msrb.mxu1 %v556_v5 }
 0x242   :  { %v5327_v50 = vpop.f32.mrf.mxu1 }
 0x243   :  { %v5335_v23 = vadd.f32 %v1592_v44, %v1544_v4  ;;  %1692 = vmatmul.bf16.gmra.mxu2 %v6220_v27  ;;  %1790 = vmatmul.bf16.gmra.mxu0 %v6221_v15  ;;  %v400_v4 = vld [vmem:[%s6069_s0 + $0xbe8] sm:$0xff] }
 0x244   :  { %1741 = vmatmul.bf16.gmra.mxu3 %v6222_v25  ;;  %v618_v1 = vpack.c.bf16 %v402_v19, %v400_v4 }
 0x245   :  { %1839 = vmatmul.bf16.gmra.mxu1 %v6223_v46 }
 0x246   :  { %v1497_v44 = vpop.f32.mrf.mxu2  ;;  %2144 = vmatpush.bf16.msra.mxu0 %v618_v1 }
 0x247   :  { %v1498_v34 = vadd.f32 %v1497_v44, %v5055_v10  ;;  %v1546_v59 = vpop.f32.mrf.mxu3  ;;  %v630_v44 = vpack.c.bf16 %v426_v7, %v424_v54  ;;  %v398_v54 = vld [vmem:[%s6069_s0 + $0xbd8] sm:$0xff] }
 0x248   :  { %v1597_v61 = vpop.f32.mrf.mxu0 }
 0x249   :  { %v1547_v12 = vadd.f32 %v1546_v59, %v1498_v34  ;;  %v334_v34 = vld [vmem:[%s6069_s0 + $0x9d8] sm:$0xff]  ;;  %v364_v59 = vld [vmem:[%s6069_s0 + $0xac8] sm:$0xff]  ;;  %2195 = vmatpush.bf16.msra.mxu1 %v630_v44 }
 0x24a   :  { %v5354_v62 = vpop.f32.mrf.mxu1 }
 0x24b   :  { %v5356_v0 = vadd.f32 %v1595_v9, %v1547_v12  ;;  %v366_v12 = vld [vmem:[%s6069_s0 + $0xad8] sm:$0xff] }
 0x24c   :  { %v600_v19 = vpack.c.bf16 %v366_v12, %v364_v59  ;;  %v6232_v12 = vld [vmem:[#allocation29_spill] sm:$0xff] }
 0x24e   :  { %v1499_v27 = vpop.f32.mrf.mxu2  ;;  %2096 = vmatpush.bf16.msra.mxu3 %v600_v19  ;;  %v328_v19 = vld [vmem:[%s6069_s0 + $0x9a8] sm:$0xff] }
 0x24f   :  { %v1500_v10 = vadd.f32 %v1499_v27, %v5087_v35  ;;  %v1548_v15 = vpop.f32.mrf.mxu3  ;;  %v6227_v35 = vld [vmem:[#allocation25_spill] sm:$0xff] }
 0x250   :  { %v1600_v5 = vpop.f32.mrf.mxu0 }
 0x251   :  { %v1549_v25 = vadd.f32 %v1548_v15, %v1500_v10 }
 0x252   :  { %v5365_v46 = vpop.f32.mrf.mxu1 }
 0x253   :  { %v5367_v9 = vadd.f32 %v1597_v61, %v1549_v25  ;;  %1697 = vmatmul.bf16.gmra.mxu2 %v6225_v26  ;;  %1795 = vmatmul.bf16.gmra.mxu0 %v6226_v52  ;;  %v584_v61 = vpack.c.bf16 %v334_v34, %v332_v17  ;;  %v396_v52 = vld [vmem:[%s6069_s0 + $0xbc8] sm:$0xff] }
 0x254   :  { %1746 = vmatmul.bf16.gmra.mxu3 %v6227_v35  ;;  %v616_v7 = vpack.c.bf16 %v398_v54, %v396_v52  ;;  %v422_v52 = vld [vmem:[%s6069_s0 + $0xc98] sm:$0xff] }
 0x255   :  { %6224 = vst [vmem:[#allocation5_spill] sm:$0xff] %v5367_v9  ;;  %1844 = vmatmul.bf16.gmra.mxu1 %v6228_v48  ;;  %2047 = vmatpush.bf16.msra.mxu2 %v584_v61  ;;  %v6231_v61 = vld [vmem:[#allocation31_spill] sm:$0xff] }
 0x256   :  { %v1502_v4 = vpop.f32.mrf.mxu2  ;;  %2145 = vmatpush.bf16.msra.mxu0 %v616_v7 }
 0x257   :  { %v1503_v1 = vadd.f32 %v1502_v4, %v5096_v31  ;;  %v1551_v27 = vpop.f32.mrf.mxu3  ;;  %v6233_v4 = vld [vmem:[#allocation30_spill] sm:$0xff] }
 0x258   :  { %v1602_v10 = vpop.f32.mrf.mxu0 }
 0x259   :  { %v1552_v15 = vadd.f32 %v1551_v27, %v1503_v1  ;;  %v360_v1 = vld [vmem:[%s6069_s0 + $0xaa8] sm:$0xff] }
 0x25a   :  { %v5392_v25 = vpop.f32.mrf.mxu1 }
 0x25b   :  { %v5394_v26 = vadd.f32 %v1600_v5, %v1552_v15  ;;  %v6230_v5 = vld [vmem:[#allocation9_spill] sm:$0xff]  ;;  %v420_v15 = vld [vmem:[%s6069_s0 + $0xc88] sm:$0xff] }
 0x25e   :  { %v1504_v35 = vpop.f32.mrf.mxu2 }
 0x25f   :  { %v1505_v31 = vadd.f32 %v1504_v35, %v5123_v38  ;;  %v1553_v48 = vpop.f32.mrf.mxu3  ;;  %v330_v38 = vld [vmem:[%s6069_s0 + $0x9b8] sm:$0xff]  ;;  %v628_v35 = vpack.c.bf16 %v422_v52, %v420_v15 }
 0x260   :  { %v1761_v44 = vpop.f32.mrf.mxu0  ;;  %v582_v27 = vpack.c.bf16 %v330_v38, %v328_v19  ;;  %v394_v19 = vld [vmem:[%s6069_s0 + $0xbb8] sm:$0xff] }
 0x261   :  { %v1554_v17 = vadd.f32 %v1553_v48, %v1505_v31  ;;  %2196 = vmatpush.bf16.msra.mxu1 %v628_v35  ;;  %v6235_v35 = vld [vmem:[#allocation35_spill] sm:$0xff] }
 0x262   :  { %v1810_v34 = vpop.f32.mrf.mxu1  ;;  %2048 = vmatpush.bf16.msra.mxu2 %v582_v27 }
 0x263   :  { %v5403_v59 = vadd.f32 %v1602_v10, %v1554_v17  ;;  %1858 = vmatmul.bf16.vlgmr.msrb.gmra.mxu2 %v6230_v5  ;;  %1956 = vmatmul.bf16.vlgmr.msrb.gmra.mxu0 %v6231_v61  ;;  %v362_v10 = vld [vmem:[%s6069_s0 + $0xab8] sm:$0xff] }
 0x264   :  { %1907 = vmatmul.bf16.vlgmr.msrb.gmra.mxu3 %v6232_v12  ;;  %v598_v7 = vpack.c.bf16 %v362_v10, %v360_v1 }
 0x265   :  { %6229 = vst [vmem:[#allocation15_spill] sm:$0xff] %v5403_v59  ;;  %2005 = vmatmul.bf16.vlgmr.msrb.gmra.mxu1 %v6233_v4  ;;  %v392_v4 = vld [vmem:[%s6069_s0 + $0xba8] sm:$0xff] }
 0x266   :  { %v1663_v54 = vpop.f32.mrf.mxu2  ;;  %2097 = vmatpush.bf16.msra.mxu3 %v598_v7  ;;  %v614_v38 = vpack.c.bf16 %v394_v19, %v392_v4  ;;  %v6234_v7 = vld [vmem:[#allocation10_spill] sm:$0xff] }
 0x267   :  { %v1664_v31 = vadd.f32 %v1663_v54, %v5099_v57  ;;  %v1712_v48 = vpop.f32.mrf.mxu3 }
 0x268   :  { %v1763_v17 = vpop.f32.mrf.mxu0  ;;  %2146 = vmatpush.bf16.msra.mxu0 %v614_v38 }
 0x269   :  { %v1713_v5 = vadd.f32 %v1712_v48, %v1664_v31  ;;  %v6236_v31 = vld [vmem:[#allocation33_spill] sm:$0xff]  ;;  %v6237_v48 = vld [vmem:[#allocation34_spill] sm:$0xff] }
 0x26a   :  { %v1812_v61 = vpop.f32.mrf.mxu1 }
 0x26b   :  { %v1762_v12 = vadd.f32 %v1761_v44, %v1713_v5 }
 0x26d   :  { %v5434_v1 = vadd.f32 %v1810_v34, %v1762_v12  ;;  %v324_v34 = vld [vmem:[%s6069_s0 + $0x988] sm:$0xff]  ;;  %v358_v12 = vld [vmem:[%s6069_s0 + $0xa98] sm:$0xff] }
 0x26e   :  { %v1665_v57 = vpop.f32.mrf.mxu2 }
 0x26f   :  { %v1666_v27 = vadd.f32 %v1665_v57, %v5126_v24  ;;  %v1714_v10 = vpop.f32.mrf.mxu3  ;;  %v326_v24 = vld [vmem:[%s6069_s0 + $0x998] sm:$0xff] }
 0x270   :  { %v1766_v15 = vpop.f32.mrf.mxu0  ;;  %v580_v5 = vpack.c.bf16 %v326_v24, %v324_v34 }
 0x271   :  { %v1715_v52 = vadd.f32 %v1714_v10, %v1666_v27 }
 0x272   :  { %v1815_v54 = vpop.f32.mrf.mxu1  ;;  %2049 = vmatpush.bf16.msra.mxu2 %v580_v5 }
 0x273   :  { %v1764_v44 = vadd.f32 %v1763_v17, %v1715_v52  ;;  %1863 = vmatmul.bf16.gmra.mxu2 %v6234_v7  ;;  %1961 = vmatmul.bf16.gmra.mxu0 %v6235_v35  ;;  %v356_v17 = vld [vmem:[%s6069_s0 + $0xa88] sm:$0xff] }
 0x274   :  { %1912 = vmatmul.bf16.gmra.mxu3 %v6236_v31  ;;  %v596_v38 = vpack.c.bf16 %v358_v12, %v356_v17  ;;  %v416_v31 = vld [vmem:[%s6069_s0 + $0xc68] sm:$0xff] }
 0x275   :  { %2010 = vmatmul.bf16.gmra.mxu1 %v6237_v48  ;;  %v5453_v4 = vadd.f32 %v1812_v61, %v1764_v44  ;;  %v418_v61 = vld [vmem:[%s6069_s0 + $0xc78] sm:$0xff]  ;;  %v388_v44 = vld [vmem:[%s6069_s0 + $0xb88] sm:$0xff] }
 0x276   :  { %v1668_v19 = vpop.f32.mrf.mxu2  ;;  %2098 = vmatpush.bf16.msra.mxu3 %v596_v38  ;;  %v390_v48 = vld [vmem:[%s6069_s0 + $0xb98] sm:$0xff] }
 0x277   :  { %v1669_v57 = vadd.f32 %v1668_v19, %v5137_v51  ;;  %v1717_v27 = vpop.f32.mrf.mxu3  ;;  %v626_v51 = vpack.c.bf16 %v418_v61, %v416_v31  ;;  %v612_v34 = vpack.c.bf16 %v390_v48, %v388_v44  ;;  %v6240_v31 = vld [vmem:[#allocation37_spill] sm:$0xff]  ;;  %v6241_v61 = vld [vmem:[#allocation38_spill] sm:$0xff]  ;;  %v354_v44 = vld [vmem:[%s6069_s0 + $0xa78] sm:$0xff] }
 0x278   :  { %v1768_v10 = vpop.f32.mrf.mxu0 }
 0x279   :  { %v1718_v52 = vadd.f32 %v1717_v27, %v1669_v57  ;;  %2197 = vmatpush.bf16.msra.mxu1 %v626_v51  ;;  %2147 = vmatpush.bf16.msra.mxu0 %v612_v34  ;;  %v6238_v27 = vld [vmem:[#allocation11_spill] sm:$0xff] }
 0x27a   :  { %v1817_v7 = vpop.f32.mrf.mxu1 }
 0x27b   :  { %v1767_v35 = vadd.f32 %v1766_v15, %v1718_v52  ;;  %v6239_v52 = vld [vmem:[#allocation39_spill] sm:$0xff] }
 0x27d   :  { %v5468_v24 = vadd.f32 %v1815_v54, %v1767_v35  ;;  %v320_v54 = vld [vmem:[%s6069_s0 + $0x968] sm:$0xff] }
 0x27e   :  { %v1670_v15 = vpop.f32.mrf.mxu2 }
 0x27f   :  { %v1671_v17 = vadd.f32 %v1670_v15, %v5164_v39  ;;  %v1719_v5 = vpop.f32.mrf.mxu3  ;;  %v322_v39 = vld [vmem:[%s6069_s0 + $0x978] sm:$0xff] }
 0x280   :  { %v1771_v12 = vpop.f32.mrf.mxu0  ;;  %v578_v35 = vpack.c.bf16 %v322_v39, %v320_v54 }
 0x281   :  { %v1720_v19 = vadd.f32 %v1719_v5, %v1671_v17 }
 0x282   :  { %v1820_v38 = vpop.f32.mrf.mxu1  ;;  %2050 = vmatpush.bf16.msra.mxu2 %v578_v35 }
 0x283   :  { %v1769_v57 = vadd.f32 %v1768_v10, %v1720_v19  ;;  %1868 = vmatmul.bf16.gmra.mxu2 %v6238_v27  ;;  %1966 = vmatmul.bf16.gmra.mxu0 %v6239_v52  ;;  %v352_v10 = vld [vmem:[%s6069_s0 + $0xa68] sm:$0xff] }
 0x284   :  { %1917 = vmatmul.bf16.gmra.mxu3 %v6240_v31  ;;  %v594_v34 = vpack.c.bf16 %v354_v44, %v352_v10  ;;  %v384_v31 = vld [vmem:[%s6069_s0 + $0xb68] sm:$0xff] }
 0x285   :  { %2015 = vmatmul.bf16.gmra.mxu1 %v6241_v61  ;;  %v5487_v51 = vadd.f32 %v1817_v7, %v1769_v57  ;;  %v386_v7 = vld [vmem:[%s6069_s0 + $0xb78] sm:$0xff] }
 0x286   :  { %v1673_v48 = vpop.f32.mrf.mxu2  ;;  %2099 = vmatpush.bf16.msra.mxu3 %v594_v34  ;;  %v610_v57 = vpack.c.bf16 %v386_v7, %v384_v31  ;;  %v6243_v34 = vld [vmem:[#allocation43_spill] sm:$0xff]  ;;  %v348_v31 = vld [vmem:[%s6069_s0 + $0xa48] sm:$0xff] }
 0x287   :  { %v1674_v15 = vadd.f32 %v1673_v48, %v5175_v41  ;;  %v1722_v17 = vpop.f32.mrf.mxu3  ;;  %v6242_v48 = vld [vmem:[#allocation12_spill] sm:$0xff] }
 0x288   :  { %v1773_v5 = vpop.f32.mrf.mxu0  ;;  %2148 = vmatpush.bf16.msra.mxu0 %v610_v57  ;;  %v350_v57 = vld [vmem:[%s6069_s0 + $0xa58] sm:$0xff] }
 0x289   :  { %v1723_v19 = vadd.f32 %v1722_v17, %v1674_v15  ;;  %v412_v15 = vld [vmem:[%s6069_s0 + $0xc48] sm:$0xff]  ;;  %v6244_v17 = vld [vmem:[#allocation41_spill] sm:$0xff] }
 0x28a   :  { %v1822_v27 = vpop.f32.mrf.mxu1 }
 0x28b   :  { %v1772_v52 = vadd.f32 %v1771_v12, %v1723_v19 }
 0x28d   :  { %v5496_v61 = vadd.f32 %v1820_v38, %v1772_v52  ;;  %v414_v38 = vld [vmem:[%s6069_s0 + $0xc58] sm:$0xff] }
 0x28e   :  { %v1675_v54 = vpop.f32.mrf.mxu2  ;;  %v624_v19 = vpack.c.bf16 %v414_v38, %v412_v15  ;;  %v318_v52 = vld [vmem:[%s6069_s0 + $0x958] sm:$0xff] }
 0x28f   :  { %v1676_v41 = vadd.f32 %v1675_v54, %v5202_v45  ;;  %v1724_v39 = vpop.f32.mrf.mxu3  ;;  %v6245_v45 = vld [vmem:[#allocation42_spill] sm:$0xff] }
 0x290   :  { %v1776_v10 = vpop.f32.mrf.mxu0  ;;  %2198 = vmatpush.bf16.msra.mxu1 %v624_v19 }
 0x291   :  { %v1725_v35 = vadd.f32 %v1724_v39, %v1676_v41  ;;  %v592_v39 = vpack.c.bf16 %v350_v57, %v348_v31 }
 0x292   :  { %v1825_v44 = vpop.f32.mrf.mxu1 }
 0x293   :  { %v1774_v12 = vadd.f32 %v1773_v5, %v1725_v35  ;;  %1873 = vmatmul.bf16.gmra.mxu2 %v6242_v48  ;;  %1971 = vmatmul.bf16.gmra.mxu0 %v6243_v34  ;;  %v316_v5 = vld [vmem:[%s6069_s0 + $0x948] sm:$0xff] }
 0x294   :  { %1922 = vmatmul.bf16.gmra.mxu3 %v6244_v17  ;;  %v576_v7 = vpack.c.bf16 %v318_v52, %v316_v5 }
 0x295   :  { %2020 = vmatmul.bf16.gmra.mxu1 %v6245_v45  ;;  %v5521_v54 = vadd.f32 %v1822_v27, %v1774_v12  ;;  %2100 = vmatpush.bf16.msra.mxu3 %v592_v39  ;;  %v380_v45 = vld [vmem:[%s6069_s0 + $0xb48] sm:$0xff]  ;;  %v382_v27 = vld [vmem:[%s6069_s0 + $0xb58] sm:$0xff]  ;;  %v6247_v39 = vld [vmem:[#allocation47_spill] sm:$0xff] }
 0x296   :  { %v1678_v41 = vpop.f32.mrf.mxu2  ;;  %2051 = vmatpush.bf16.msra.mxu2 %v576_v7  ;;  %v608_v12 = vpack.c.bf16 %v382_v27, %v380_v45  ;;  %v408_v45 = vld [vmem:[%s6069_s0 + $0xc28] sm:$0xff]  ;;  %v410_v27 = vld [vmem:[%s6069_s0 + $0xc38] sm:$0xff] }
 0x297   :  { %v1679_v35 = vadd.f32 %v1678_v41, %v5213_v42  ;;  %v1727_v48 = vpop.f32.mrf.mxu3  ;;  %v6246_v41 = vld [vmem:[#allocation16_spill] sm:$0xff] }
 0x298   :  { %v1778_v34 = vpop.f32.mrf.mxu0  ;;  %2149 = vmatpush.bf16.msra.mxu0 %v608_v12 }
 0x299   :  { %v1728_v15 = vadd.f32 %v1727_v48, %v1679_v35  ;;  %v6248_v35 = vld [vmem:[#allocation45_spill] sm:$0xff]  ;;  %v6249_v48 = vld [vmem:[#allocation46_spill] sm:$0xff] }
 0x29a   :  { %v1827_v38 = vpop.f32.mrf.mxu1 }
 0x29b   :  { %v1777_v17 = vadd.f32 %v1776_v10, %v1728_v15 }
 0x29d   :  { %v5530_v19 = vadd.f32 %v1825_v44, %v1777_v17  ;;  %v312_v44 = vld [vmem:[%s6069_s0 + $0x928] sm:$0xff]  ;;  %v346_v17 = vld [vmem:[%s6069_s0 + $0xa38] sm:$0xff] }
 0x29e   :  { %v1680_v5 = vpop.f32.mrf.mxu2 }
 0x29f   :  { %v1681_v42 = vadd.f32 %v1680_v5, %v5240_v18  ;;  %v1729_v52 = vpop.f32.mrf.mxu3  ;;  %v314_v18 = vld [vmem:[%s6069_s0 + $0x938] sm:$0xff] }
 0x2a0   :  { %v1781_v31 = vpop.f32.mrf.mxu0  ;;  %v574_v15 = vpack.c.bf16 %v314_v18, %v312_v44  ;;  %v376_v18 = vld [vmem:[%s6069_s0 + $0xb28] sm:$0xff] }
 0x2a1   :  { %v1730_v7 = vadd.f32 %v1729_v52, %v1681_v42  ;;  %v622_v52 = vpack.c.bf16 %v410_v27, %v408_v45 }
 0x2a2   :  { %v1830_v57 = vpop.f32.mrf.mxu1  ;;  %2052 = vmatpush.bf16.msra.mxu2 %v574_v15 }
 0x2a3   :  { %v1779_v10 = vadd.f32 %v1778_v34, %v1730_v7  ;;  %1878 = vmatmul.bf16.gmra.mxu2 %v6246_v41  ;;  %1976 = vmatmul.bf16.gmra.mxu0 %v6247_v39  ;;  %v344_v34 = vld [vmem:[%s6069_s0 + $0xa28] sm:$0xff] }
 0x2a4   :  { %1927 = vmatmul.bf16.gmra.mxu3 %v6248_v35  ;;  %v590_v42 = vpack.c.bf16 %v346_v17, %v344_v34  ;;  %2199 = vmatpush.bf16.msra.mxu1 %v622_v52  ;;  %v6251_v52 = vld [vmem:[#allocation51_spill] sm:$0xff] }
 0x2a5   :  { %2025 = vmatmul.bf16.gmra.mxu1 %v6249_v48  ;;  %v5555_v12 = vadd.f32 %v1827_v38, %v1779_v10  ;;  %v378_v38 = vld [vmem:[%s6069_s0 + $0xb38] sm:$0xff] }
 0x2a6   :  { %v1683_v5 = vpop.f32.mrf.mxu2  ;;  %2101 = vmatpush.bf16.msra.mxu3 %v590_v42  ;;  %v606_v10 = vpack.c.bf16 %v378_v38, %v376_v18  ;;  %v6250_v42 = vld [vmem:[#allocation20_spill] sm:$0xff] }
 0x2a7   :  { %v1684_v7 = vadd.f32 %v1683_v5, %v5251_v33  ;;  %v1732_v41 = vpop.f32.mrf.mxu3 }
 0x2a8   :  { %v1783_v39 = vpop.f32.mrf.mxu0  ;;  %2150 = vmatpush.bf16.msra.mxu0 %v606_v10 }
 0x2a9   :  { %v1733_v35 = vadd.f32 %v1732_v41, %v1684_v7  ;;  %v6252_v7 = vld [vmem:[#allocation49_spill] sm:$0xff]  ;;  %v6253_v41 = vld [vmem:[#allocation50_spill] sm:$0xff] }
 0x2aa   :  { %v1832_v48 = vpop.f32.mrf.mxu1 }
 0x2ab   :  { %v1782_v44 = vadd.f32 %v1781_v31, %v1733_v35 }
 0x2ad   :  { %v5564_v34 = vadd.f32 %v1830_v57, %v1782_v44  ;;  %v308_v57 = vld [vmem:[%s6069_s0 + $0x908] sm:$0xff]  ;;  %v342_v44 = vld [vmem:[%s6069_s0 + $0xa18] sm:$0xff] }
 0x2ae   :  { %v1685_v33 = vpop.f32.mrf.mxu2 }
 0x2af   :  { %v1686_v15 = vadd.f32 %v1685_v33, %v5278_v3  ;;  %v1734_v17 = vpop.f32.mrf.mxu3  ;;  %v310_v3 = vld [vmem:[%s6069_s0 + $0x918] sm:$0xff] }
 0x2b0   :  { %v1786_v45 = vpop.f32.mrf.mxu0  ;;  %v572_v35 = vpack.c.bf16 %v310_v3, %v308_v57 }
 0x2b1   :  { %v1735_v27 = vadd.f32 %v1734_v17, %v1686_v15 }
 0x2b2   :  { %v1835_v5 = vpop.f32.mrf.mxu1  ;;  %2053 = vmatpush.bf16.msra.mxu2 %v572_v35 }
 0x2b3   :  { %v1784_v31 = vadd.f32 %v1783_v39, %v1735_v27  ;;  %1883 = vmatmul.bf16.gmra.mxu2 %v6250_v42  ;;  %1981 = vmatmul.bf16.gmra.mxu0 %v6251_v52  ;;  %v340_v39 = vld [vmem:[%s6069_s0 + $0xa08] sm:$0xff] }
 0x2b4   :  { %1932 = vmatmul.bf16.gmra.mxu3 %v6252_v7  ;;  %v588_v10 = vpack.c.bf16 %v342_v44, %v340_v39  ;;  %v404_v7 = vld [vmem:[%s6069_s0 + $0xc08] sm:$0xff] }
 0x2b5   :  { %2030 = vmatmul.bf16.gmra.mxu1 %v6253_v41  ;;  %v5583_v18 = vadd.f32 %v1832_v48, %v1784_v31  ;;  %v406_v48 = vld [vmem:[%s6069_s0 + $0xc18] sm:$0xff]  ;;  %v372_v31 = vld [vmem:[%s6069_s0 + $0xb08] sm:$0xff] }
 0x2b6   :  { %v1688_v38 = vpop.f32.mrf.mxu2  ;;  %2102 = vmatpush.bf16.msra.mxu3 %v588_v10  ;;  %v374_v41 = vld [vmem:[%s6069_s0 + $0xb18] sm:$0xff] }
 0x2b7   :  { %v1689_v33 = vadd.f32 %v1688_v38, %v5289_v32  ;;  %v1737_v15 = vpop.f32.mrf.mxu3  ;;  %v620_v32 = vpack.c.bf16 %v406_v48, %v404_v7  ;;  %v604_v57 = vpack.c.bf16 %v374_v41, %v372_v31  ;;  %v6256_v7 = vld [vmem:[#allocation53_spill] sm:$0xff]  ;;  %v6257_v48 = vld [vmem:[#allocation54_spill] sm:$0xff] }
 0x2b8   :  { %v1788_v17 = vpop.f32.mrf.mxu0 }
 0x2b9   :  { %v1738_v27 = vadd.f32 %v1737_v15, %v1689_v33  ;;  %2200 = vmatpush.bf16.msra.mxu1 %v620_v32  ;;  %2151 = vmatpush.bf16.msra.mxu0 %v604_v57  ;;  %v6254_v15 = vld [vmem:[#allocation24_spill] sm:$0xff] }
 0x2ba   :  { %v1837_v42 = vpop.f32.mrf.mxu1 }
 0x2bb   :  { %v1787_v52 = vadd.f32 %v1786_v45, %v1738_v27  ;;  %v6255_v27 = vld [vmem:[#allocation55_spill] sm:$0xff] }
 0x2bd   :  { %v5598_v3 = vadd.f32 %v1835_v5, %v1787_v52 }
 0x2be   :  { %v1690_v45 = vpop.f32.mrf.mxu2 }
 0x2bf   :  { %v1691_v39 = vadd.f32 %v1690_v45, %v5316_v40  ;;  %v1739_v35 = vpop.f32.mrf.mxu3 }
 0x2c0   :  { %v1791_v44 = vpop.f32.mrf.mxu0 }
 0x2c1   :  { %v1740_v38 = vadd.f32 %v1739_v35, %v1691_v39 }
 0x2c2   :  { %v1840_v10 = vpop.f32.mrf.mxu1 }
 0x2c3   :  { %v1789_v33 = vadd.f32 %v1788_v17, %v1740_v38  ;;  %1888 = vmatmul.bf16.gmra.mxu2 %v6254_v15  ;;  %1986 = vmatmul.bf16.gmra.mxu0 %v6255_v27 }
 0x2c4   :  { %1937 = vmatmul.bf16.gmra.mxu3 %v6256_v7 }
 0x2c5   :  { %2035 = vmatmul.bf16.gmra.mxu1 %v6257_v48  ;;  %v5605_v5 = vadd.f32 %v1837_v42, %v1789_v33  ;;  %v6258_v42 = vld [vmem:[#allocation28_spill] sm:$0xff] }
 0x2c6   :  { %v1693_v52 = vpop.f32.mrf.mxu2 }
 0x2c7   :  { %v1694_v31 = vadd.f32 %v1693_v52, %v5327_v50  ;;  %v1742_v40 = vpop.f32.mrf.mxu3 }
 0x2c8   :  { %v1793_v32 = vpop.f32.mrf.mxu0 }
 0x2c9   :  { %v1743_v41 = vadd.f32 %v1742_v40, %v1694_v31 }
 0x2ca   :  { %v1842_v57 = vpop.f32.mrf.mxu1 }
 0x2cb   :  { %v1792_v45 = vadd.f32 %v1791_v44, %v1743_v41 }
 0x2cd   :  { %v5608_v39 = vadd.f32 %v1840_v10, %v1792_v45 }
 0x2ce   :  { %v1695_v17 = vpop.f32.mrf.mxu2 }
 0x2cf   :  { %v1696_v35 = vadd.f32 %v1695_v17, %v5354_v62  ;;  %v1744_v38 = vpop.f32.mrf.mxu3 }
 0x2d0   :  { %v1796_v15 = vpop.f32.mrf.mxu0 }
 0x2d1   :  { %v1745_v27 = vadd.f32 %v1744_v38, %v1696_v35  ;;  %v6261_v38 = vld [vmem:[#allocation59_spill] sm:$0xff] }
 0x2d2   :  { %v1845_v7 = vpop.f32.mrf.mxu1 }
 0x2d3   :  { %v1794_v48 = vadd.f32 %v1793_v32, %v1745_v27  ;;  %1893 = vmatmul.bf16.gmra.mxu2 %v6258_v42  ;;  %1991 = vmatmul.bf16.gmra.mxu0 %v4589_v8 }
 0x2d4   :  { %1942 = vmatmul.bf16.gmra.mxu3 %v4585_v6 }
 0x2d5   :  { %2040 = vmatmul.bf16.gmra.mxu1 %v4587_v55  ;;  %v5615_v50 = vadd.f32 %v1842_v57, %v1794_v48  ;;  %v6259_v57 = vld [vmem:[#allocation32_spill] sm:$0xff] }
 0x2d6   :  { %v1698_v44 = vpop.f32.mrf.mxu2 }
 0x2d7   :  { %v1699_v10 = vadd.f32 %v1698_v44, %v5365_v46  ;;  %v1747_v33 = vpop.f32.mrf.mxu3  ;;  %v6260_v46 = vld [vmem:[#allocation58_spill] sm:$0xff] }
 0x2d8   :  { %v1798_v62 = vpop.f32.mrf.mxu0 }
 0x2d9   :  { %v1748_v52 = vadd.f32 %v1747_v33, %v1699_v10 }
 0x2da   :  { %v1847_v31 = vpop.f32.mrf.mxu1 }
 0x2db   :  { %v1797_v40 = vadd.f32 %v1796_v15, %v1748_v52 }
 0x2dd   :  { %v5618_v41 = vadd.f32 %v1845_v7, %v1797_v40 }
 0x2de   :  { %v1700_v32 = vpop.f32.mrf.mxu2 }
 0x2df   :  { %v1701_v45 = vadd.f32 %v1700_v32, %v5392_v25  ;;  %v1749_v8 = vpop.f32.mrf.mxu3 }
 0x2e0   :  { %v1957_v17 = vpop.f32.mrf.mxu0 }
 0x2e1   :  { %v1750_v6 = vadd.f32 %v1749_v8, %v1701_v45 }
 0x2e2   :  { %v2006_v35 = vpop.f32.mrf.mxu1 }
 0x2e3   :  { %v1799_v55 = vadd.f32 %v1798_v62, %v1750_v6  ;;  %2054 = vmatmul.bf16.vlgmr.msra.gmra.mxu2 %v6259_v57  ;;  %2152 = vmatmul.bf16.vlgmr.msra.gmra.mxu0 %v4649_v37  ;;  %v6264_v6 = vld [vmem:[#allocation61_spill] sm:$0xff] }
 0x2e4   :  { %2103 = vmatmul.bf16.vlgmr.msra.gmra.mxu3 %v6260_v46 }
 0x2e5   :  { %3009 = vmatmul.msk.bf16.vlgmr.msra.gmra.mxu1 %vm943_vm0, %v6261_v38  ;;  %v5626_v15 = vadd.f32 %v1847_v31, %v1799_v55  ;;  %v6262_v31 = vld [vmem:[#allocation36_spill] sm:$0xff] }
 0x2e6   :  { %v1859_v27 = vpop.f32.mrf.mxu2 }
 0x2e7   :  { %v1860_v7 = vadd.f32 %v1859_v27, %v5434_v1  ;;  %v1908_v25 = vpop.f32.mrf.mxu3  ;;  %v6263_v1 = vld [vmem:[#allocation60_spill] sm:$0xff] }
 0x2e8   :  { %v1959_v48 = vpop.f32.mrf.mxu0 }
 0x2e9   :  { %v1909_v42 = vadd.f32 %v1908_v25, %v1860_v7 }
 0x2ea   :  { %v2008_v44 = vpop.f32.mrf.mxu1 }
 0x2eb   :  { %v1958_v10 = vadd.f32 %v1957_v17, %v1909_v42 }
 0x2ed   :  { %v5629_v33 = vadd.f32 %v2006_v35, %v1958_v10 }
 0x2ee   :  { %v1861_v62 = vpop.f32.mrf.mxu2 }
 0x2ef   :  { %v1862_v37 = vadd.f32 %v1861_v62, %v5453_v4  ;;  %v1910_v52 = vpop.f32.mrf.mxu3 }
 0x2f0   :  { %v1962_v40 = vpop.f32.mrf.mxu0 }
 0x2f1   :  { %v1911_v32 = vadd.f32 %v1910_v52, %v1862_v37  ;;  %v6267_v52 = vld [vmem:[#allocation63_spill] sm:$0xff] }
 0x2f2   :  { %v2011_v45 = vpop.f32.mrf.mxu1 }
 0x2f3   :  { %v1960_v8 = vadd.f32 %v1959_v48, %v1911_v32  ;;  %2059 = vmatmul.bf16.gmra.mxu2 %v6262_v31  ;;  %2157 = vmatmul.bf16.gmra.mxu0 %v4708_v11 }
 0x2f4   :  { %2108 = vmatmul.bf16.gmra.mxu3 %v6263_v1 }
 0x2f5   :  { %3010 = vmatmul.msk.bf16.gmra.mxu1 %vm943_vm0, %v6264_v6  ;;  %v5637_v17 = vadd.f32 %v2008_v44, %v1960_v8  ;;  %v6265_v44 = vld [vmem:[#allocation40_spill] sm:$0xff] }
 0x2f6   :  { %v1864_v35 = vpop.f32.mrf.mxu2 }
 0x2f7   :  { %v1865_v55 = vadd.f32 %v1864_v35, %v5468_v24  ;;  %v1913_v4 = vpop.f32.mrf.mxu3  ;;  %v6266_v24 = vld [vmem:[#allocation62_spill] sm:$0xff] }
 0x2f8   :  { %v1964_v57 = vpop.f32.mrf.mxu0 }
 0x2f9   :  { %v1914_v46 = vadd.f32 %v1913_v4, %v1865_v55 }
 0x2fa   :  { %v2013_v38 = vpop.f32.mrf.mxu1 }
 0x2fb   :  { %v1963_v27 = vadd.f32 %v1962_v40, %v1914_v46 }
 0x2fd   :  { %v5640_v7 = vadd.f32 %v2011_v45, %v1963_v27 }
 0x2fe   :  { %v1866_v25 = vpop.f32.mrf.mxu2 }
 0x2ff   :  { %v1867_v11 = vadd.f32 %v1866_v25, %v5487_v51  ;;  %v1915_v48 = vpop.f32.mrf.mxu3 }
 0x300   :  { %v1967_v42 = vpop.f32.mrf.mxu0 }
 0x301   :  { %v1916_v10 = vadd.f32 %v1915_v48, %v1867_v11  ;;  %v6270_v11 = vld [vmem:[#allocation65_spill] sm:$0xff] }
 0x302   :  { %v2016_v62 = vpop.f32.mrf.mxu1 }
 0x303   :  { %v1965_v37 = vadd.f32 %v1964_v57, %v1916_v10  ;;  %2064 = vmatmul.bf16.gmra.mxu2 %v6265_v44  ;;  %2162 = vmatmul.bf16.gmra.mxu0 %v4767_v2 }
 0x304   :  { %2113 = vmatmul.bf16.gmra.mxu3 %v6266_v24 }
 0x305   :  { %3011 = vmatmul.msk.bf16.gmra.mxu1 %vm943_vm0, %v6267_v52  ;;  %v5648_v40 = vadd.f32 %v2013_v38, %v1965_v37  ;;  %v6268_v38 = vld [vmem:[#allocation44_spill] sm:$0xff] }
 0x306   :  { %v1869_v32 = vpop.f32.mrf.mxu2 }
 0x307   :  { %v1870_v45 = vadd.f32 %v1869_v32, %v5496_v61  ;;  %v1918_v51 = vpop.f32.mrf.mxu3  ;;  %v6269_v61 = vld [vmem:[#allocation64_spill] sm:$0xff] }
 0x308   :  { %v1969_v8 = vpop.f32.mrf.mxu0 }
 0x309   :  { %v1919_v31 = vadd.f32 %v1918_v51, %v1870_v45 }
 0x30a   :  { %v2018_v1 = vpop.f32.mrf.mxu1 }
 0x30b   :  { %v1968_v6 = vadd.f32 %v1967_v42, %v1919_v31 }
 0x30d   :  { %v5651_v35 = vadd.f32 %v2016_v62, %v1968_v6 }
 0x30e   :  { %v1871_v55 = vpop.f32.mrf.mxu2 }
 0x30f   :  { %v1872_v2 = vadd.f32 %v1871_v55, %v5521_v54  ;;  %v1920_v4 = vpop.f32.mrf.mxu3  ;;  %v6273_v55 = vld [vmem:[#allocation67_spill] sm:$0xff] }
 0x310   :  { %v1972_v57 = vpop.f32.mrf.mxu0 }
 0x311   :  { %v1921_v46 = vadd.f32 %v1920_v4, %v1872_v2 }
 0x312   :  { %v2021_v27 = vpop.f32.mrf.mxu1 }
 0x313   :  { %v1970_v25 = vadd.f32 %v1969_v8, %v1921_v46  ;;  %2069 = vmatmul.bf16.gmra.mxu2 %v6268_v38  ;;  %2167 = vmatmul.bf16.gmra.mxu0 %v4826_v29 }
 0x314   :  { %2118 = vmatmul.bf16.gmra.mxu3 %v6269_v61 }
 0x315   :  { %3012 = vmatmul.msk.bf16.gmra.mxu1 %vm943_vm0, %v6270_v11  ;;  %v5659_v48 = vadd.f32 %v2018_v1, %v1970_v25  ;;  %v6271_v1 = vld [vmem:[#allocation48_spill] sm:$0xff] }
 0x316   :  { %v1874_v42 = vpop.f32.mrf.mxu2 }
 0x317   :  { %v1875_v10 = vadd.f32 %v1874_v42, %v5530_v19  ;;  %v1923_v54 = vpop.f32.mrf.mxu3  ;;  %v6272_v19 = vld [vmem:[#allocation66_spill] sm:$0xff] }
 0x318   :  { %v1974_v62 = vpop.f32.mrf.mxu0 }
 0x319   :  { %v1924_v37 = vadd.f32 %v1923_v54, %v1875_v10 }
 0x31a   :  { %v2023_v44 = vpop.f32.mrf.mxu1 }
 0x31b   :  { %v1973_v24 = vadd.f32 %v1972_v57, %v1924_v37 }
 0x31d   :  { %v5662_v52 = vadd.f32 %v2021_v27, %v1973_v24  ;;  %v6276_v24 = vld [vmem:[#allocation69_spill] sm:$0xff] }
 0x31e   :  { %v1876_v32 = vpop.f32.mrf.mxu2 }
 0x31f   :  { %v1877_v29 = vadd.f32 %v1876_v32, %v5555_v12  ;;  %v1925_v45 = vpop.f32.mrf.mxu3 }
 0x320   :  { %v1977_v51 = vpop.f32.mrf.mxu0 }
 0x321   :  { %v1926_v8 = vadd.f32 %v1925_v45, %v1877_v29 }
 0x322   :  { %v2026_v31 = vpop.f32.mrf.mxu1 }
 0x323   :  { %v1975_v6 = vadd.f32 %v1974_v62, %v1926_v8  ;;  %2074 = vmatmul.bf16.gmra.mxu2 %v6271_v1  ;;  %2172 = vmatmul.bf16.gmra.mxu0 %v4885_v60 }
 0x324   :  { %2123 = vmatmul.bf16.gmra.mxu3 %v6272_v19 }
 0x325   :  { %3013 = vmatmul.msk.bf16.gmra.mxu1 %vm943_vm0, %v6273_v55  ;;  %v5670_v2 = vadd.f32 %v2023_v44, %v1975_v6  ;;  %v6274_v44 = vld [vmem:[#allocation52_spill] sm:$0xff] }
 0x326   :  { %v1879_v4 = vpop.f32.mrf.mxu2 }
 0x327   :  { %v1880_v57 = vadd.f32 %v1879_v4, %v5564_v34  ;;  %v1928_v12 = vpop.f32.mrf.mxu3  ;;  %v6275_v34 = vld [vmem:[#allocation68_spill] sm:$0xff] }
 0x328   :  { %v1979_v46 = vpop.f32.mrf.mxu0 }
 0x329   :  { %v1929_v27 = vadd.f32 %v1928_v12, %v1880_v57 }
 0x32a   :  { %v2028_v25 = vpop.f32.mrf.mxu1 }
 0x32b   :  { %v1978_v38 = vadd.f32 %v1977_v51, %v1929_v27  ;;  %v6277_v27 = vld [vmem:[#allocation56_spill] sm:$0xff] }
 0x32d   :  { %v5673_v61 = vadd.f32 %v2026_v31, %v1978_v38 }
 0x32e   :  { %v1881_v11 = vpop.f32.mrf.mxu2 }
 0x32f   :  { %v1882_v60 = vadd.f32 %v1881_v11, %v5583_v18  ;;  %v1930_v42 = vpop.f32.mrf.mxu3 }
 0x330   :  { %v1982_v10 = vpop.f32.mrf.mxu0 }
 0x331   :  { %v1931_v54 = vadd.f32 %v1930_v42, %v1882_v60 }
 0x332   :  { %v2031_v62 = vpop.f32.mrf.mxu1 }
 0x333   :  { %v1980_v37 = vadd.f32 %v1979_v46, %v1931_v54  ;;  %2079 = vmatmul.bf16.gmra.mxu2 %v6274_v44  ;;  %2177 = vmatmul.bf16.gmra.mxu0 %v4944_v13 }
 0x334   :  { %2128 = vmatmul.bf16.gmra.mxu3 %v6275_v34 }
 0x335   :  { %3014 = vmatmul.msk.bf16.gmra.mxu1 %vm943_vm0, %v6276_v24  ;;  %v5681_v32 = vadd.f32 %v2028_v25, %v1980_v37  ;;  %v6279_v25 = vld [vmem:[#allocation71_spill] sm:$0xff] }
 0x336   :  { %v1884_v29 = vpop.f32.mrf.mxu2 }
 0x337   :  { %v1885_v45 = vadd.f32 %v1884_v29, %v5598_v3  ;;  %v1933_v18 = vpop.f32.mrf.mxu3  ;;  %v6278_v3 = vld [vmem:[#allocation70_spill] sm:$0xff] }
 0x338   :  { %v1984_v51 = vpop.f32.mrf.mxu0 }
 0x339   :  { %v1934_v8 = vadd.f32 %v1933_v18, %v1885_v45 }
 0x33a   :  { %v2033_v31 = vpop.f32.mrf.mxu1 }
 0x33b   :  { %v1983_v6 = vadd.f32 %v1982_v10, %v1934_v8 }
 0x33d   :  { %v5684_v1 = vadd.f32 %v2031_v62, %v1983_v6 }
 0x33e   :  { %v1886_v19 = vpop.f32.mrf.mxu2 }
 0x33f   :  { %v1887_v13 = vadd.f32 %v1886_v19, %v5605_v5  ;;  %v1935_v55 = vpop.f32.mrf.mxu3 }
 0x340   :  { %v1987_v4 = vpop.f32.mrf.mxu0 }
 0x341   :  { %v1936_v57 = vadd.f32 %v1935_v55, %v1887_v13 }
 0x342   :  { %v2036_v12 = vpop.f32.mrf.mxu1 }
 0x343   :  { %v1985_v46 = vadd.f32 %v1984_v51, %v1936_v57  ;;  %2084 = vmatmul.bf16.gmra.mxu2 %v6277_v27  ;;  %2182 = vmatmul.bf16.gmra.mxu0 %v5003_v22  ;;  %v6280_v51 = vld [vmem:[#allocation57_spill] sm:$0xff] }
 0x344   :  { %2133 = vmatmul.bf16.gmra.mxu3 %v6278_v3 }
 0x345   :  { %3015 = vmatmul.msk.bf16.gmra.mxu1 %vm943_vm0, %v6279_v25  ;;  %v5692_v38 = vadd.f32 %v2033_v31, %v1985_v46 }
 0x346   :  { %v1889_v11 = vpop.f32.mrf.mxu2 }
 0x347   :  { %v1890_v60 = vadd.f32 %v1889_v11, %v5608_v39  ;;  %v1938_v5 = vpop.f32.mrf.mxu3 }
 0x348   :  { %v1989_v42 = vpop.f32.mrf.mxu0 }
 0x349   :  { %v1939_v10 = vadd.f32 %v1938_v5, %v1890_v60 }
 0x34a   :  { %v2038_v54 = vpop.f32.mrf.mxu1 }
 0x34b   :  { %v1988_v62 = vadd.f32 %v1987_v4, %v1939_v10 }
 0x34d   :  { %v5695_v37 = vadd.f32 %v2036_v12, %v1988_v62 }
 0x34e   :  { %v1891_v44 = vpop.f32.mrf.mxu2 }
 0x34f   :  { %v1892_v22 = vadd.f32 %v1891_v44, %v5615_v50  ;;  %v1940_v34 = vpop.f32.mrf.mxu3 }
 0x350   :  { %v1992_v24 = vpop.f32.mrf.mxu0 }
 0x351   :  { %v1941_v29 = vadd.f32 %v1940_v34, %v1892_v22 }
 0x352   :  { %v2041_v45 = vpop.f32.mrf.mxu1 }
 0x353   :  { %v1990_v18 = vadd.f32 %v1989_v42, %v1941_v29  ;;  %2089 = vmatmul.bf16.gmra.mxu2 %v6280_v51  ;;  %2187 = vmatmul.bf16.gmra.mxu0 %v5062_v30 }
 0x354   :  { %2138 = vmatmul.bf16.gmra.mxu3 %v5058_v43 }
 0x355   :  { %3016 = vmatmul.msk.bf16.gmra.mxu1 %vm943_vm0, %v5060_v56  ;;  %v5703_v39 = vadd.f32 %v2038_v54, %v1990_v18 }
 0x356   :  { %v1894_v8 = vpop.f32.mrf.mxu2 }
 0x357   :  { %v1895_v31 = vadd.f32 %v1894_v8, %v5618_v41  ;;  %v1943_v50 = vpop.f32.mrf.mxu3 }
 0x358   :  { %v1994_v6 = vpop.f32.mrf.mxu0 }
 0x359   :  { %v1944_v19 = vadd.f32 %v1943_v50, %v1895_v31 }
 0x35a   :  { %v2043_v13 = vpop.f32.mrf.mxu1 }
 0x35b   :  { %v1993_v55 = vadd.f32 %v1992_v24, %v1944_v19 }
 0x35d   :  { %v5706_v4 = vadd.f32 %v2041_v45, %v1993_v55 }
 0x35e   :  { %v1896_v57 = vpop.f32.mrf.mxu2 }
 0x35f   :  { %v1897_v30 = vadd.f32 %v1896_v57, %v5626_v15  ;;  %v1945_v12 = vpop.f32.mrf.mxu3 }
 0x360   :  { %v2153_v43 = vpop.f32.mrf.mxu0 }
 0x361   :  { %v1946_v46 = vadd.f32 %v1945_v12, %v1897_v30 }
 0x362   :  { %v2202_v27 = vpop.f32.mrf.mxu1 }
 0x363   :  { %v1995_v56 = vadd.f32 %v1994_v6, %v1946_v46 }
 0x365   :  { %v5709_v3 = vadd.f32 %v2043_v13, %v1995_v56 }
 0x366   :  { %v2055_v25 = vpop.f32.mrf.mxu2 }
 0x367   :  { %v2056_v41 = vadd.f32 %v2055_v25, %v5629_v33  ;;  %v2104_v11 = vpop.f32.mrf.mxu3 }
 0x368   :  { %v2155_v60 = vpop.f32.mrf.mxu0 }
 0x369   :  { %v2105_v5 = vadd.f32 %v2104_v11, %v2056_v41 }
 0x36a   :  { %v2204_v42 = vpop.f32.mrf.mxu1 }
 0x36b   :  { %v2154_v10 = vadd.f32 %v2153_v43, %v2105_v5 }
 0x36d   :  { %v5712_v54 = vadd.f32 %v2202_v27, %v2154_v10 }
 0x36e   :  { %v2057_v62 = vpop.f32.mrf.mxu2 }
 0x36f   :  { %v2058_v15 = vadd.f32 %v2057_v62, %v5637_v17  ;;  %v2106_v44 = vpop.f32.mrf.mxu3  ;;  %v2247_v22 = vadd.f32 %v5712_v54, %v5128_v36 }
 0x370   :  { %v2158_v34 = vpop.f32.mrf.mxu0 }
 0x371   :  { %v2107_v24 = vadd.f32 %v2106_v44, %v2058_v15  ;;  %2248 = vadd.xlane.f32.xlu0 %v2247_v22 }
 0x372   :  { %v2207_v29 = vpop.f32.mrf.mxu1 }
 0x373   :  { %v2156_v45 = vadd.f32 %v2155_v60, %v2107_v24 }
 0x375   :  { %v5717_v33 = vadd.f32 %v2204_v42, %v2156_v45 }
 0x376   :  { %v2060_v18 = vpop.f32.mrf.mxu2 }
 0x377   :  { %v2061_v51 = vadd.f32 %v2060_v18, %v5640_v7  ;;  %v2109_v8 = vpop.f32.mrf.mxu3  ;;  %v2250_v31 = vadd.f32 %v5717_v33, %v5139_v28 }
 0x378   :  { %v2160_v50 = vpop.f32.mrf.mxu0 }
 0x379   :  { %v2110_v17 = vadd.f32 %v2109_v8, %v2061_v51  ;;  %2251 = vadd.xlane.f32.xlu0 %v2250_v31 }
 0x37a   :  { %v2209_v6 = vpop.f32.mrf.mxu1 }
 0x37b   :  { %v2159_v19 = vadd.f32 %v2158_v34, %v2110_v17 }
 0x37d   :  { %v5722_v13 = vadd.f32 %v2207_v29, %v2159_v19 }
 0x37e   :  { %v2062_v55 = vpop.f32.mrf.mxu2 }
 0x37f   :  { %v2063_v57 = vadd.f32 %v2062_v55, %v5648_v40  ;;  %v2111_v30 = vpop.f32.mrf.mxu3  ;;  %v2253_v12 = vadd.f32 %v5722_v13, %v5166_v14 }
 0x380   :  { %v2163_v43 = vpop.f32.mrf.mxu0 }
 0x381   :  { %v2112_v7 = vadd.f32 %v2111_v30, %v2063_v57  ;;  %2254 = vadd.xlane.f32.xlu1 %v2253_v12 }
 0x382   :  { %v2212_v46 = vpop.f32.mrf.mxu1 }
 0x383   :  { %v2161_v27 = vadd.f32 %v2160_v50, %v2112_v7 }
 0x385   :  { %v5727_v56 = vadd.f32 %v2209_v6, %v2161_v27 }
 0x386   :  { %v2065_v25 = vpop.f32.mrf.mxu2 }
 0x387   :  { %v2066_v41 = vadd.f32 %v2065_v25, %v5651_v35  ;;  %v2114_v11 = vpop.f32.mrf.mxu3  ;;  %v2256_v60 = vadd.f32 %v5727_v56, %v5177_v20 }
 0x388   :  { %v2165_v5 = vpop.f32.mrf.mxu0 }
 0x389   :  { %v2115_v40 = vadd.f32 %v2114_v11, %v2066_v41  ;;  %2257 = vadd.xlane.f32.xlu1 %v2256_v60 }
 0x38a   :  { %v2214_v42 = vpop.f32.mrf.mxu1 }
 0x38b   :  { %v2164_v10 = vadd.f32 %v2163_v43, %v2115_v40 }
 0x38d   :  { %v5732_v62 = vadd.f32 %v2212_v46, %v2164_v10 }
 0x38e   :  { %v2067_v15 = vpop.f32.mrf.mxu2 }
 0x38f   :  { %v2068_v44 = vadd.f32 %v2067_v15, %v5659_v48  ;;  %v2116_v22 = vpop.f32.mrf.mxu3  ;;  %v2259_v34 = vadd.f32 %v5732_v62, %v5204_v49 }
 0x390   :  { %v2168_v24 = vpop.f32.mrf.mxu0 }
 0x391   :  { %v2117_v35 = vadd.f32 %v2116_v22, %v2068_v44  ;;  %2260 = vadd.xlane.f32.xlu2 %v2259_v34 }
 0x392   :  { %v2217_v29 = vpop.f32.mrf.mxu1 }
 0x393   :  { %v2166_v45 = vadd.f32 %v2165_v5, %v2117_v35 }
 0x395   :  { %v5737_v18 = vadd.f32 %v2214_v42, %v2166_v45 }
 0x396   :  { %v2070_v51 = vpop.f32.mrf.mxu2 }
 0x397   :  { %v2071_v8 = vadd.f32 %v2070_v51, %v5662_v52  ;;  %v2119_v31 = vpop.f32.mrf.mxu3  ;;  %v2262_v50 = vadd.f32 %v5737_v18, %v5215_v63 }
 0x398   :  { %v2170_v17 = vpop.f32.mrf.mxu0 }
 0x399   :  { %v2120_v48 = vadd.f32 %v2119_v31, %v2071_v8  ;;  %2263 = vadd.xlane.f32.xlu2 %v2262_v50 }
 0x39a   :  { %v2219_v6 = vpop.f32.mrf.mxu1 }
 0x39b   :  { %v2169_v19 = vadd.f32 %v2168_v24, %v2120_v48 }
 0x39d   :  { %v5742_v55 = vadd.f32 %v2217_v29, %v2169_v19 }
 0x39e   :  { %v2072_v57 = vpop.f32.mrf.mxu2 }
 0x39f   :  { %v2073_v30 = vadd.f32 %v2072_v57, %v5670_v2  ;;  %v2121_v12 = vpop.f32.mrf.mxu3  ;;  %v2265_v43 = vadd.f32 %v5742_v55, %v5242_v53 }
 0x3a0   :  { %v2173_v7 = vpop.f32.mrf.mxu0 }
 0x3a1   :  { %v2122_v52 = vadd.f32 %v2121_v12, %v2073_v30  ;;  %2266 = vadd.xlane.f32.xlu0 %v2265_v43 }
 0x3a2   :  { %v2222_v46 = vpop.f32.mrf.mxu1 }
 0x3a3   :  { %v2171_v27 = vadd.f32 %v2170_v17, %v2122_v52 }
 0x3a5   :  { %v5747_v25 = vadd.f32 %v2219_v6, %v2171_v27 }
 0x3a6   :  { %v2075_v41 = vpop.f32.mrf.mxu2 }
 0x3a7   :  { %v2076_v11 = vadd.f32 %v2075_v41, %v5673_v61  ;;  %v2124_v60 = vpop.f32.mrf.mxu3  ;;  %v2268_v5 = vadd.f32 %v5747_v25, %v5253_v47 }
 0x3a8   :  { %v2175_v40 = vpop.f32.mrf.mxu0 }
 0x3a9   :  { %v2125_v2 = vadd.f32 %v2124_v60, %v2076_v11  ;;  %2269 = vadd.xlane.f32.xlu1 %v2268_v5 }
 0x3aa   :  { %v2224_v42 = vpop.f32.mrf.mxu1 }
 0x3ab   :  { %v2174_v10 = vadd.f32 %v2173_v7, %v2125_v2 }
 0x3ad   :  { %v5752_v15 = vadd.f32 %v2222_v46, %v2174_v10 }
 0x3ae   :  { %v2077_v44 = vpop.f32.mrf.mxu2 }
 0x3af   :  { %v2078_v22 = vadd.f32 %v2077_v44, %v5681_v32  ;;  %v2126_v34 = vpop.f32.mrf.mxu3  ;;  %v2271_v24 = vadd.f32 %v5752_v15, %v5280_v16 }
 0x3b0   :  { %v2178_v35 = vpop.f32.mrf.mxu0 }
 0x3b1   :  { %v2127_v61 = vadd.f32 %v2126_v34, %v2078_v22  ;;  %2272 = vadd.xlane.f32.xlu2 %v2271_v24 }
 0x3b2   :  { %v2227_v29 = vpop.f32.mrf.mxu1 }
 0x3b3   :  { %v2176_v45 = vadd.f32 %v2175_v40, %v2127_v61 }
 0x3b5   :  { %v5757_v51 = vadd.f32 %v2224_v42, %v2176_v45 }
 0x3b6   :  { %v2080_v8 = vpop.f32.mrf.mxu2 }
 0x3b7   :  { %v2081_v31 = vadd.f32 %v2080_v8, %v5684_v1  ;;  %v2129_v50 = vpop.f32.mrf.mxu3  ;;  %v2274_v17 = vadd.f32 %v5757_v51, %v5291_v58 }
 0x3b8   :  { %v2180_v32 = vpop.f32.mrf.mxu0 }
 0x3b9   :  { %v2130_v48 = vadd.f32 %v2129_v50, %v2081_v31  ;;  %2275 = vadd.xlane.f32.xlu0 %v2274_v17 }
 0x3ba   :  { %v2229_v19 = vpop.f32.mrf.mxu1 }
 0x3bb   :  { %v2179_v6 = vadd.f32 %v2178_v35, %v2130_v48 }
 0x3bd   :  { %v5762_v57 = vadd.f32 %v2227_v29, %v2179_v6 }
 0x3be   :  { %v2082_v30 = vpop.f32.mrf.mxu2 }
 0x3bf   :  { %v2083_v12 = vadd.f32 %v2082_v30, %v5692_v38  ;;  %v2131_v43 = vpop.f32.mrf.mxu3  ;;  %v2277_v7 = vadd.f32 %v5762_v57, %v5318_v21 }
 0x3c0   :  { %v2183_v46 = vpop.f32.mrf.mxu0 }
 0x3c1   :  { %v2132_v52 = vadd.f32 %v2131_v43, %v2083_v12  ;;  %2278 = vadd.xlane.f32.xlu1 %v2277_v7 }
 0x3c2   :  { %v2232_v41 = vpop.f32.mrf.mxu1 }
 0x3c3   :  { %v2181_v1 = vadd.f32 %v2180_v32, %v2132_v52  ;;  %v2242_v32 = vlaneseq }
 0x3c5   :  { %v5767_v27 = vadd.f32 %v2229_v19, %v2181_v1  ;;  %v2243_v12 = vand.u32 127, %v2242_v32 }
 0x3c6   :  { %v2085_v11 = vpop.f32.mrf.mxu2 }
 0x3c7   :  { %v2086_v60 = vadd.f32 %v2085_v11, %v5695_v37  ;;  %v2134_v5 = vpop.f32.mrf.mxu3  ;;  %v2280_v40 = vadd.f32 %v5767_v27, %v5335_v23 }
 0x3c8   :  { %v2185_v10 = vpop.f32.mrf.mxu0 }
 0x3c9   :  { %v2135_v2 = vadd.f32 %v2134_v5, %v2086_v60  ;;  %2281 = vadd.xlane.f32.xlu2 %v2280_v40 }
 0x3ca   :  { %v2234_v35 = vpop.f32.mrf.mxu1 }
 0x3cb   :  { %v2184_v38 = vadd.f32 %v2183_v46, %v2135_v2  ;;  %v5787_v46 = vadd.s32 128, %v2243_v12 }
 0x3cd   :  { %v5772_v42 = vadd.f32 %v2232_v41, %v2184_v38  ;;  %vm2246_vm1 = vcmp.lt.s32.totalorder %v5787_v46, 196 }
 0x3ce   :  { %v2087_v44 = vpop.f32.mrf.mxu2 }
 0x3cf   :  { %v2088_v22 = vadd.f32 %v2087_v44, %v5703_v39  ;;  %v2136_v34 = vpop.f32.mrf.mxu3  ;;  %v2283_v24 = vadd.f32 %v5772_v42, %v5356_v0 }
 0x3d0   :  { %v2188_v17 = vpop.f32.mrf.mxu0 }
 0x3d1   :  { %v2137_v61 = vadd.f32 %v2136_v34, %v2088_v22  ;;  %2284 = vadd.xlane.f32.xlu0 %v2283_v24 }
 0x3d2   :  { %v2237_v39 = vpop.f32.mrf.mxu1 }
 0x3d3   :  { %v2186_v37 = vadd.f32 %v2185_v10, %v2137_v61 }
 0x3d5   :  { %v5777_v29 = vadd.f32 %v2234_v35, %v2186_v37 }
 0x3d6   :  { %v2090_v45 = vpop.f32.mrf.mxu2 }
 0x3d7   :  { %6281 = vst [vmem:[#allocation13_spill] sm:$0xff] %v5777_v29  ;;  %v2091_v8 = vadd.f32 %v2090_v45, %v5706_v4  ;;  %v2139_v31 = vpop.f32.mrf.mxu3  ;;  %v2286_v50 = vadd.f32 %v5777_v29, %v5367_v9 }
 0x3d8   :  { %v2190_v1 = vpop.f32.mrf.mxu0 }
 0x3d9   :  { %v2140_v48 = vadd.f32 %v2139_v31, %v2091_v8  ;;  %2287 = vadd.xlane.f32.xlu1 %v2286_v50 }
 0x3da   :  { %v2239_v11 = vpop.f32.mrf.mxu1 }
 0x3db   :  { %v2189_v6 = vadd.f32 %v2188_v17, %v2140_v48 }
 0x3dd   :  { %v5782_v19 = vadd.f32 %v2237_v39, %v2189_v6 }
 0x3de   :  { %v2092_v30 = vpop.f32.mrf.mxu2 }
 0x3df   :  { %v2093_v43 = vadd.f32 %v2092_v30, %v5709_v3  ;;  %v2289_v7 = vadd.f32 %v5782_v19, %v5394_v26  ;;  %v2141_v4 = vpop.f32.mrf.mxu3 }
 0x3e1   :  { %v2142_v52 = vadd.f32 %v2141_v4, %v2093_v43  ;;  %2290 = vadd.xlane.f32.xlu2 %v2289_v7 }
 0x3e3   :  { %v2191_v41 = vadd.f32 %v2190_v1, %v2142_v52 }
 0x3e4   :  { %v2249_v60 = vpop.xlane.xlu0 %2248 }
 0x3e5   :  { %v5789_v5 = vadd.f32 %v2239_v11, %v2191_v41  ;;  %v5791_v40 = vmul.f32 0.0051020407, %v2249_v60 }
 0x3e7   :  { %6282 = vst [vmem:[#allocation14_spill] sm:$0xff] %v5789_v5  ;;  %v2312_v3 = vsub.f32 %v5712_v54, %v5791_v40  ;;  %v2292_v2 = vadd.f32 %v5789_v5, %v5403_v59  ;;  %v2311_v38 = vsub.f32 %v5128_v36, %v5791_v40 }
 0x3e9   :  { %2293 = vadd.xlane.f32.xlu0 %v2292_v2  ;;  %v2344_v10 = vsel %vm2246_vm1, %v2312_v3, 0.0  ;;  %v2375_v44 = vmul.f32 %v2311_v38, %v2311_v38 }
 0x3ea   :  { %v2376_v22 = vmul.f32 %v2344_v10, %v2344_v10 }
 0x3ec   :  { %v2252_v34 = vpop.xlane.xlu0 %2251  ;;  %v2407_v24 = vadd.f32 %v2376_v22, %v2375_v44 }
 0x3ed   :  { %v5802_v35 = vmul.f32 0.0051020407, %v2252_v34 }
 0x3ee   :  { %2408 = vadd.xlane.f32.xlu1 %v2407_v24 }
 0x3ef   :  { %v2314_v61 = vsub.f32 %v5717_v33, %v5802_v35  ;;  %v2313_v37 = vsub.f32 %v5139_v28, %v5802_v35 }
 0x3f1   :  { %v2346_v45 = vsel %vm2246_vm1, %v2314_v61, 0.0  ;;  %v2377_v8 = vmul.f32 %v2313_v37, %v2313_v37 }
 0x3f2   :  { %v2378_v31 = vmul.f32 %v2346_v45, %v2346_v45 }
 0x3f4   :  { %v2255_v50 = vpop.xlane.xlu1 %2254  ;;  %v2410_v17 = vadd.f32 %v2378_v31, %v2377_v8 }
 0x3f5   :  { %v5810_v48 = vmul.f32 0.0051020407, %v2255_v50 }
 0x3f6   :  { %2411 = vadd.xlane.f32.xlu2 %v2410_v17 }
 0x3f7   :  { %v2316_v39 = vsub.f32 %v5722_v13, %v5810_v48  ;;  %v2315_v32 = vsub.f32 %v5166_v14, %v5810_v48 }
 0x3f9   :  { %v2348_v6 = vsel %vm2246_vm1, %v2316_v39, 0.0  ;;  %v2379_v30 = vmul.f32 %v2315_v32, %v2315_v32 }
 0x3fa   :  { %v2380_v12 = vmul.f32 %v2348_v6, %v2348_v6 }
 0x3fc   :  { %v2258_v43 = vpop.xlane.xlu1 %2257  ;;  %v2413_v7 = vadd.f32 %v2380_v12, %v2379_v30 }
 0x3fd   :  { %v5818_v4 = vmul.f32 0.0051020407, %v2258_v43 }
 0x3fe   :  { %2414 = vadd.xlane.f32.xlu0 %v2413_v7 }
 0x3ff   :  { %v2318_v52 = vsub.f32 %v5727_v56, %v5818_v4  ;;  %v2317_v1 = vsub.f32 %v5177_v20, %v5818_v4 }
 0x401   :  { %v2350_v41 = vsel %vm2246_vm1, %v2318_v52, 0.0  ;;  %v2381_v11 = vmul.f32 %v2317_v1, %v2317_v1 }
 0x402   :  { %v2382_v60 = vmul.f32 %v2350_v41, %v2350_v41 }
 0x404   :  { %v2261_v3 = vpop.xlane.xlu2 %2260  ;;  %v2416_v2 = vadd.f32 %v2382_v60, %v2381_v11 }
 0x405   :  { %v5826_v38 = vmul.f32 0.0051020407, %v2261_v3 }
 0x406   :  { %2417 = vadd.xlane.f32.xlu1 %v2416_v2 }
 0x407   :  { %v2320_v10 = vsub.f32 %v5732_v62, %v5826_v38  ;;  %v2319_v44 = vsub.f32 %v5204_v49, %v5826_v38 }
 0x409   :  { %v2352_v22 = vsel %vm2246_vm1, %v2320_v10, 0.0  ;;  %v2383_v34 = vmul.f32 %v2319_v44, %v2319_v44 }
 0x40a   :  { %v2384_v24 = vmul.f32 %v2352_v22, %v2352_v22 }
 0x40c   :  { %v2264_v61 = vpop.xlane.xlu2 %2263  ;;  %v2419_v37 = vadd.f32 %v2384_v24, %v2383_v34 }
 0x40d   :  { %v5834_v45 = vmul.f32 0.0051020407, %v2264_v61 }
 0x40e   :  { %2420 = vadd.xlane.f32.xlu2 %v2419_v37 }
 0x40f   :  { %v2322_v8 = vsub.f32 %v5737_v18, %v5834_v45  ;;  %v2321_v31 = vsub.f32 %v5215_v63, %v5834_v45 }
 0x411   :  { %v2354_v50 = vsel %vm2246_vm1, %v2322_v8, 0.0  ;;  %v2385_v17 = vmul.f32 %v2321_v31, %v2321_v31 }
 0x412   :  { %v2386_v39 = vmul.f32 %v2354_v50, %v2354_v50 }
 0x414   :  { %v2267_v32 = vpop.xlane.xlu0 %2266  ;;  %v2422_v6 = vadd.f32 %v2386_v39, %v2385_v17 }
 0x415   :  { %v5842_v30 = vmul.f32 0.0051020407, %v2267_v32 }
 0x416   :  { %2423 = vadd.xlane.f32.xlu0 %v2422_v6 }
 0x417   :  { %v2324_v12 = vsub.f32 %v5742_v55, %v5842_v30  ;;  %v2323_v43 = vsub.f32 %v5242_v53, %v5842_v30 }
 0x419   :  { %v2356_v7 = vsel %vm2246_vm1, %v2324_v12, 0.0  ;;  %v2387_v52 = vmul.f32 %v2323_v43, %v2323_v43 }
 0x41a   :  { %v2388_v1 = vmul.f32 %v2356_v7, %v2356_v7 }
 0x41c   :  { %v2270_v41 = vpop.xlane.xlu1 %2269  ;;  %v2425_v11 = vadd.f32 %v2388_v1, %v2387_v52 }
 0x41d   :  { %v5850_v60 = vmul.f32 0.0051020407, %v2270_v41 }
 0x41e   :  { %2426 = vadd.xlane.f32.xlu1 %v2425_v11 }
 0x41f   :  { %v2326_v3 = vsub.f32 %v5747_v25, %v5850_v60  ;;  %v2325_v2 = vsub.f32 %v5253_v47, %v5850_v60 }
 0x421   :  { %v2358_v10 = vsel %vm2246_vm1, %v2326_v3, 0.0  ;;  %v2389_v44 = vmul.f32 %v2325_v2, %v2325_v2 }
 0x422   :  { %v2390_v22 = vmul.f32 %v2358_v10, %v2358_v10 }
 0x424   :  { %v2273_v34 = vpop.xlane.xlu2 %2272  ;;  %v2428_v24 = vadd.f32 %v2390_v22, %v2389_v44 }
 0x425   :  { %v5858_v61 = vmul.f32 0.0051020407, %v2273_v34 }
 0x426   :  { %2429 = vadd.xlane.f32.xlu2 %v2428_v24 }
 0x427   :  { %v2328_v37 = vsub.f32 %v5752_v15, %v5858_v61  ;;  %v2327_v8 = vsub.f32 %v5280_v16, %v5858_v61 }
 0x429   :  { %v2360_v31 = vsel %vm2246_vm1, %v2328_v37, 0.0  ;;  %v2391_v50 = vmul.f32 %v2327_v8, %v2327_v8 }
 0x42a   :  { %v2392_v17 = vmul.f32 %v2360_v31, %v2360_v31 }
 0x42c   :  { %v2276_v39 = vpop.xlane.xlu0 %2275  ;;  %v2431_v32 = vadd.f32 %v2392_v17, %v2391_v50 }
 0x42d   :  { %v5866_v6 = vmul.f32 0.0051020407, %v2276_v39 }
 0x42e   :  { %2432 = vadd.xlane.f32.xlu0 %v2431_v32 }
 0x42f   :  { %v2330_v12 = vsub.f32 %v5757_v51, %v5866_v6  ;;  %v2329_v43 = vsub.f32 %v5291_v58, %v5866_v6 }
 0x431   :  { %v2362_v7 = vsel %vm2246_vm1, %v2330_v12, 0.0  ;;  %v2393_v52 = vmul.f32 %v2329_v43, %v2329_v43 }
 0x432   :  { %v2394_v1 = vmul.f32 %v2362_v7, %v2362_v7 }
 0x434   :  { %v2279_v41 = vpop.xlane.xlu1 %2278  ;;  %v2434_v11 = vadd.f32 %v2394_v1, %v2393_v52 }
 0x435   :  { %v5874_v3 = vmul.f32 0.0051020407, %v2279_v41 }
 0x436   :  { %2435 = vadd.xlane.f32.xlu1 %v2434_v11 }
 0x437   :  { %v2332_v2 = vsub.f32 %v5762_v57, %v5874_v3  ;;  %v2331_v10 = vsub.f32 %v5318_v21, %v5874_v3 }
 0x439   :  { %v2364_v44 = vsel %vm2246_vm1, %v2332_v2, 0.0  ;;  %v2395_v22 = vmul.f32 %v2331_v10, %v2331_v10 }
 0x43a   :  { %v2396_v34 = vmul.f32 %v2364_v44, %v2364_v44 }
 0x43c   :  { %v2282_v24 = vpop.xlane.xlu2 %2281  ;;  %v2437_v37 = vadd.f32 %v2396_v34, %v2395_v22 }
 0x43d   :  { %v5882_v8 = vmul.f32 0.0051020407, %v2282_v24 }
 0x43e   :  { %2438 = vadd.xlane.f32.xlu2 %v2437_v37 }
 0x43f   :  { %v2334_v31 = vsub.f32 %v5767_v27, %v5882_v8  ;;  %v2333_v50 = vsub.f32 %v5335_v23, %v5882_v8 }
 0x441   :  { %v2366_v17 = vsel %vm2246_vm1, %v2334_v31, 0.0  ;;  %v2397_v39 = vmul.f32 %v2333_v50, %v2333_v50 }
 0x442   :  { %v2398_v32 = vmul.f32 %v2366_v17, %v2366_v17 }
 0x444   :  { %v2285_v12 = vpop.xlane.xlu0 %2284  ;;  %v2440_v43 = vadd.f32 %v2398_v32, %v2397_v39 }
 0x445   :  { %v5890_v7 = vmul.f32 0.0051020407, %v2285_v12 }
 0x446   :  { %2441 = vadd.xlane.f32.xlu0 %v2440_v43 }
 0x447   :  { %v2336_v52 = vsub.f32 %v5772_v42, %v5890_v7  ;;  %v2335_v1 = vsub.f32 %v5356_v0, %v5890_v7 }
 0x449   :  { %v2368_v41 = vsel %vm2246_vm1, %v2336_v52, 0.0  ;;  %v2399_v11 = vmul.f32 %v2335_v1, %v2335_v1 }
 0x44a   :  { %v2400_v2 = vmul.f32 %v2368_v41, %v2368_v41 }
 0x44c   :  { %v2288_v10 = vpop.xlane.xlu1 %2287  ;;  %v2443_v44 = vadd.f32 %v2400_v2, %v2399_v11  ;;  %v3098_v11 = vmov 0  }
 0x44d   :  { %v5898_v22 = vmul.f32 0.0051020407, %v2288_v10  ;;  %3037 = vset.pattern.permute.xlu2 %v3098_v11  ;;  %3038 = vset.pattern.permute.xlu1 %v3098_v11 }
 0x44e   :  { %2444 = vadd.xlane.f32.xlu1 %v2443_v44  ;;  %3039 = vset.pattern.permute.xlu0 %v3098_v11 }
 0x44f   :  { %v2338_v34 = vsub.f32 %v5777_v29, %v5898_v22  ;;  %v2337_v24 = vsub.f32 %v5367_v9, %v5898_v22 }
 0x451   :  { %v2370_v37 = vsel %vm2246_vm1, %v2338_v34, 0.0  ;;  %v2401_v31 = vmul.f32 %v2337_v24, %v2337_v24 }
 0x452   :  { %v2402_v50 = vmul.f32 %v2370_v37, %v2370_v37 }
 0x454   :  { %v2291_v17 = vpop.xlane.xlu2 %2290  ;;  %v2446_v39 = vadd.f32 %v2402_v50, %v2401_v31 }
 0x455   :  { %v5906_v32 = vmul.f32 0.0051020407, %v2291_v17 }
 0x456   :  { %2447 = vadd.xlane.f32.xlu2 %v2446_v39 }
 0x457   :  { %v2340_v12 = vsub.f32 %v5782_v19, %v5906_v32  ;;  %v2339_v43 = vsub.f32 %v5394_v26, %v5906_v32 }
 0x459   :  { %v2372_v52 = vsel %vm2246_vm1, %v2340_v12, 0.0  ;;  %v2403_v1 = vmul.f32 %v2339_v43, %v2339_v43 }
 0x45a   :  { %v2404_v41 = vmul.f32 %v2372_v52, %v2372_v52 }
 0x45c   :  { %v2294_v2 = vpop.xlane.xlu0 %2293  ;;  %v2449_v10 = vadd.f32 %v2404_v41, %v2403_v1 }
 0x45d   :  { %v5914_v44 = vmul.f32 0.0051020407, %v2294_v2 }
 0x45e   :  { %2450 = vadd.xlane.f32.xlu0 %v2449_v10 }
 0x45f   :  { %v2342_v34 = vsub.f32 %v5789_v5, %v5914_v44  ;;  %v2341_v24 = vsub.f32 %v5403_v59, %v5914_v44 }
 0x461   :  { %v2409_v37 = vpop.xlane.xlu1 %2408  ;;  %v2374_v31 = vsel %vm2246_vm1, %v2342_v34, 0.0  ;;  %v2405_v50 = vmul.f32 %v2341_v24, %v2341_v24 }
 0x462   :  { %v2455_v17 = vmul.f32 0.0051020407, %v2409_v37  ;;  %v2406_v39 = vmul.f32 %v2374_v31, %v2374_v31  ;;  %v2647_v31 = vld [vmem:[%s6071_s2] sm:$0xff] }
 0x464   :  { %v2471_v12 = vadd.f32 1e-05, %v2455_v17  ;;  %v2452_v43 = vadd.f32 %v2406_v39, %v2405_v50 }
 0x466   :  { %3040 = vrsqrt.f32 %v2471_v12  ;;  %2453 = vadd.xlane.f32.xlu1 %v2452_v43  ;;  %vm2493_vm3 = vweird.f32 %v2471_v12 }
 0x469   :  { %v2412_v52 = vpop.xlane.xlu2 %2411 }
 0x46a   :  { %v2456_v1 = vmul.f32 0.0051020407, %v2412_v52 }
 0x46c   :  { %v3041_v41 = vpop.eup %3040  ;;  %v2472_v11 = vadd.f32 1e-05, %v2456_v1 }
 0x46d   :  { %v2488_v2 = vmul.f32 %v3041_v41, %v2471_v12  ;;  %vm2494_vm2 = vweird.f32 %v3041_v41 }
 0x46e   :  { %3042 = vrsqrt.f32 %v2472_v11  ;;  %vm2495_vm4 = vmor %vm2493_vm3, %vm2494_vm2  ;;  %vm2503_vm6 = vweird.f32 %v2472_v11 }
 0x46f   :  { %v2489_v10 = vmul.f32 %v3041_v41, %v2488_v2 }
 0x471   :  { %v2490_v5 = vmul.f32 0.5, %v2489_v10  ;;  %v2415_v59 = vpop.xlane.xlu0 %2414 }
 0x472   :  { %v2457_v29 = vmul.f32 0.0051020407, %v2415_v59  ;;  %v2679_v59 = vld [vmem:[%s6072_s3] sm:$0xff] }
 0x473   :  { %v2491_v9 = vsub.f32 1.5, %v2490_v5 }
 0x474   :  { %v3043_v46 = vpop.eup %3042  ;;  %v2473_v34 = vadd.f32 1e-05, %v2457_v29 }
 0x475   :  { %v2498_v24 = vmul.f32 %v3043_v46, %v2472_v11  ;;  %v2492_v37 = vmul.f32 %v3041_v41, %v2491_v9  ;;  %vm2504_vm5 = vweird.f32 %v3043_v46 }
 0x476   :  { %3044 = vrsqrt.f32 %v2473_v34  ;;  %vm2505_vm7 = vmor %vm2503_vm6, %vm2504_vm5  ;;  %vm2513_vm9 = vweird.f32 %v2473_v34 }
 0x477   :  { %v2499_v50 = vmul.f32 %v3043_v46, %v2498_v24  ;;  %v2496_v17 = vsel %vm2495_vm4, %v3041_v41, %v2492_v37  ;;  %v2648_v41 = vld [vmem:[%s6071_s2 + $0x8] sm:$0xff] }
 0x478   :  { %v2663_v39 = vmul.f32 %v2647_v31, %v2496_v17 }
 0x479   :  { %v2500_v43 = vmul.f32 0.5, %v2499_v50  ;;  %v2418_v52 = vpop.xlane.xlu1 %2417 }
 0x47a   :  { %v2458_v5 = vmul.f32 0.0051020407, %v2418_v52  ;;  %2729 = vperm.xlu2 %3037, %v2663_v39   ;;  %v2695_v29 = vmul.f32 %v2663_v39, %v5791_v40 }
 0x47b   :  { %v2501_v9 = vsub.f32 1.5, %v2500_v43 }
 0x47c   :  { %v3045_v12 = vpop.eup %3044  ;;  %v2474_v1 = vadd.f32 1e-05, %v2458_v5  ;;  %v2711_v2 = vsub.f32 %v2679_v59, %v2695_v29  ;;  %v2680_v29 = vld [vmem:[%s6072_s3 + $0x8] sm:$0xff] }
 0x47d   :  { %v2508_v10 = vmul.f32 %v3045_v12, %v2473_v34  ;;  %v2502_v24 = vmul.f32 %v3043_v46, %v2501_v9  ;;  %vm2514_vm8 = vweird.f32 %v3045_v12 }
 0x47e   :  { %3046 = vrsqrt.f32 %v2474_v1  ;;  %vm2515_vm10 = vmor %vm2513_vm9, %vm2514_vm8  ;;  %vm2523_vm12 = vweird.f32 %v2474_v1 }
 0x47f   :  { %v2509_v37 = vmul.f32 %v3045_v12, %v2508_v10  ;;  %2841 = vperm.xlu1 %3038, %v2711_v2   ;;  %v2506_v31 = vsel %vm2505_vm7, %v3043_v46, %v2502_v24  ;;  %v2649_v46 = vld [vmem:[%s6071_s2 + $0x10] sm:$0xff] }
 0x480   :  { %v2664_v50 = vmul.f32 %v2648_v41, %v2506_v31 }
 0x481   :  { %v2510_v17 = vmul.f32 0.5, %v2509_v37  ;;  %v2421_v40 = vpop.xlane.xlu2 %2420 }
 0x482   :  { %v2459_v39 = vmul.f32 0.0051020407, %v2421_v40  ;;  %2734 = vperm.xlu0 %3039, %v2664_v50   ;;  %v2696_v59 = vmul.f32 %v2664_v50, %v5802_v35  ;;  %v2681_v35 = vld [vmem:[%s6072_s3 + $0x10] sm:$0xff] }
 0x483   :  { %v2511_v43 = vsub.f32 1.5, %v2510_v17 }
 0x484   :  { %v3047_v52 = vpop.eup %3046  ;;  %v2475_v11 = vadd.f32 1e-05, %v2459_v39  ;;  %v2712_v24 = vsub.f32 %v2680_v29, %v2696_v59 }
 0x485   :  { %v2518_v5 = vmul.f32 %v3047_v52, %v2474_v1  ;;  %v2512_v9 = vmul.f32 %v3045_v12, %v2511_v43  ;;  %vm2524_vm11 = vweird.f32 %v3047_v52 }
 0x486   :  { %3048 = vrsqrt.f32 %v2475_v11  ;;  %vm2525_vm13 = vmor %vm2523_vm12, %vm2524_vm11  ;;  %vm2533_vm15 = vweird.f32 %v2475_v11 }
 0x487   :  { %v2519_v2 = vmul.f32 %v3047_v52, %v2518_v5  ;;  %v2516_v10 = vsel %vm2515_vm10, %v3045_v12, %v2512_v9  ;;  %v2650_v5 = vld [vmem:[%s6071_s2 + $0x18] sm:$0xff] }
 0x488   :  { %v2665_v41 = vmul.f32 %v2649_v46, %v2516_v10  ;;  %v2682_v10 = vld [vmem:[%s6072_s3 + $0x18] sm:$0xff] }
 0x489   :  { %v2520_v37 = vmul.f32 0.5, %v2519_v2  ;;  %v2424_v31 = vpop.xlane.xlu0 %2423 }
 0x48a   :  { %v2460_v34 = vmul.f32 0.0051020407, %v2424_v31  ;;  %2846 = vperm.xlu0 %3039, %v2712_v24   ;;  %2739 = vperm.xlu1 %3038, %v2665_v41   ;;  %v2697_v50 = vmul.f32 %v2665_v41, %v5810_v48 }
 0x48b   :  { %v2521_v17 = vsub.f32 1.5, %v2520_v37 }
 0x48c   :  { %v3049_v40 = vpop.eup %3048  ;;  %v2476_v39 = vadd.f32 1e-05, %v2460_v34  ;;  %v2713_v43 = vsub.f32 %v2681_v35, %v2697_v50 }
 0x48d   :  { %v2528_v12 = vmul.f32 %v3049_v40, %v2475_v11  ;;  %v2522_v59 = vmul.f32 %v3047_v52, %v2521_v17  ;;  %vm2534_vm14 = vweird.f32 %v3049_v40 }
 0x48e   :  { %3050 = vrsqrt.f32 %v2476_v39  ;;  %2851 = vperm.xlu2 %3037, %v2713_v43   ;;  %vm2535_vm0 = vmor %vm2533_vm15, %vm2534_vm14  ;;  %vm2543_vm2 = vweird.f32 %v2476_v39 }
 0x48f   :  { %v2529_v29 = vmul.f32 %v3049_v40, %v2528_v12  ;;  %v2526_v9 = vsel %vm2525_vm13, %v3047_v52, %v2522_v59  ;;  %v2651_v52 = vld [vmem:[%s6071_s2 + $0x20] sm:$0xff] }
 0x490   :  { %v2666_v46 = vmul.f32 %v2650_v5, %v2526_v9  ;;  %v2683_v5 = vld [vmem:[%s6072_s3 + $0x20] sm:$0xff] }
 0x491   :  { %v2530_v2 = vmul.f32 0.5, %v2529_v29  ;;  %v2427_v48 = vpop.xlane.xlu1 %2426 }
 0x492   :  { %v2461_v24 = vmul.f32 0.0051020407, %v2427_v48  ;;  %v2698_v1 = vmul.f32 %v2666_v46, %v5818_v4 }
 0x493   :  { %v2531_v41 = vsub.f32 1.5, %v2530_v2 }
 0x494   :  { %v3051_v37 = vpop.eup %3050  ;;  %v2477_v31 = vadd.f32 1e-05, %v2461_v24  ;;  %v2714_v35 = vsub.f32 %v2682_v10, %v2698_v1 }
 0x495   :  { %v2532_v34 = vmul.f32 %v3049_v40, %v2531_v41  ;;  %v2538_v50 = vmul.f32 %v3051_v37, %v2476_v39  ;;  %vm2544_vm1 = vweird.f32 %v3051_v37 }
 0x496   :  { %3052 = vrsqrt.f32 %v2477_v31  ;;  %2744 = vperm.xlu2 %3037, %v2666_v46   ;;  %2856 = vperm.xlu1 %3038, %v2714_v35   ;;  %vm2545_vm3 = vmor %vm2543_vm2, %vm2544_vm1  ;;  %vm2553_vm5 = vweird.f32 %v2477_v31 }
 0x497   :  { %v2536_v17 = vsel %vm2535_vm0, %v3049_v40, %v2532_v34  ;;  %v2539_v43 = vmul.f32 %v3051_v37, %v2538_v50  ;;  %v2652_v40 = vld [vmem:[%s6071_s2 + $0x28] sm:$0xff] }
 0x498   :  { %v2667_v12 = vmul.f32 %v2651_v52, %v2536_v17  ;;  %v2684_v50 = vld [vmem:[%s6072_s3 + $0x28] sm:$0xff] }
 0x499   :  { %v2540_v4 = vmul.f32 0.5, %v2539_v43  ;;  %v2430_v59 = vpop.xlane.xlu2 %2429 }
 0x49a   :  { %v2462_v29 = vmul.f32 0.0051020407, %v2430_v59  ;;  %v2699_v11 = vmul.f32 %v2667_v12, %v5826_v38 }
 0x49b   :  { %v2541_v9 = vsub.f32 1.5, %v2540_v4 }
 0x49c   :  { %v3053_v2 = vpop.eup %3052  ;;  %v2478_v48 = vadd.f32 1e-05, %v2462_v29  ;;  %v2715_v10 = vsub.f32 %v2683_v5, %v2699_v11 }
 0x49d   :  { %v2548_v46 = vmul.f32 %v3053_v2, %v2477_v31  ;;  %v2542_v24 = vmul.f32 %v3051_v37, %v2541_v9  ;;  %vm2554_vm4 = vweird.f32 %v3053_v2 }
 0x49e   :  { %3054 = vrsqrt.f32 %v2478_v48  ;;  %2861 = vperm.xlu0 %3039, %v2715_v10   ;;  %2749 = vperm.xlu2 %3037, %v2667_v12   ;;  %vm2555_vm6 = vmor %vm2553_vm5, %vm2554_vm4  ;;  %vm2563_vm8 = vweird.f32 %v2478_v48 }
 0x49f   :  { %v2549_v1 = vmul.f32 %v3053_v2, %v2548_v46  ;;  %v2546_v41 = vsel %vm2545_vm3, %v3051_v37, %v2542_v24  ;;  %v2653_v37 = vld [vmem:[%s6071_s2 + $0x30] sm:$0xff] }
 0x4a0   :  { %v2668_v35 = vmul.f32 %v2652_v40, %v2546_v41  ;;  %v2685_v46 = vld [vmem:[%s6072_s3 + $0x30] sm:$0xff] }
 0x4a1   :  { %v2550_v38 = vmul.f32 0.5, %v2549_v1  ;;  %v2433_v34 = vpop.xlane.xlu0 %2432 }
 0x4a2   :  { %v2463_v39 = vmul.f32 0.0051020407, %v2433_v34  ;;  %2754 = vperm.xlu1 %3038, %v2668_v35   ;;  %v2700_v52 = vmul.f32 %v2668_v35, %v5834_v45 }
 0x4a3   :  { %v2551_v17 = vsub.f32 1.5, %v2550_v38 }
 0x4a4   :  { %v3055_v43 = vpop.eup %3054  ;;  %v2479_v4 = vadd.f32 1e-05, %v2463_v39  ;;  %v2716_v59 = vsub.f32 %v2684_v50, %v2700_v52 }
 0x4a5   :  { %v2558_v12 = vmul.f32 %v3055_v43, %v2478_v48  ;;  %v2552_v5 = vmul.f32 %v3053_v2, %v2551_v17  ;;  %vm2564_vm7 = vweird.f32 %v3055_v43 }
 0x4a6   :  { %3056 = vrsqrt.f32 %v2479_v4  ;;  %2866 = vperm.xlu2 %3037, %v2716_v59   ;;  %vm2565_vm9 = vmor %vm2563_vm8, %vm2564_vm7  ;;  %v2686_v59 = vld [vmem:[%s6072_s3 + $0x38] sm:$0xff]  ;;  %vm2573_vm11 = vweird.f32 %v2479_v4 }
 0x4a7   :  { %v2559_v29 = vmul.f32 %v3055_v43, %v2558_v12  ;;  %v2556_v11 = vsel %vm2555_vm6, %v3053_v2, %v2552_v5  ;;  %v2654_v2 = vld [vmem:[%s6071_s2 + $0x38] sm:$0xff] }
 0x4a8   :  { %v2669_v9 = vmul.f32 %v2653_v37, %v2556_v11 }
 0x4a9   :  { %v2560_v10 = vmul.f32 0.5, %v2559_v29  ;;  %v2436_v45 = vpop.xlane.xlu1 %2435 }
 0x4aa   :  { %v2464_v24 = vmul.f32 0.0051020407, %v2436_v45  ;;  %v2701_v31 = vmul.f32 %v2669_v9, %v5842_v30 }
 0x4ab   :  { %v2561_v40 = vsub.f32 1.5, %v2560_v10 }
 0x4ac   :  { %v3057_v1 = vpop.eup %3056  ;;  %v2480_v41 = vadd.f32 1e-05, %v2464_v24  ;;  %v2717_v35 = vsub.f32 %v2685_v46, %v2701_v31 }
 0x4ad   :  { %v2562_v38 = vmul.f32 %v3055_v43, %v2561_v40  ;;  %v2568_v34 = vmul.f32 %v3057_v1, %v2479_v4  ;;  %vm2574_vm10 = vweird.f32 %v3057_v1  ;;  %v2687_v40 = vld [vmem:[%s6072_s3 + $0x40] sm:$0xff] }
 0x4ae   :  { %3058 = vrsqrt.f32 %v2480_v41  ;;  %2759 = vperm.xlu2 %3037, %v2669_v9   ;;  %2871 = vperm.xlu1 %3038, %v2717_v35   ;;  %vm2575_vm12 = vmor %vm2573_vm11, %vm2574_vm10  ;;  %vm2583_vm14 = vweird.f32 %v2480_v41 }
 0x4af   :  { %v2566_v50 = vsel %vm2565_vm9, %v3055_v43, %v2562_v38  ;;  %v2569_v39 = vmul.f32 %v3057_v1, %v2568_v34  ;;  %v2655_v43 = vld [vmem:[%s6071_s2 + $0x40] sm:$0xff] }
 0x4b0   :  { %v2670_v52 = vmul.f32 %v2654_v2, %v2566_v50 }
 0x4b1   :  { %v2570_v30 = vmul.f32 0.5, %v2569_v39  ;;  %v2439_v17 = vpop.xlane.xlu2 %2438 }
 0x4b2   :  { %v2465_v12 = vmul.f32 0.0051020407, %v2439_v17  ;;  %v2702_v48 = vmul.f32 %v2670_v52, %v5850_v60 }
 0x4b3   :  { %v2571_v5 = vsub.f32 1.5, %v2570_v30 }
 0x4b4   :  { %v3059_v37 = vpop.eup %3058  ;;  %v2481_v29 = vadd.f32 1e-05, %v2465_v12  ;;  %v2718_v11 = vsub.f32 %v2686_v59, %v2702_v48  ;;  %v2688_v48 = vld [vmem:[%s6072_s3 + $0x48] sm:$0xff] }
 0x4b5   :  { %v2578_v9 = vmul.f32 %v3059_v37, %v2480_v41  ;;  %v2572_v10 = vmul.f32 %v3057_v1, %v2571_v5  ;;  %vm2584_vm13 = vweird.f32 %v3059_v37 }
 0x4b6   :  { %3060 = vrsqrt.f32 %v2481_v29  ;;  %2876 = vperm.xlu0 %3039, %v2718_v11   ;;  %2764 = vperm.xlu1 %3038, %v2670_v52   ;;  %vm2585_vm15 = vmor %vm2583_vm14, %vm2584_vm13  ;;  %vm2593_vm1 = vweird.f32 %v2481_v29 }
 0x4b7   :  { %v2579_v45 = vmul.f32 %v3059_v37, %v2578_v9  ;;  %v2576_v46 = vsel %vm2575_vm12, %v3057_v1, %v2572_v10  ;;  %v2656_v1 = vld [vmem:[%s6071_s2 + $0x48] sm:$0xff] }
 0x4b8   :  { %v2671_v24 = vmul.f32 %v2655_v43, %v2576_v46 }
 0x4b9   :  { %v2580_v60 = vmul.f32 0.5, %v2579_v45  ;;  %v2442_v31 = vpop.xlane.xlu0 %2441 }
 0x4ba   :  { %v2466_v4 = vmul.f32 0.0051020407, %v2442_v31  ;;  %v2703_v35 = vmul.f32 %v2671_v24, %v5858_v61 }
 0x4bb   :  { %v2581_v38 = vsub.f32 1.5, %v2580_v60 }
 0x4bc   :  { %v3061_v34 = vpop.eup %3060  ;;  %v2482_v2 = vadd.f32 1e-05, %v2466_v4  ;;  %v2719_v50 = vsub.f32 %v2687_v40, %v2703_v35  ;;  %v2689_v4 = vld [vmem:[%s6072_s3 + $0x50] sm:$0xff] }
 0x4bd   :  { %v2588_v39 = vmul.f32 %v3061_v34, %v2481_v29  ;;  %v2582_v52 = vmul.f32 %v3059_v37, %v2581_v38  ;;  %vm2594_vm0 = vweird.f32 %v3061_v34 }
 0x4be   :  { %3062 = vrsqrt.f32 %v2482_v2  ;;  %2769 = vperm.xlu0 %3039, %v2671_v24   ;;  %2881 = vperm.xlu2 %3037, %v2719_v50   ;;  %vm2595_vm2 = vmor %vm2593_vm1, %vm2594_vm0  ;;  %vm2603_vm4 = vweird.f32 %v2482_v2 }
 0x4bf   :  { %v2589_v30 = vmul.f32 %v3061_v34, %v2588_v39  ;;  %v2586_v17 = vsel %vm2585_vm15, %v3059_v37, %v2582_v52  ;;  %v2657_v37 = vld [vmem:[%s6071_s2 + $0x50] sm:$0xff] }
 0x4c0   :  { %v2672_v59 = vmul.f32 %v2656_v1, %v2586_v17 }
 0x4c1   :  { %v2590_v61 = vmul.f32 0.5, %v2589_v30  ;;  %v2445_v12 = vpop.xlane.xlu1 %2444 }
 0x4c2   :  { %v2467_v41 = vmul.f32 0.0051020407, %v2445_v12  ;;  %v2704_v5 = vmul.f32 %v2672_v59, %v5866_v6 }
 0x4c3   :  { %v2591_v11 = vsub.f32 1.5, %v2590_v61 }
 0x4c4   :  { %v3063_v9 = vpop.eup %3062  ;;  %v2483_v10 = vadd.f32 1e-05, %v2467_v41  ;;  %v2720_v43 = vsub.f32 %v2688_v48, %v2704_v5  ;;  %v2690_v48 = vld [vmem:[%s6072_s3 + $0x58] sm:$0xff] }
 0x4c5   :  { %v2592_v45 = vmul.f32 %v3061_v34, %v2591_v11  ;;  %v2598_v46 = vmul.f32 %v3063_v9, %v2482_v2  ;;  %vm2604_vm3 = vweird.f32 %v3063_v9 }
 0x4c6   :  { %3064 = vrsqrt.f32 %v2483_v10  ;;  %2774 = vperm.xlu2 %3037, %v2672_v59   ;;  %2886 = vperm.xlu1 %3038, %v2720_v43   ;;  %vm2605_vm5 = vmor %vm2603_vm4, %vm2604_vm3  ;;  %vm2613_vm7 = vweird.f32 %v2483_v10 }
 0x4c7   :  { %v2596_v24 = vsel %vm2595_vm2, %v3061_v34, %v2592_v45  ;;  %v2599_v60 = vmul.f32 %v3063_v9, %v2598_v46  ;;  %v2658_v34 = vld [vmem:[%s6071_s2 + $0x58] sm:$0xff] }
 0x4c8   :  { %v2673_v31 = vmul.f32 %v2657_v37, %v2596_v24  ;;  %v2659_v37 = vld [vmem:[%s6071_s2 + $0x60] sm:$0xff] }
 0x4c9   :  { %v2600_v6 = vmul.f32 0.5, %v2599_v60  ;;  %v2448_v40 = vpop.xlane.xlu2 %2447 }
 0x4ca   :  { %v2468_v35 = vmul.f32 0.0051020407, %v2448_v40  ;;  %v2705_v29 = vmul.f32 %v2673_v31, %v5874_v3 }
 0x4cb   :  { %v2601_v38 = vsub.f32 1.5, %v2600_v6 }
 0x4cc   :  { %v3065_v50 = vpop.eup %3064  ;;  %v2484_v39 = vadd.f32 1e-05, %v2468_v35  ;;  %v2721_v52 = vsub.f32 %v2689_v4, %v2705_v29  ;;  %v2691_v4 = vld [vmem:[%s6072_s3 + $0x60] sm:$0xff] }
 0x4cd   :  { %v2608_v1 = vmul.f32 %v3065_v50, %v2483_v10  ;;  %v2602_v30 = vmul.f32 %v3063_v9, %v2601_v38  ;;  %vm2614_vm6 = vweird.f32 %v3065_v50 }
 0x4ce   :  { %3066 = vrsqrt.f32 %v2484_v39  ;;  %2891 = vperm.xlu0 %3039, %v2721_v52   ;;  %2779 = vperm.xlu1 %3038, %v2673_v31   ;;  %vm2615_vm8 = vmor %vm2613_vm7, %vm2614_vm6  ;;  %vm2623_vm10 = vweird.f32 %v2484_v39 }
 0x4cf   :  { %v2609_v17 = vmul.f32 %v3065_v50, %v2608_v1  ;;  %v2606_v59 = vsel %vm2605_vm5, %v3063_v9, %v2602_v30 }
 0x4d0   :  { %v2674_v61 = vmul.f32 %v2658_v34, %v2606_v59  ;;  %v2660_v59 = vld [vmem:[%s6071_s2 + $0x68] sm:$0xff] }
 0x4d1   :  { %v2610_v3 = vmul.f32 0.5, %v2609_v17  ;;  %v2451_v12 = vpop.xlane.xlu0 %2450 }
 0x4d2   :  { %v2469_v2 = vmul.f32 0.0051020407, %v2451_v12  ;;  %v2706_v41 = vmul.f32 %v2674_v61, %v5882_v8 }
 0x4d3   :  { %v2611_v5 = vsub.f32 1.5, %v2610_v3 }
 0x4d4   :  { %v3067_v11 = vpop.eup %3066  ;;  %v2485_v43 = vadd.f32 1e-05, %v2469_v2  ;;  %v2722_v45 = vsub.f32 %v2690_v48, %v2706_v41  ;;  %v2661_v2 = vld [vmem:[%s6071_s2 + $0x70] sm:$0xff] }
 0x4d5   :  { %v2618_v46 = vmul.f32 %v3067_v11, %v2484_v39  ;;  %v2612_v9 = vmul.f32 %v3065_v50, %v2611_v5  ;;  %vm2624_vm9 = vweird.f32 %v3067_v11 }
 0x4d6   :  { %3068 = vrsqrt.f32 %v2485_v43  ;;  %2784 = vperm.xlu0 %3039, %v2674_v61   ;;  %2896 = vperm.xlu2 %3037, %v2722_v45   ;;  %vm2625_vm11 = vmor %vm2623_vm10, %vm2624_vm9  ;;  %vm2633_vm13 = vweird.f32 %v2485_v43 }
 0x4d7   :  { %v2619_v24 = vmul.f32 %v3067_v11, %v2618_v46  ;;  %v2616_v60 = vsel %vm2615_vm8, %v3065_v50, %v2612_v9  ;;  %v2730_v46 = vpop.permute.xlu2 %2729 }
 0x4d8   :  { %v2675_v6 = vmul.f32 %v2659_v37, %v2616_v60 }
 0x4d9   :  { %v2620_v31 = vmul.f32 0.5, %v2619_v24  ;;  %v2454_v8 = vpop.xlane.xlu1 %2453  ;;  %v2662_v24 = vld [vmem:[%s6071_s2 + $0x78] sm:$0xff] }
 0x4da   :  { %v2470_v40 = vmul.f32 0.0051020407, %v2454_v8  ;;  %v2707_v35 = vmul.f32 %v2675_v6, %v5890_v7  ;;  %v2808_v8 = vmul.f32 %v2730_v46, %v5712_v54  ;;  %v2693_v54 = vld [vmem:[%s6072_s3 + $0x70] sm:$0xff] }
 0x4db   :  { %v2621_v10 = vsub.f32 1.5, %v2620_v31  ;;  %v2807_v31 = vmul.f32 %v2730_v46, %v5128_v36 }
 0x4dc   :  { %v3069_v29 = vpop.eup %3068  ;;  %v2486_v38 = vadd.f32 1e-05, %v2470_v40  ;;  %v2723_v1 = vsub.f32 %v2691_v4, %v2707_v35 }
 0x4dd   :  { %v2628_v52 = vmul.f32 %v3069_v29, %v2485_v43  ;;  %v2622_v30 = vmul.f32 %v3067_v11, %v2621_v10  ;;  %vm2634_vm12 = vweird.f32 %v3069_v29  ;;  %v2692_v43 = vld [vmem:[%s6072_s3 + $0x68] sm:$0xff] }
 0x4de   :  { %3070 = vrsqrt.f32 %v2486_v38  ;;  %2789 = vperm.xlu2 %3037, %v2675_v6   ;;  %2901 = vperm.xlu1 %3038, %v2723_v1   ;;  %vm2635_vm14 = vmor %vm2633_vm13, %vm2634_vm12  ;;  %vm2643_vm0 = vweird.f32 %v2486_v38 }
 0x4df   :  { %v2629_v50 = vmul.f32 %v3069_v29, %v2628_v52  ;;  %v2626_v17 = vsel %vm2625_vm11, %v3067_v11, %v2622_v30 }
 0x4e0   :  { %v2676_v12 = vmul.f32 %v2660_v59, %v2626_v17 }
 0x4e1   :  { %v2630_v34 = vmul.f32 0.5, %v2629_v50 }
 0x4e2   :  { %v2708_v9 = vmul.f32 %v2676_v12, %v5898_v22  ;;  %v2694_v22 = vld [vmem:[%s6072_s3 + $0x78] sm:$0xff]  ;;  %s3099_s3 = smov [#allocation2]  }
 0x4e3   :  { %v2631_v61 = vsub.f32 1.5, %v2630_v34  ;;  %s2987_s22 = sshll.u32 %s3099_s3, 4  ;;  %s2988_s22 = int_to_ptr.vmem [resolvable:$true] %s2987_s22 }
 0x4e4   :  { %v3071_v7 = vpop.eup %3070  ;;  %v2724_v6 = vsub.f32 %v2692_v43, %v2708_v9 }
 0x4e5   :  { %v2638_v3 = vmul.f32 %v3071_v7, %v2486_v38  ;;  %v2632_v48 = vmul.f32 %v3069_v29, %v2631_v61  ;;  %vm2644_vm15 = vweird.f32 %v3071_v7 }
 0x4e6   :  { %2794 = vperm.xlu1 %3038, %v2676_v12   ;;  %vm2645_vm1 = vmor %vm2643_vm0, %vm2644_vm15 }
 0x4e7   :  { %v2639_v39 = vmul.f32 %v3071_v7, %v2638_v3  ;;  %v2636_v41 = vsel %vm2635_vm14, %v3069_v29, %v2632_v48 }
 0x4e8   :  { %v2677_v5 = vmul.f32 %v2661_v2, %v2636_v41  ;;  %v2852_v38 = vpop.permute.xlu2 %2851 }
 0x4e9   :  { %v2640_v11 = vmul.f32 0.5, %v2639_v39 }
 0x4ea   :  { %2799 = vperm.xlu0 %3039, %v2677_v5   ;;  %v2709_v36 = vmul.f32 %v2677_v5, %v5906_v32 }
 0x4eb   :  { %v2641_v45 = vsub.f32 1.5, %v2640_v11 }
 0x4ec   :  { %v2725_v30 = vsub.f32 %v2693_v54, %v2709_v36 }
 0x4ed   :  { %v2642_v37 = vmul.f32 %v3071_v7, %v2641_v45 }
 0x4ef   :  { %v2646_v60 = vsel %vm2645_vm1, %v3071_v7, %v2642_v37 }
 0x4f0   :  { %v2678_v40 = vmul.f32 %v2662_v24, %v2646_v60  ;;  %v2745_v3 = vpop.permute.xlu2 %2744 }
 0x4f1   :  { %v2842_v4 = vpop.permute.xlu1 %2841  ;;  %v2813_v2 = vmul.f32 %v2745_v3, %v5177_v20 }
 0x4f2   :  { %v2919_v10 = vadd.f32 %v2842_v4, %v2807_v31  ;;  %v2920_v35 = vadd.f32 %v2842_v4, %v2808_v8  ;;  %2906 = vperm.xlu0 %3039, %v2724_v6   ;;  %2804 = vperm.xlu2 %3037, %v2678_v40   ;;  %v2710_v29 = vmul.f32 %v2678_v40, %v5914_v44 }
 0x4f4   :  { %2951 = vst [vmem:[#allocation2] sm:$0xff] %v2919_v10  ;;  %v2735_v52 = vpop.permute.xlu0 %2734  ;;  %v2726_v1 = vsub.f32 %v2694_v22, %v2710_v29 }
 0x4f5   :  { %2952 = vst [vmem:[#allocation2 + $0x8] sm:$0xff] %v2920_v35  ;;  %v2809_v50 = vmul.f32 %v2735_v52, %v5139_v28  ;;  %v2810_v34 = vmul.f32 %v2735_v52, %v5717_v33  ;;  %v2814_v28 = vmul.f32 %v2745_v3, %v5727_v56 }
 0x4f6   :  { %2916 = vperm.xlu1 %3038, %v2726_v1  }
 0x4f8   :  { %v2750_v33 = vpop.permute.xlu2 %2749 }
 0x4fa   :  { %2911 = vperm.xlu2 %3037, %v2725_v30  }
 0x4fc   :  { %v2847_v17 = vpop.permute.xlu0 %2846  ;;  %v2740_v44 = vpop.permute.xlu1 %2739 }
 0x4fd   :  { %v2921_v59 = vadd.f32 %v2847_v17, %v2809_v50  ;;  %v2922_v61 = vadd.f32 %v2847_v17, %v2810_v34  ;;  %v2811_v7 = vmul.f32 %v2740_v44, %v5166_v14  ;;  %v2812_v32 = vmul.f32 %v2740_v44, %v5722_v13 }
 0x4fe   :  { %v2815_v14 = vmul.f32 %v2750_v33, %v5204_v49  ;;  %v2816_v13 = vmul.f32 %v2750_v33, %v5732_v62 }
 0x4ff   :  { %2953 = vst [vmem:[#allocation2 + $0x10] sm:$0xff] %v2921_v59  ;;  %v2923_v12 = vadd.f32 %v2852_v38, %v2811_v7  ;;  %v2924_v48 = vadd.f32 %v2852_v38, %v2812_v32 }
 0x500   :  { %2954 = vst [vmem:[#allocation2 + $0x18] sm:$0xff] %v2922_v61  ;;  %v2867_v9 = vpop.permute.xlu2 %2866 }
 0x501   :  { %2955 = vst [vmem:[#allocation2 + $0x20] sm:$0xff] %v2923_v12 }
 0x502   :  { %2956 = vst [vmem:[#allocation2 + $0x28] sm:$0xff] %v2924_v48 }
 0x508   :  { %v2857_v39 = vpop.permute.xlu1 %2856  ;;  %v2760_v60 = vpop.permute.xlu2 %2759 }
 0x509   :  { %v2925_v41 = vadd.f32 %v2857_v39, %v2813_v2  ;;  %v2926_v5 = vadd.f32 %v2857_v39, %v2814_v28  ;;  %v2819_v49 = vmul.f32 %v2760_v60, %v5242_v53  ;;  %v2820_v62 = vmul.f32 %v2760_v60, %v5742_v55 }
 0x50b   :  { %2957 = vst [vmem:[#allocation2 + $0x30] sm:$0xff] %v2925_v41 }
 0x50c   :  { %2958 = vst [vmem:[#allocation2 + $0x38] sm:$0xff] %v2926_v5 }
 0x510   :  { %v2862_v11 = vpop.permute.xlu0 %2861 }
 0x511   :  { %v2927_v45 = vadd.f32 %v2862_v11, %v2815_v14  ;;  %v2928_v46 = vadd.f32 %v2862_v11, %v2816_v13 }
 0x513   :  { %2959 = vst [vmem:[#allocation2 + $0x40] sm:$0xff] %v2927_v45 }
 0x514   :  { %2960 = vst [vmem:[#allocation2 + $0x48] sm:$0xff] %v2928_v46  ;;  %v2755_v43 = vpop.permute.xlu1 %2754 }
 0x515   :  { %v2817_v20 = vmul.f32 %v2755_v43, %v5215_v63  ;;  %v2818_v56 = vmul.f32 %v2755_v43, %v5737_v18  ;;  %v6286_v43 = vld [vmem:[#allocation14_spill] sm:$0xff] }
 0x517   :  { %v2929_v37 = vadd.f32 %v2867_v9, %v2817_v20  ;;  %v2930_v24 = vadd.f32 %v2867_v9, %v2818_v56 }
 0x518   :  { %v2882_v22 = vpop.permute.xlu2 %2881 }
 0x519   :  { %2961 = vst [vmem:[#allocation2 + $0x50] sm:$0xff] %v2929_v37 }
 0x51a   :  { %2962 = vst [vmem:[#allocation2 + $0x58] sm:$0xff] %v2930_v24 }
 0x520   :  { %v2872_v31 = vpop.permute.xlu1 %2871  ;;  %v2775_v1 = vpop.permute.xlu2 %2774 }
 0x521   :  { %v2931_v8 = vadd.f32 %v2872_v31, %v2819_v49  ;;  %v2932_v6 = vadd.f32 %v2872_v31, %v2820_v62  ;;  %v2825_v36 = vmul.f32 %v2775_v1, %v5291_v58 }
 0x523   :  { %2963 = vst [vmem:[#allocation2 + $0x60] sm:$0xff] %v2931_v8 }
 0x524   :  { %2964 = vst [vmem:[#allocation2 + $0x68] sm:$0xff] %v2932_v6 }
 0x528   :  { %v2877_v40 = vpop.permute.xlu0 %2876  ;;  %v2765_v4 = vpop.permute.xlu1 %2764 }
 0x529   :  { %v2821_v63 = vmul.f32 %v2765_v4, %v5253_v47  ;;  %v2822_v18 = vmul.f32 %v2765_v4, %v5747_v25  ;;  %v2826_v47 = vmul.f32 %v2775_v1, %v5757_v51 }
 0x52b   :  { %v2933_v10 = vadd.f32 %v2877_v40, %v2821_v63  ;;  %v2934_v35 = vadd.f32 %v2877_v40, %v2822_v18 }
 0x52d   :  { %2965 = vst [vmem:[#allocation2 + $0x70] sm:$0xff] %v2933_v10 }
 0x52e   :  { %2966 = vst [vmem:[#allocation2 + $0x78] sm:$0xff] %v2934_v35 }
 0x530   :  { %v2770_v29 = vpop.permute.xlu0 %2769  ;;  %v2897_v17 = vpop.permute.xlu2 %2896 }
 0x531   :  { %v2823_v53 = vmul.f32 %v2770_v29, %v5280_v16  ;;  %v2824_v55 = vmul.f32 %v2770_v29, %v5752_v15 }
 0x533   :  { %v2935_v38 = vadd.f32 %v2882_v22, %v2823_v53  ;;  %v2936_v52 = vadd.f32 %v2882_v22, %v2824_v55 }
 0x535   :  { %2967 = vst [vmem:[#allocation2 + $0x80] sm:$0xff] %v2935_v38 }
 0x536   :  { %2968 = vst [vmem:[#allocation2 + $0x88] sm:$0xff] %v2936_v52 }
 0x538   :  { %v2887_v25 = vpop.permute.xlu1 %2886  ;;  %v2790_v3 = vpop.permute.xlu2 %2789 }
 0x539   :  { %v2937_v54 = vadd.f32 %v2887_v25, %v2825_v36  ;;  %v2938_v30 = vadd.f32 %v2887_v25, %v2826_v47  ;;  %v2831_v12 = vmul.f32 %v2790_v3, %v5356_v0  ;;  %v6283_v0 = vld [vmem:[#allocation5_spill] sm:$0xff] }
 0x53b   :  { %2969 = vst [vmem:[#allocation2 + $0x90] sm:$0xff] %v2937_v54 }
 0x53c   :  { %2970 = vst [vmem:[#allocation2 + $0x98] sm:$0xff] %v2938_v30 }
 0x540   :  { %v2892_v50 = vpop.permute.xlu0 %2891  ;;  %v2780_v34 = vpop.permute.xlu1 %2779 }
 0x541   :  { %v2827_v16 = vmul.f32 %v2780_v34, %v5318_v21  ;;  %v2828_v15 = vmul.f32 %v2780_v34, %v5762_v57  ;;  %v2832_v21 = vmul.f32 %v2790_v3, %v5772_v42  ;;  %v6284_v42 = vld [vmem:[#allocation13_spill] sm:$0xff] }
 0x543   :  { %v2939_v44 = vadd.f32 %v2892_v50, %v2827_v16  ;;  %v2940_v59 = vadd.f32 %v2892_v50, %v2828_v15 }
 0x545   :  { %2971 = vst [vmem:[#allocation2 + $0xa0] sm:$0xff] %v2939_v44 }
 0x546   :  { %2972 = vst [vmem:[#allocation2 + $0xa8] sm:$0xff] %v2940_v59 }
 0x548   :  { %v2785_v61 = vpop.permute.xlu0 %2784 }
 0x549   :  { %v2829_v58 = vmul.f32 %v2785_v61, %v5335_v23  ;;  %v2830_v51 = vmul.f32 %v2785_v61, %v5767_v27 }
 0x54b   :  { %v2941_v7 = vadd.f32 %v2897_v17, %v2829_v58  ;;  %v2942_v32 = vadd.f32 %v2897_v17, %v2830_v51 }
 0x54c   :  { %v2805_v28 = vpop.permute.xlu2 %2804 }
 0x54d   :  { %2973 = vst [vmem:[#allocation2 + $0xb0] sm:$0xff] %v2941_v7  ;;  %v2838_v20 = vmul.f32 %v2805_v28, %v6286_v43 }
 0x54e   :  { %2974 = vst [vmem:[#allocation2 + $0xb8] sm:$0xff] %v2942_v32 }
 0x550   :  { %v2902_v57 = vpop.permute.xlu1 %2901 }
 0x551   :  { %v2943_v48 = vadd.f32 %v2902_v57, %v2831_v12  ;;  %v2944_v2 = vadd.f32 %v2902_v57, %v2832_v21 }
 0x553   :  { %2975 = vst [vmem:[#allocation2 + $0xc0] sm:$0xff] %v2943_v48 }
 0x554   :  { %2976 = vst [vmem:[#allocation2 + $0xc8] sm:$0xff] %v2944_v2  ;;  %v2912_v39 = vpop.permute.xlu2 %2911 }
 0x558   :  { %v2795_v14 = vpop.permute.xlu1 %2794 }
 0x559   :  { %v2833_v13 = vmul.f32 %v2795_v14, %v6283_v0  ;;  %v2834_v11 = vmul.f32 %v2795_v14, %v6284_v42 }
 0x55c   :  { %v2800_v33 = vpop.permute.xlu0 %2799 }
 0x55d   :  { %v2835_v23 = vmul.f32 %v2800_v33, %v5394_v26  ;;  %v2836_v27 = vmul.f32 %v2800_v33, %v5782_v19  ;;  %v6285_v26 = vld [vmem:[#allocation15_spill] sm:$0xff] }
 0x55e   :  { %v2837_v19 = vmul.f32 %v2805_v28, %v6285_v26 }
 0x55f   :  { %v2947_v41 = vadd.f32 %v2912_v39, %v2835_v23  ;;  %v2948_v5 = vadd.f32 %v2912_v39, %v2836_v27 }
 0x561   :  { %2979 = vst [vmem:[#allocation2 + $0xe0] sm:$0xff] %v2947_v41 }
 0x562   :  { %2980 = vst [vmem:[#allocation2 + $0xe8] sm:$0xff] %v2948_v5 }
 0x564   :  { %v2907_v45 = vpop.permute.xlu0 %2906 }
 0x565   :  { %v2945_v46 = vadd.f32 %v2907_v45, %v2833_v13  ;;  %v2946_v9 = vadd.f32 %v2907_v45, %v2834_v11 }
 0x567   :  { %2977 = vst [vmem:[#allocation2 + $0xd0] sm:$0xff] %v2945_v46 }
 0x568   :  { %2978 = vst [vmem:[#allocation2 + $0xd8] sm:$0xff] %v2946_v9  ;;  %v2917_v56 = vpop.permute.xlu1 %2916 }
 0x569   :  { %v2949_v37 = vadd.f32 %v2917_v56, %v2837_v19  ;;  %v2950_v24 = vadd.f32 %v2917_v56, %v2838_v20 }
 0x56b   :  { %2981 = vst [vmem:[#allocation2 + $0xf0] sm:$0xff] %v2949_v37 }
 0x56c   :  { %2982 = vst [vmem:[#allocation2 + $0xf8] sm:$0xff] %v2950_v24 }
 0x56d   :  { %2995 = dma.vmem_to_hbm [thread:$0]  %s2988_s22, 4096, %s2990_s24, [#allocation3], %s3100_s25, %s3100_s25, %s3101_s26  }
 0x56e   :  { %3096 = dma.done.wait [#allocation3], 4096  }
 0x56f   :  { %3097 = vsyncadd [#allocation3], 4294963200 }
 0x570   :  { %3000 = vsyncpa [#allocation3], 1 }

</bundles_post_ra>
